<compile_context>
chip_gen: v7x
topology: tpu7x:2x2x1
jax: 0.10.0
libtpu: 0.0.40
codegen_flags: <defaults>
</compile_context>

<pallas_src>
import functools
import math

import jax
import jax.numpy as jnp
from jax.experimental import pallas as pl


def _round_up(n, m):
    return ((n + m - 1) // m) * m


# ----------------------------- fused kernel -----------------------------

def make_fused_kernel(B, C, L, E, H, n_out):
    assert E % H == 0
    hd = E // H
    BE = B * E                    # activation slab rows (= 8 for the test sizes)
    NJ = B * H                    # number of (batch, head) blocks

    EMB_SW = _round_up(BE, 8)                    # embedding block in small-weight pack
    SW_LAYER = _round_up((6 + NJ) * BE, 8)       # wqkv_ext (6*BE) + wsel (NJ*BE)
    EMB_BP = _round_up(BE, 8)                    # embedding bias block
    BP_LAYER = _round_up(7 * BE + 2, 8)          # bqkv_ext + bo + b1 + b2, sublane aligned

    f32 = jnp.float32

    def kernel(raw_ref, sw_ref, bp_ref, wm_ref, o_ref):
        # ---- embedding Linear(C -> E): one block-diagonal K=BE matmul, both
        #      batches at once.  Slab layout: row b*E+e = feature e of batch b,
        #      lanes = the L sequence positions (lane-dense everywhere).
        x = jnp.dot(sw_ref[0:BE, :], raw_ref[...],
                    preferred_element_type=f32) + bp_ref[0:BE, :]          # (BE, L)

        for i in range(3):
            swb = EMB_SW + i * SW_LAYER
            bpb = EMB_BP + i * BP_LAYER
            wmb = i * 2 * L

            wqkv = sw_ref[swb: swb + 6 * BE, :]                  # (6*BE, BE)
            wsel = sw_ref[swb + 6 * BE: swb + (6 + NJ) * BE, :]  # (NJ*BE, BE)
            bqkv = bp_ref[bpb: bpb + 6 * BE, :]                  # (6*BE, L)
            bo = bp_ref[bpb + 6 * BE: bpb + 7 * BE, :]           # (BE, L)
            b1 = bp_ref[bpb + 7 * BE: bpb + 7 * BE + 1, :]       # (1, L)
            b2 = bp_ref[bpb + 7 * BE + 1: bpb + 7 * BE + 2, :]   # (1, L)
            w1t = wm_ref[wmb: wmb + L, :]                        # (L, L)
            w2t = wm_ref[wmb + L: wmb + 2 * L, :]                # (L, L) (layer 3: lane-padded)

            # ---- QKV projection (both batches, all heads) in one K=BE dot.
            # Rows: [K blk-diag (BE); V blk-diag (BE); masked+scaled Q per
            # (batch, head) (NJ x BE)].  All subsequent slices are 8-row aligned.
            qkv = jnp.dot(wqkv, x, preferred_element_type=f32) + bqkv       # (6*BE, L)
            k_all = qkv[0:BE, :]                                            # (BE, L)
            v_all = qkv[BE:2 * BE, :]                                       # (BE, L)
            k_t = k_all.T                                                   # (L, BE) one XLU xpose

            # W'_{b,h} = Wo[:, head h] @ V_{b,h}, for every (b,h), via ONE
            # precomputed-selection matmul (batch block-diagonal zeros baked in).
            wstack = jnp.dot(wsel, v_all, preferred_element_type=f32)       # (NJ*BE, L)

            # ---- scores + softmax per (batch, head) ----
            ps = []
            for j in range(NJ):
                qm = qkv[(2 + j) * BE: (3 + j) * BE, :]         # masked, pre-scaled Q block
                # scores^T: keys on sublanes, queries on lanes (K=BE MXU dot;
                # rows outside head (b,h) are zero in qm -> exact head scores).
                st = jnp.dot(k_t, qm, preferred_element_type=f32)           # (L, L)
                st = st - jnp.max(st, axis=0, keepdims=True)
                p = jnp.exp(st)
                p = p * pl.reciprocal(jnp.sum(p, axis=0, keepdims=True),
                                      approx=True)
                ps.append(p)

            # ---- fused P.V + output projection: one K = NJ*L matmul ----
            lhs = jnp.concatenate(
                [wstack[j * BE:(j + 1) * BE, :] for j in range(NJ)], axis=1)  # (BE, NJ*L)
            pall = jnp.concatenate(ps, axis=0)                                # (NJ*L, L)
            y = jnp.dot(lhs, pall, preferred_element_type=f32) + bo           # (BE, L)

            # ---- MLP over the sequence axis: (BE, L) @ (L, L) ----
            hid = jnp.maximum(jnp.dot(y, w1t, preferred_element_type=f32) + b1, 0.0)
            if i < 2:
                x = jnp.dot(hid, w2t, preferred_element_type=f32) + b2        # (BE, L)
            else:
                # torch.sum(dim=1) folded into a (B, BE) row-sum matmul; w2t is
                # lane-padded to 128 so everything stays lane-dense until the
                # single masked (B, n_out) store.
                sum_bd = sw_ref[EMB_SW + 3 * SW_LAYER:
                                EMB_SW + 3 * SW_LAYER + B, :]                 # (B, BE)
                hsum = jnp.dot(sum_bd, hid, preferred_element_type=f32)       # (B, L)
                out = jnp.dot(hsum, w2t, preferred_element_type=f32) + b2     # (B, L)
                o_ref[...] = out[:, :n_out].astype(o_ref.dtype)

    return kernel


# --------------------------- params & packing ---------------------------

def init_params(key, input_channels, embed_dim, input_size, output_classes):
    """Parameters in the PyTorch nn.Module layout."""
    keys = iter(jax.random.split(key, 40))

    def lin(out_f, in_f):
        bound = 1.0 / math.sqrt(in_f)
        w = jax.random.uniform(next(keys), (out_f, in_f), jnp.float32, -bound, bound)
        b = jax.random.uniform(next(keys), (out_f,), jnp.float32, -bound, bound)
        return w, b

    p = {}
    p["embed_w"], p["embed_b"] = lin(embed_dim, input_channels)
    for i in (1, 2, 3):
        # nn.MultiheadAttention: packed in_proj [Wq; Wk; Wv] (3E, E) + bias,
        # out_proj (E, E) + bias.
        p[f"attn{i}_in_w"], p[f"attn{i}_in_b"] = lin(3 * embed_dim, embed_dim)
        p[f"attn{i}_out_w"], p[f"attn{i}_out_b"] = lin(embed_dim, embed_dim)
        p[f"mlp{i}_w1"], p[f"mlp{i}_b1"] = lin(input_size, input_size)
        out2 = input_size if i < 3 else output_classes
        p[f"mlp{i}_w2"], p[f"mlp{i}_b2"] = lin(out2, input_size)
    return p


def prepare_params(p, B, C, L, E, H, n_out):
    """One-time layout prep: bake batch/head structure into block-diagonal and
    selection matrices and pack everything into 3 arrays (3 DMAs)."""
    hd = E // H
    scale = 1.0 / math.sqrt(hd)
    BE = B * E
    NJ = B * H
    f32 = jnp.float32

    EMB_SW = _round_up(BE, 8)
    SW_LAYER = _round_up((6 + NJ) * BE, 8)
    EMB_BP = _round_up(BE, 8)
    BP_LAYER = _round_up(7 * BE + 2, 8)

    def blkdiag(w, nblk):
        r, c = w.shape
        out = jnp.zeros((nblk * r, nblk * c), f32)
        for b in range(nblk):
            out = out.at[b * r:(b + 1) * r, b * c:(b + 1) * c].set(w)
        return out

    def pad_rows(a, rows):
        return jnp.pad(a, ((0, rows - a.shape[0]), (0, 0)))

    def bcast(v):                                   # (n,) -> (n, L) lane-broadcast
        return jnp.tile(v.reshape(-1, 1), (1, L))

    sw, bp, wm = [], [], []

    # ---- embedding: block-diag (BE, B*C), K zero-padded to BE ----
    we_bd = blkdiag(p["embed_w"].astype(f32), B)
    we_bd = jnp.pad(we_bd, ((0, 0), (0, BE - B * C)))
    sw.append(pad_rows(we_bd, EMB_SW))
    bp.append(pad_rows(bcast(jnp.tile(p["embed_b"], B)), EMB_BP))

    for i in (1, 2, 3):
        in_w, in_b = p[f"attn{i}_in_w"], p[f"attn{i}_in_b"]
        wq, wk, wv = in_w[:E], in_w[E:2 * E], in_w[2 * E:]
        bq, bk, bv = in_b[:E], in_b[E:2 * E], in_b[2 * E:]
        wo, bo = p[f"attn{i}_out_w"], p[f"attn{i}_out_b"]
        wq_s, bq_s = scale * wq, scale * bq          # fold 1/sqrt(head_dim) into Q

        # extended QKV weight: [K blk-diag; V blk-diag; masked Q per (b,h)]
        blocks_w = [blkdiag(wk, B), blkdiag(wv, B)]
        blocks_b = [jnp.tile(bk, B), jnp.tile(bv, B)]
        for b in range(B):
            for h in range(H):
                qb = jnp.zeros((BE, BE), f32)
                qb = qb.at[b * E + h * hd: b * E + (h + 1) * hd,
                           b * E:(b + 1) * E].set(wq_s[h * hd:(h + 1) * hd, :])
                blocks_w.append(qb)
                bb = jnp.zeros((BE,), f32)
                bb = bb.at[b * E + h * hd: b * E + (h + 1) * hd].set(
                    bq_s[h * hd:(h + 1) * hd])
                blocks_b.append(bb)
        wqkv_ext = jnp.concatenate(blocks_w, axis=0)          # (6*BE, BE)
        bqkv_ext = jnp.concatenate(blocks_b, axis=0)          # (6*BE,)

        # selection matrix producing W'_{b,h} = Wo[:, head h] @ V_{b,h} stacked
        # per (b,h) block (batch block-diagonal zeros already in place).
        wsel_blocks = []
        for b in range(B):
            for h in range(H):
                sb = jnp.zeros((BE, BE), f32)
                sb = sb.at[b * E:(b + 1) * E,
                           b * E + h * hd: b * E + (h + 1) * hd].set(
                    wo[:, h * hd:(h + 1) * hd])
                wsel_blocks.append(sb)
        wsel = jnp.concatenate(wsel_blocks, axis=0)           # (NJ*BE, BE)

        sw.append(pad_rows(jnp.concatenate([wqkv_ext, wsel], axis=0), SW_LAYER))

        # MLP weights (pre-transposed); layer 3 w2/b2 lane-padded to L, bias
        # pre-scaled by E because the row-sum is folded in before this matmul.
        w1t = p[f"mlp{i}_w1"].T
        b1 = p[f"mlp{i}_b1"].reshape(1, L)
        if i < 3:
            w2t = p[f"mlp{i}_w2"].T
            b2 = p[f"mlp{i}_b2"].reshape(1, L)
        else:
            w2t = jnp.pad(p[f"mlp{i}_w2"].T, ((0, 0), (0, L - n_out)))
            b2 = jnp.pad((E * p[f"mlp{i}_b2"]).reshape(1, n_out),
                         ((0, 0), (0, L - n_out)))
        wm += [w1t, w2t]

        bias_block = jnp.concatenate(
            [bcast(bqkv_ext), bcast(jnp.tile(bo, B)), b1, b2], axis=0)  # (7*BE+2, L)
        bp.append(pad_rows(bias_block, BP_LAYER))

    # per-batch row-sum matrix for the final torch.sum(dim=1)
    sw.append(blkdiag(jnp.ones((1, E), f32), B))              # (B, BE)

    return (jnp.concatenate(sw, axis=0),      # small weights, lane width BE
            jnp.concatenate(bp, axis=0),      # biases, lane width L
            jnp.concatenate(wm, axis=0))      # MLP weights, (6*L, L)


# ------------------------------ wrapper ------------------------------

@functools.partial(jax.jit, static_argnames=("num_heads",))
def attention_forward(raw, params, num_heads):
    B, C, L = raw.shape
    E = params["embed_w"].shape[0]
    n_out = params["mlp3_w2"].shape[0]
    BE = B * E
    assert B * C <= BE

    smallw, biasp, wmlp = prepare_params(params, B=B, C=C, L=L, E=E,
                                         H=num_heads, n_out=n_out)

    # lane-dense, vreg-aligned input slab: (B*C, L) rows zero-padded to BE rows
    rawp = jnp.zeros((BE, L), jnp.float32).at[:B * C, :].set(
        raw.astype(jnp.float32).reshape(B * C, L))

    kernel = make_fused_kernel(B=B, C=C, L=L, E=E, H=num_heads, n_out=n_out)
    # Single fused invocation: no grid, everything whole-array in VMEM, 4 DMAs in.
    out = pl.pallas_call(
        kernel,
        out_shape=jax.ShapeDtypeStruct((B, n_out), jnp.float32),
    )(rawp, smallw, biasp, wmlp)
    return out.reshape(B, 1, n_out)


# ------------------------------ main -------------------------------

if __name__ == "__main__":
    B, C, L, E, H, NCLS = 2, 1, 128, 4, 2, 7   # small shapes consistent with the module
    key = jax.random.PRNGKey(0)
    kp, kx = jax.random.split(key)
    params = init_params(kp, input_channels=C, embed_dim=E, input_size=L,
                         output_classes=NCLS)
    raw = jax.random.normal(kx, (B, C, L), jnp.float32)

    out = attention_forward(raw, params, num_heads=H)
    out = jax.block_until_ready(out)
    assert out.shape == (B, 1, NCLS), out.shape
    print("KERNEL_OK")
</pallas_src>

<mosaic_0001>
module attributes {stable_mosaic.version = 11 : i64} {
  func.func @kernel(%arg0: memref<8x128xf32, #tpu.memory_space<vmem>>, %arg1: memref<250x8xf32, #tpu.memory_space<vmem>>, %arg2: memref<200x128xf32, #tpu.memory_space<vmem>>, %arg3: memref<768x128xf32, #tpu.memory_space<vmem>>, %arg4: memref<2x7xf32, #tpu.memory_space<vmem>>) attributes {dimension_semantics = [], scalar_prefetch = 0 : i64, scratch_operands = 0 : i64, tpu.core_type = #tpu.core_type<tc>} {
    %c0 = arith.constant 0 : index
    %c0_0 = arith.constant 0 : index
    %0 = vector.load %arg1[%c0, %c0_0] : memref<250x8xf32, #tpu.memory_space<vmem>>, vector<8x8xf32>
    %c0_1 = arith.constant 0 : index
    %c0_2 = arith.constant 0 : index
    %1 = vector.load %arg0[%c0_1, %c0_2] : memref<8x128xf32, #tpu.memory_space<vmem>>, vector<8x128xf32>
    %cst = arith.constant dense<0.000000e+00> : vector<8x128xf32>
    %2 = tpu.matmul %0, %1, %cst {dimension_numbers = #tpu.dot_dimension_numbers<[1], [0], [0], [1], [0, 0, 1, 1], [], []>} : vector<8x8xf32>, vector<8x128xf32>, vector<8x128xf32> -> vector<8x128xf32>
    %c0_3 = arith.constant 0 : index
    %c0_4 = arith.constant 0 : index
    %3 = vector.load %arg2[%c0_3, %c0_4] : memref<200x128xf32, #tpu.memory_space<vmem>>, vector<8x128xf32>
    %4 = arith.addf %2, %3 : vector<8x128xf32>
    %c8 = arith.constant 8 : index
    %c0_5 = arith.constant 0 : index
    %5 = vector.load %arg1[%c8, %c0_5] : memref<250x8xf32, #tpu.memory_space<vmem>>, vector<48x8xf32>
    %c56 = arith.constant 56 : index
    %c0_6 = arith.constant 0 : index
    %6 = vector.load %arg1[%c56, %c0_6] : memref<250x8xf32, #tpu.memory_space<vmem>>, vector<32x8xf32>
    %c8_7 = arith.constant 8 : index
    %c0_8 = arith.constant 0 : index
    %7 = vector.load %arg2[%c8_7, %c0_8] : memref<200x128xf32, #tpu.memory_space<vmem>>, vector<48x128xf32>
    %c56_9 = arith.constant 56 : index
    %c0_10 = arith.constant 0 : index
    %8 = vector.load %arg2[%c56_9, %c0_10] : memref<200x128xf32, #tpu.memory_space<vmem>>, vector<8x128xf32>
    %c64 = arith.constant 64 : index
    %c0_11 = arith.constant 0 : index
    %9 = vector.load %arg2[%c64, %c0_11] : memref<200x128xf32, #tpu.memory_space<vmem>>, vector<1x128xf32>
    %c65 = arith.constant 65 : index
    %c0_12 = arith.constant 0 : index
    %10 = vector.load %arg2[%c65, %c0_12] : memref<200x128xf32, #tpu.memory_space<vmem>>, vector<1x128xf32>
    %c0_13 = arith.constant 0 : index
    %c0_14 = arith.constant 0 : index
    %11 = vector.load %arg3[%c0_13, %c0_14] : memref<768x128xf32, #tpu.memory_space<vmem>>, vector<128x128xf32>
    %c128 = arith.constant 128 : index
    %c0_15 = arith.constant 0 : index
    %12 = vector.load %arg3[%c128, %c0_15] : memref<768x128xf32, #tpu.memory_space<vmem>>, vector<128x128xf32>
    %cst_16 = arith.constant dense<0.000000e+00> : vector<48x128xf32>
    %13 = tpu.matmul %5, %4, %cst_16 {dimension_numbers = #tpu.dot_dimension_numbers<[1], [0], [0], [1], [0, 0, 1, 1], [], []>} : vector<48x8xf32>, vector<8x128xf32>, vector<48x128xf32> -> vector<48x128xf32>
    %14 = arith.addf %13, %7 : vector<48x128xf32>
    %15 = vector.extract_strided_slice %14 {offsets = [0, 0], sizes = [8, 128], strides = [1, 1]} : vector<48x128xf32> to vector<8x128xf32>
    %16 = vector.extract_strided_slice %14 {offsets = [8, 0], sizes = [8, 128], strides = [1, 1]} : vector<48x128xf32> to vector<8x128xf32>
    %17 = tpu.transpose %15, [1, 0] : vector<8x128xf32> -> vector<128x8xf32>
    %cst_17 = arith.constant dense<0.000000e+00> : vector<32x128xf32>
    %18 = tpu.matmul %6, %16, %cst_17 {dimension_numbers = #tpu.dot_dimension_numbers<[1], [0], [0], [1], [0, 0, 1, 1], [], []>} : vector<32x8xf32>, vector<8x128xf32>, vector<32x128xf32> -> vector<32x128xf32>
    %19 = vector.extract_strided_slice %14 {offsets = [16, 0], sizes = [8, 128], strides = [1, 1]} : vector<48x128xf32> to vector<8x128xf32>
    %cst_18 = arith.constant dense<0.000000e+00> : vector<128x128xf32>
    %20 = tpu.matmul %17, %19, %cst_18 {dimension_numbers = #tpu.dot_dimension_numbers<[1], [0], [0], [1], [0, 0, 1, 1], [], []>} : vector<128x8xf32>, vector<8x128xf32>, vector<128x128xf32> -> vector<128x128xf32>
    %cst_19 = arith.constant dense<0xFF800000> : vector<128xf32>
    %21 = vector.multi_reduction <maximumf>, %20, %cst_19 [0] : vector<128x128xf32> to vector<128xf32>
    %22 = vector.shape_cast %21 : vector<128xf32> to vector<1x128xf32>
    %23 = vector.broadcast %22 : vector<1x128xf32> to vector<128x128xf32>
    %24 = arith.subf %20, %23 : vector<128x128xf32>
    %25 = math.exp %24 : vector<128x128xf32>
    %cst_20 = arith.constant dense<0.000000e+00> : vector<128xf32>
    %26 = vector.multi_reduction <add>, %25, %cst_20 [0] : vector<128x128xf32> to vector<128xf32>
    %27 = vector.shape_cast %26 : vector<128xf32> to vector<1x128xf32>
    %28 = tpu.reciprocal %27 {approx = true} : vector<1x128xf32> -> vector<1x128xf32>
    %29 = vector.broadcast %28 : vector<1x128xf32> to vector<128x128xf32>
    %30 = arith.mulf %25, %29 : vector<128x128xf32>
    %31 = vector.extract_strided_slice %14 {offsets = [24, 0], sizes = [8, 128], strides = [1, 1]} : vector<48x128xf32> to vector<8x128xf32>
    %cst_21 = arith.constant dense<0.000000e+00> : vector<128x128xf32>
    %32 = tpu.matmul %17, %31, %cst_21 {dimension_numbers = #tpu.dot_dimension_numbers<[1], [0], [0], [1], [0, 0, 1, 1], [], []>} : vector<128x8xf32>, vector<8x128xf32>, vector<128x128xf32> -> vector<128x128xf32>
    %cst_22 = arith.constant dense<0xFF800000> : vector<128xf32>
    %33 = vector.multi_reduction <maximumf>, %32, %cst_22 [0] : vector<128x128xf32> to vector<128xf32>
    %34 = vector.shape_cast %33 : vector<128xf32> to vector<1x128xf32>
    %35 = vector.broadcast %34 : vector<1x128xf32> to vector<128x128xf32>
    %36 = arith.subf %32, %35 : vector<128x128xf32>
    %37 = math.exp %36 : vector<128x128xf32>
    %cst_23 = arith.constant dense<0.000000e+00> : vector<128xf32>
    %38 = vector.multi_reduction <add>, %37, %cst_23 [0] : vector<128x128xf32> to vector<128xf32>
    %39 = vector.shape_cast %38 : vector<128xf32> to vector<1x128xf32>
    %40 = tpu.reciprocal %39 {approx = true} : vector<1x128xf32> -> vector<1x128xf32>
    %41 = vector.broadcast %40 : vector<1x128xf32> to vector<128x128xf32>
    %42 = arith.mulf %37, %41 : vector<128x128xf32>
    %43 = vector.extract_strided_slice %14 {offsets = [32, 0], sizes = [8, 128], strides = [1, 1]} : vector<48x128xf32> to vector<8x128xf32>
    %cst_24 = arith.constant dense<0.000000e+00> : vector<128x128xf32>
    %44 = tpu.matmul %17, %43, %cst_24 {dimension_numbers = #tpu.dot_dimension_numbers<[1], [0], [0], [1], [0, 0, 1, 1], [], []>} : vector<128x8xf32>, vector<8x128xf32>, vector<128x128xf32> -> vector<128x128xf32>
    %cst_25 = arith.constant dense<0xFF800000> : vector<128xf32>
    %45 = vector.multi_reduction <maximumf>, %44, %cst_25 [0] : vector<128x128xf32> to vector<128xf32>
    %46 = vector.shape_cast %45 : vector<128xf32> to vector<1x128xf32>
    %47 = vector.broadcast %46 : vector<1x128xf32> to vector<128x128xf32>
    %48 = arith.subf %44, %47 : vector<128x128xf32>
    %49 = math.exp %48 : vector<128x128xf32>
    %cst_26 = arith.constant dense<0.000000e+00> : vector<128xf32>
    %50 = vector.multi_reduction <add>, %49, %cst_26 [0] : vector<128x128xf32> to vector<128xf32>
    %51 = vector.shape_cast %50 : vector<128xf32> to vector<1x128xf32>
    %52 = tpu.reciprocal %51 {approx = true} : vector<1x128xf32> -> vector<1x128xf32>
    %53 = vector.broadcast %52 : vector<1x128xf32> to vector<128x128xf32>
    %54 = arith.mulf %49, %53 : vector<128x128xf32>
    %55 = vector.extract_strided_slice %14 {offsets = [40, 0], sizes = [8, 128], strides = [1, 1]} : vector<48x128xf32> to vector<8x128xf32>
    %cst_27 = arith.constant dense<0.000000e+00> : vector<128x128xf32>
    %56 = tpu.matmul %17, %55, %cst_27 {dimension_numbers = #tpu.dot_dimension_numbers<[1], [0], [0], [1], [0, 0, 1, 1], [], []>} : vector<128x8xf32>, vector<8x128xf32>, vector<128x128xf32> -> vector<128x128xf32>
    %cst_28 = arith.constant dense<0xFF800000> : vector<128xf32>
    %57 = vector.multi_reduction <maximumf>, %56, %cst_28 [0] : vector<128x128xf32> to vector<128xf32>
    %58 = vector.shape_cast %57 : vector<128xf32> to vector<1x128xf32>
    %59 = vector.broadcast %58 : vector<1x128xf32> to vector<128x128xf32>
    %60 = arith.subf %56, %59 : vector<128x128xf32>
    %61 = math.exp %60 : vector<128x128xf32>
    %cst_29 = arith.constant dense<0.000000e+00> : vector<128xf32>
    %62 = vector.multi_reduction <add>, %61, %cst_29 [0] : vector<128x128xf32> to vector<128xf32>
    %63 = vector.shape_cast %62 : vector<128xf32> to vector<1x128xf32>
    %64 = tpu.reciprocal %63 {approx = true} : vector<1x128xf32> -> vector<1x128xf32>
    %65 = vector.broadcast %64 : vector<1x128xf32> to vector<128x128xf32>
    %66 = arith.mulf %61, %65 : vector<128x128xf32>
    %67 = vector.extract_strided_slice %18 {offsets = [0, 0], sizes = [8, 128], strides = [1, 1]} : vector<32x128xf32> to vector<8x128xf32>
    %68 = vector.extract_strided_slice %18 {offsets = [8, 0], sizes = [8, 128], strides = [1, 1]} : vector<32x128xf32> to vector<8x128xf32>
    %69 = vector.extract_strided_slice %18 {offsets = [16, 0], sizes = [8, 128], strides = [1, 1]} : vector<32x128xf32> to vector<8x128xf32>
    %70 = vector.extract_strided_slice %18 {offsets = [24, 0], sizes = [8, 128], strides = [1, 1]} : vector<32x128xf32> to vector<8x128xf32>
    %71 = tpu.concatenate %67, %68, %69, %70 in 1 : vector<8x128xf32>, vector<8x128xf32>, vector<8x128xf32>, vector<8x128xf32> -> vector<8x512xf32>
    %72 = tpu.concatenate %30, %42, %54, %66 in 0 : vector<128x128xf32>, vector<128x128xf32>, vector<128x128xf32>, vector<128x128xf32> -> vector<512x128xf32>
    %cst_30 = arith.constant dense<0.000000e+00> : vector<8x128xf32>
    %73 = tpu.matmul %71, %72, %cst_30 {dimension_numbers = #tpu.dot_dimension_numbers<[1], [0], [0], [1], [0, 0, 1, 1], [], []>} : vector<8x512xf32>, vector<512x128xf32>, vector<8x128xf32> -> vector<8x128xf32>
    %74 = arith.addf %73, %8 : vector<8x128xf32>
    %cst_31 = arith.constant dense<0.000000e+00> : vector<8x128xf32>
    %75 = tpu.matmul %74, %11, %cst_31 {dimension_numbers = #tpu.dot_dimension_numbers<[1], [0], [0], [1], [0, 0, 1, 1], [], []>} : vector<8x128xf32>, vector<128x128xf32>, vector<8x128xf32> -> vector<8x128xf32>
    %76 = vector.broadcast %9 : vector<1x128xf32> to vector<8x128xf32>
    %77 = arith.addf %75, %76 : vector<8x128xf32>
    %cst_32 = arith.constant 0.000000e+00 : f32
    %78 = vector.broadcast %cst_32 : f32 to vector<8x128xf32>
    %79 = arith.maximumf %77, %78 : vector<8x128xf32>
    %cst_33 = arith.constant dense<0.000000e+00> : vector<8x128xf32>
    %80 = tpu.matmul %79, %12, %cst_33 {dimension_numbers = #tpu.dot_dimension_numbers<[1], [0], [0], [1], [0, 0, 1, 1], [], []>} : vector<8x128xf32>, vector<128x128xf32>, vector<8x128xf32> -> vector<8x128xf32>
    %81 = vector.broadcast %10 : vector<1x128xf32> to vector<8x128xf32>
    %82 = arith.addf %80, %81 : vector<8x128xf32>
    %c88 = arith.constant 88 : index
    %c0_34 = arith.constant 0 : index
    %83 = vector.load %arg1[%c88, %c0_34] : memref<250x8xf32, #tpu.memory_space<vmem>>, vector<48x8xf32>
    %c136 = arith.constant 136 : index
    %c0_35 = arith.constant 0 : index
    %84 = vector.load %arg1[%c136, %c0_35] : memref<250x8xf32, #tpu.memory_space<vmem>>, vector<32x8xf32>
    %c72 = arith.constant 72 : index
    %c0_36 = arith.constant 0 : index
    %85 = vector.load %arg2[%c72, %c0_36] : memref<200x128xf32, #tpu.memory_space<vmem>>, vector<48x128xf32>
    %c120 = arith.constant 120 : index
    %c0_37 = arith.constant 0 : index
    %86 = vector.load %arg2[%c120, %c0_37] : memref<200x128xf32, #tpu.memory_space<vmem>>, vector<8x128xf32>
    %c128_38 = arith.constant 128 : index
    %c0_39 = arith.constant 0 : index
    %87 = vector.load %arg2[%c128_38, %c0_39] : memref<200x128xf32, #tpu.memory_space<vmem>>, vector<1x128xf32>
    %c129 = arith.constant 129 : index
    %c0_40 = arith.constant 0 : index
    %88 = vector.load %arg2[%c129, %c0_40] : memref<200x128xf32, #tpu.memory_space<vmem>>, vector<1x128xf32>
    %c256 = arith.constant 256 : index
    %c0_41 = arith.constant 0 : index
    %89 = vector.load %arg3[%c256, %c0_41] : memref<768x128xf32, #tpu.memory_space<vmem>>, vector<128x128xf32>
    %c384 = arith.constant 384 : index
    %c0_42 = arith.constant 0 : index
    %90 = vector.load %arg3[%c384, %c0_42] : memref<768x128xf32, #tpu.memory_space<vmem>>, vector<128x128xf32>
    %cst_43 = arith.constant dense<0.000000e+00> : vector<48x128xf32>
    %91 = tpu.matmul %83, %82, %cst_43 {dimension_numbers = #tpu.dot_dimension_numbers<[1], [0], [0], [1], [0, 0, 1, 1], [], []>} : vector<48x8xf32>, vector<8x128xf32>, vector<48x128xf32> -> vector<48x128xf32>
    %92 = arith.addf %91, %85 : vector<48x128xf32>
    %93 = vector.extract_strided_slice %92 {offsets = [0, 0], sizes = [8, 128], strides = [1, 1]} : vector<48x128xf32> to vector<8x128xf32>
    %94 = vector.extract_strided_slice %92 {offsets = [8, 0], sizes = [8, 128], strides = [1, 1]} : vector<48x128xf32> to vector<8x128xf32>
    %95 = tpu.transpose %93, [1, 0] : vector<8x128xf32> -> vector<128x8xf32>
    %cst_44 = arith.constant dense<0.000000e+00> : vector<32x128xf32>
    %96 = tpu.matmul %84, %94, %cst_44 {dimension_numbers = #tpu.dot_dimension_numbers<[1], [0], [0], [1], [0, 0, 1, 1], [], []>} : vector<32x8xf32>, vector<8x128xf32>, vector<32x128xf32> -> vector<32x128xf32>
    %97 = vector.extract_strided_slice %92 {offsets = [16, 0], sizes = [8, 128], strides = [1, 1]} : vector<48x128xf32> to vector<8x128xf32>
    %cst_45 = arith.constant dense<0.000000e+00> : vector<128x128xf32>
    %98 = tpu.matmul %95, %97, %cst_45 {dimension_numbers = #tpu.dot_dimension_numbers<[1], [0], [0], [1], [0, 0, 1, 1], [], []>} : vector<128x8xf32>, vector<8x128xf32>, vector<128x128xf32> -> vector<128x128xf32>
    %cst_46 = arith.constant dense<0xFF800000> : vector<128xf32>
    %99 = vector.multi_reduction <maximumf>, %98, %cst_46 [0] : vector<128x128xf32> to vector<128xf32>
    %100 = vector.shape_cast %99 : vector<128xf32> to vector<1x128xf32>
    %101 = vector.broadcast %100 : vector<1x128xf32> to vector<128x128xf32>
    %102 = arith.subf %98, %101 : vector<128x128xf32>
    %103 = math.exp %102 : vector<128x128xf32>
    %cst_47 = arith.constant dense<0.000000e+00> : vector<128xf32>
    %104 = vector.multi_reduction <add>, %103, %cst_47 [0] : vector<128x128xf32> to vector<128xf32>
    %105 = vector.shape_cast %104 : vector<128xf32> to vector<1x128xf32>
    %106 = tpu.reciprocal %105 {approx = true} : vector<1x128xf32> -> vector<1x128xf32>
    %107 = vector.broadcast %106 : vector<1x128xf32> to vector<128x128xf32>
    %108 = arith.mulf %103, %107 : vector<128x128xf32>
    %109 = vector.extract_strided_slice %92 {offsets = [24, 0], sizes = [8, 128], strides = [1, 1]} : vector<48x128xf32> to vector<8x128xf32>
    %cst_48 = arith.constant dense<0.000000e+00> : vector<128x128xf32>
    %110 = tpu.matmul %95, %109, %cst_48 {dimension_numbers = #tpu.dot_dimension_numbers<[1], [0], [0], [1], [0, 0, 1, 1], [], []>} : vector<128x8xf32>, vector<8x128xf32>, vector<128x128xf32> -> vector<128x128xf32>
    %cst_49 = arith.constant dense<0xFF800000> : vector<128xf32>
    %111 = vector.multi_reduction <maximumf>, %110, %cst_49 [0] : vector<128x128xf32> to vector<128xf32>
    %112 = vector.shape_cast %111 : vector<128xf32> to vector<1x128xf32>
    %113 = vector.broadcast %112 : vector<1x128xf32> to vector<128x128xf32>
    %114 = arith.subf %110, %113 : vector<128x128xf32>
    %115 = math.exp %114 : vector<128x128xf32>
    %cst_50 = arith.constant dense<0.000000e+00> : vector<128xf32>
    %116 = vector.multi_reduction <add>, %115, %cst_50 [0] : vector<128x128xf32> to vector<128xf32>
    %117 = vector.shape_cast %116 : vector<128xf32> to vector<1x128xf32>
    %118 = tpu.reciprocal %117 {approx = true} : vector<1x128xf32> -> vector<1x128xf32>
    %119 = vector.broadcast %118 : vector<1x128xf32> to vector<128x128xf32>
    %120 = arith.mulf %115, %119 : vector<128x128xf32>
    %121 = vector.extract_strided_slice %92 {offsets = [32, 0], sizes = [8, 128], strides = [1, 1]} : vector<48x128xf32> to vector<8x128xf32>
    %cst_51 = arith.constant dense<0.000000e+00> : vector<128x128xf32>
    %122 = tpu.matmul %95, %121, %cst_51 {dimension_numbers = #tpu.dot_dimension_numbers<[1], [0], [0], [1], [0, 0, 1, 1], [], []>} : vector<128x8xf32>, vector<8x128xf32>, vector<128x128xf32> -> vector<128x128xf32>
    %cst_52 = arith.constant dense<0xFF800000> : vector<128xf32>
    %123 = vector.multi_reduction <maximumf>, %122, %cst_52 [0] : vector<128x128xf32> to vector<128xf32>
    %124 = vector.shape_cast %123 : vector<128xf32> to vector<1x128xf32>
    %125 = vector.broadcast %124 : vector<1x128xf32> to vector<128x128xf32>
    %126 = arith.subf %122, %125 : vector<128x128xf32>
    %127 = math.exp %126 : vector<128x128xf32>
    %cst_53 = arith.constant dense<0.000000e+00> : vector<128xf32>
    %128 = vector.multi_reduction <add>, %127, %cst_53 [0] : vector<128x128xf32> to vector<128xf32>
    %129 = vector.shape_cast %128 : vector<128xf32> to vector<1x128xf32>
    %130 = tpu.reciprocal %129 {approx = true} : vector<1x128xf32> -> vector<1x128xf32>
    %131 = vector.broadcast %130 : vector<1x128xf32> to vector<128x128xf32>
    %132 = arith.mulf %127, %131 : vector<128x128xf32>
    %133 = vector.extract_strided_slice %92 {offsets = [40, 0], sizes = [8, 128], strides = [1, 1]} : vector<48x128xf32> to vector<8x128xf32>
    %cst_54 = arith.constant dense<0.000000e+00> : vector<128x128xf32>
    %134 = tpu.matmul %95, %133, %cst_54 {dimension_numbers = #tpu.dot_dimension_numbers<[1], [0], [0], [1], [0, 0, 1, 1], [], []>} : vector<128x8xf32>, vector<8x128xf32>, vector<128x128xf32> -> vector<128x128xf32>
    %cst_55 = arith.constant dense<0xFF800000> : vector<128xf32>
    %135 = vector.multi_reduction <maximumf>, %134, %cst_55 [0] : vector<128x128xf32> to vector<128xf32>
    %136 = vector.shape_cast %135 : vector<128xf32> to vector<1x128xf32>
    %137 = vector.broadcast %136 : vector<1x128xf32> to vector<128x128xf32>
    %138 = arith.subf %134, %137 : vector<128x128xf32>
    %139 = math.exp %138 : vector<128x128xf32>
    %cst_56 = arith.constant dense<0.000000e+00> : vector<128xf32>
    %140 = vector.multi_reduction <add>, %139, %cst_56 [0] : vector<128x128xf32> to vector<128xf32>
    %141 = vector.shape_cast %140 : vector<128xf32> to vector<1x128xf32>
    %142 = tpu.reciprocal %141 {approx = true} : vector<1x128xf32> -> vector<1x128xf32>
    %143 = vector.broadcast %142 : vector<1x128xf32> to vector<128x128xf32>
    %144 = arith.mulf %139, %143 : vector<128x128xf32>
    %145 = vector.extract_strided_slice %96 {offsets = [0, 0], sizes = [8, 128], strides = [1, 1]} : vector<32x128xf32> to vector<8x128xf32>
    %146 = vector.extract_strided_slice %96 {offsets = [8, 0], sizes = [8, 128], strides = [1, 1]} : vector<32x128xf32> to vector<8x128xf32>
    %147 = vector.extract_strided_slice %96 {offsets = [16, 0], sizes = [8, 128], strides = [1, 1]} : vector<32x128xf32> to vector<8x128xf32>
    %148 = vector.extract_strided_slice %96 {offsets = [24, 0], sizes = [8, 128], strides = [1, 1]} : vector<32x128xf32> to vector<8x128xf32>
    %149 = tpu.concatenate %145, %146, %147, %148 in 1 : vector<8x128xf32>, vector<8x128xf32>, vector<8x128xf32>, vector<8x128xf32> -> vector<8x512xf32>
    %150 = tpu.concatenate %108, %120, %132, %144 in 0 : vector<128x128xf32>, vector<128x128xf32>, vector<128x128xf32>, vector<128x128xf32> -> vector<512x128xf32>
    %cst_57 = arith.constant dense<0.000000e+00> : vector<8x128xf32>
    %151 = tpu.matmul %149, %150, %cst_57 {dimension_numbers = #tpu.dot_dimension_numbers<[1], [0], [0], [1], [0, 0, 1, 1], [], []>} : vector<8x512xf32>, vector<512x128xf32>, vector<8x128xf32> -> vector<8x128xf32>
    %152 = arith.addf %151, %86 : vector<8x128xf32>
    %cst_58 = arith.constant dense<0.000000e+00> : vector<8x128xf32>
    %153 = tpu.matmul %152, %89, %cst_58 {dimension_numbers = #tpu.dot_dimension_numbers<[1], [0], [0], [1], [0, 0, 1, 1], [], []>} : vector<8x128xf32>, vector<128x128xf32>, vector<8x128xf32> -> vector<8x128xf32>
    %154 = vector.broadcast %87 : vector<1x128xf32> to vector<8x128xf32>
    %155 = arith.addf %153, %154 : vector<8x128xf32>
    %cst_59 = arith.constant 0.000000e+00 : f32
    %156 = vector.broadcast %cst_59 : f32 to vector<8x128xf32>
    %157 = arith.maximumf %155, %156 : vector<8x128xf32>
    %cst_60 = arith.constant dense<0.000000e+00> : vector<8x128xf32>
    %158 = tpu.matmul %157, %90, %cst_60 {dimension_numbers = #tpu.dot_dimension_numbers<[1], [0], [0], [1], [0, 0, 1, 1], [], []>} : vector<8x128xf32>, vector<128x128xf32>, vector<8x128xf32> -> vector<8x128xf32>
    %159 = vector.broadcast %88 : vector<1x128xf32> to vector<8x128xf32>
    %160 = arith.addf %158, %159 : vector<8x128xf32>
    %c168 = arith.constant 168 : index
    %c0_61 = arith.constant 0 : index
    %161 = vector.load %arg1[%c168, %c0_61] : memref<250x8xf32, #tpu.memory_space<vmem>>, vector<48x8xf32>
    %c216 = arith.constant 216 : index
    %c0_62 = arith.constant 0 : index
    %162 = vector.load %arg1[%c216, %c0_62] : memref<250x8xf32, #tpu.memory_space<vmem>>, vector<32x8xf32>
    %c136_63 = arith.constant 136 : index
    %c0_64 = arith.constant 0 : index
    %163 = vector.load %arg2[%c136_63, %c0_64] : memref<200x128xf32, #tpu.memory_space<vmem>>, vector<48x128xf32>
    %c184 = arith.constant 184 : index
    %c0_65 = arith.constant 0 : index
    %164 = vector.load %arg2[%c184, %c0_65] : memref<200x128xf32, #tpu.memory_space<vmem>>, vector<8x128xf32>
    %c192 = arith.constant 192 : index
    %c0_66 = arith.constant 0 : index
    %165 = vector.load %arg2[%c192, %c0_66] : memref<200x128xf32, #tpu.memory_space<vmem>>, vector<1x128xf32>
    %c193 = arith.constant 193 : index
    %c0_67 = arith.constant 0 : index
    %166 = vector.load %arg2[%c193, %c0_67] : memref<200x128xf32, #tpu.memory_space<vmem>>, vector<1x128xf32>
    %c512 = arith.constant 512 : index
    %c0_68 = arith.constant 0 : index
    %167 = vector.load %arg3[%c512, %c0_68] : memref<768x128xf32, #tpu.memory_space<vmem>>, vector<128x128xf32>
    %c640 = arith.constant 640 : index
    %c0_69 = arith.constant 0 : index
    %168 = vector.load %arg3[%c640, %c0_69] : memref<768x128xf32, #tpu.memory_space<vmem>>, vector<128x128xf32>
    %cst_70 = arith.constant dense<0.000000e+00> : vector<48x128xf32>
    %169 = tpu.matmul %161, %160, %cst_70 {dimension_numbers = #tpu.dot_dimension_numbers<[1], [0], [0], [1], [0, 0, 1, 1], [], []>} : vector<48x8xf32>, vector<8x128xf32>, vector<48x128xf32> -> vector<48x128xf32>
    %170 = arith.addf %169, %163 : vector<48x128xf32>
    %171 = vector.extract_strided_slice %170 {offsets = [0, 0], sizes = [8, 128], strides = [1, 1]} : vector<48x128xf32> to vector<8x128xf32>
    %172 = vector.extract_strided_slice %170 {offsets = [8, 0], sizes = [8, 128], strides = [1, 1]} : vector<48x128xf32> to vector<8x128xf32>
    %173 = tpu.transpose %171, [1, 0] : vector<8x128xf32> -> vector<128x8xf32>
    %cst_71 = arith.constant dense<0.000000e+00> : vector<32x128xf32>
    %174 = tpu.matmul %162, %172, %cst_71 {dimension_numbers = #tpu.dot_dimension_numbers<[1], [0], [0], [1], [0, 0, 1, 1], [], []>} : vector<32x8xf32>, vector<8x128xf32>, vector<32x128xf32> -> vector<32x128xf32>
    %175 = vector.extract_strided_slice %170 {offsets = [16, 0], sizes = [8, 128], strides = [1, 1]} : vector<48x128xf32> to vector<8x128xf32>
    %cst_72 = arith.constant dense<0.000000e+00> : vector<128x128xf32>
    %176 = tpu.matmul %173, %175, %cst_72 {dimension_numbers = #tpu.dot_dimension_numbers<[1], [0], [0], [1], [0, 0, 1, 1], [], []>} : vector<128x8xf32>, vector<8x128xf32>, vector<128x128xf32> -> vector<128x128xf32>
    %cst_73 = arith.constant dense<0xFF800000> : vector<128xf32>
    %177 = vector.multi_reduction <maximumf>, %176, %cst_73 [0] : vector<128x128xf32> to vector<128xf32>
    %178 = vector.shape_cast %177 : vector<128xf32> to vector<1x128xf32>
    %179 = vector.broadcast %178 : vector<1x128xf32> to vector<128x128xf32>
    %180 = arith.subf %176, %179 : vector<128x128xf32>
    %181 = math.exp %180 : vector<128x128xf32>
    %cst_74 = arith.constant dense<0.000000e+00> : vector<128xf32>
    %182 = vector.multi_reduction <add>, %181, %cst_74 [0] : vector<128x128xf32> to vector<128xf32>
    %183 = vector.shape_cast %182 : vector<128xf32> to vector<1x128xf32>
    %184 = tpu.reciprocal %183 {approx = true} : vector<1x128xf32> -> vector<1x128xf32>
    %185 = vector.broadcast %184 : vector<1x128xf32> to vector<128x128xf32>
    %186 = arith.mulf %181, %185 : vector<128x128xf32>
    %187 = vector.extract_strided_slice %170 {offsets = [24, 0], sizes = [8, 128], strides = [1, 1]} : vector<48x128xf32> to vector<8x128xf32>
    %cst_75 = arith.constant dense<0.000000e+00> : vector<128x128xf32>
    %188 = tpu.matmul %173, %187, %cst_75 {dimension_numbers = #tpu.dot_dimension_numbers<[1], [0], [0], [1], [0, 0, 1, 1], [], []>} : vector<128x8xf32>, vector<8x128xf32>, vector<128x128xf32> -> vector<128x128xf32>
    %cst_76 = arith.constant dense<0xFF800000> : vector<128xf32>
    %189 = vector.multi_reduction <maximumf>, %188, %cst_76 [0] : vector<128x128xf32> to vector<128xf32>
    %190 = vector.shape_cast %189 : vector<128xf32> to vector<1x128xf32>
    %191 = vector.broadcast %190 : vector<1x128xf32> to vector<128x128xf32>
    %192 = arith.subf %188, %191 : vector<128x128xf32>
    %193 = math.exp %192 : vector<128x128xf32>
    %cst_77 = arith.constant dense<0.000000e+00> : vector<128xf32>
    %194 = vector.multi_reduction <add>, %193, %cst_77 [0] : vector<128x128xf32> to vector<128xf32>
    %195 = vector.shape_cast %194 : vector<128xf32> to vector<1x128xf32>
    %196 = tpu.reciprocal %195 {approx = true} : vector<1x128xf32> -> vector<1x128xf32>
    %197 = vector.broadcast %196 : vector<1x128xf32> to vector<128x128xf32>
    %198 = arith.mulf %193, %197 : vector<128x128xf32>
    %199 = vector.extract_strided_slice %170 {offsets = [32, 0], sizes = [8, 128], strides = [1, 1]} : vector<48x128xf32> to vector<8x128xf32>
    %cst_78 = arith.constant dense<0.000000e+00> : vector<128x128xf32>
    %200 = tpu.matmul %173, %199, %cst_78 {dimension_numbers = #tpu.dot_dimension_numbers<[1], [0], [0], [1], [0, 0, 1, 1], [], []>} : vector<128x8xf32>, vector<8x128xf32>, vector<128x128xf32> -> vector<128x128xf32>
    %cst_79 = arith.constant dense<0xFF800000> : vector<128xf32>
    %201 = vector.multi_reduction <maximumf>, %200, %cst_79 [0] : vector<128x128xf32> to vector<128xf32>
    %202 = vector.shape_cast %201 : vector<128xf32> to vector<1x128xf32>
    %203 = vector.broadcast %202 : vector<1x128xf32> to vector<128x128xf32>
    %204 = arith.subf %200, %203 : vector<128x128xf32>
    %205 = math.exp %204 : vector<128x128xf32>
    %cst_80 = arith.constant dense<0.000000e+00> : vector<128xf32>
    %206 = vector.multi_reduction <add>, %205, %cst_80 [0] : vector<128x128xf32> to vector<128xf32>
    %207 = vector.shape_cast %206 : vector<128xf32> to vector<1x128xf32>
    %208 = tpu.reciprocal %207 {approx = true} : vector<1x128xf32> -> vector<1x128xf32>
    %209 = vector.broadcast %208 : vector<1x128xf32> to vector<128x128xf32>
    %210 = arith.mulf %205, %209 : vector<128x128xf32>
    %211 = vector.extract_strided_slice %170 {offsets = [40, 0], sizes = [8, 128], strides = [1, 1]} : vector<48x128xf32> to vector<8x128xf32>
    %cst_81 = arith.constant dense<0.000000e+00> : vector<128x128xf32>
    %212 = tpu.matmul %173, %211, %cst_81 {dimension_numbers = #tpu.dot_dimension_numbers<[1], [0], [0], [1], [0, 0, 1, 1], [], []>} : vector<128x8xf32>, vector<8x128xf32>, vector<128x128xf32> -> vector<128x128xf32>
    %cst_82 = arith.constant dense<0xFF800000> : vector<128xf32>
    %213 = vector.multi_reduction <maximumf>, %212, %cst_82 [0] : vector<128x128xf32> to vector<128xf32>
    %214 = vector.shape_cast %213 : vector<128xf32> to vector<1x128xf32>
    %215 = vector.broadcast %214 : vector<1x128xf32> to vector<128x128xf32>
    %216 = arith.subf %212, %215 : vector<128x128xf32>
    %217 = math.exp %216 : vector<128x128xf32>
    %cst_83 = arith.constant dense<0.000000e+00> : vector<128xf32>
    %218 = vector.multi_reduction <add>, %217, %cst_83 [0] : vector<128x128xf32> to vector<128xf32>
    %219 = vector.shape_cast %218 : vector<128xf32> to vector<1x128xf32>
    %220 = tpu.reciprocal %219 {approx = true} : vector<1x128xf32> -> vector<1x128xf32>
    %221 = vector.broadcast %220 : vector<1x128xf32> to vector<128x128xf32>
    %222 = arith.mulf %217, %221 : vector<128x128xf32>
    %223 = vector.extract_strided_slice %174 {offsets = [0, 0], sizes = [8, 128], strides = [1, 1]} : vector<32x128xf32> to vector<8x128xf32>
    %224 = vector.extract_strided_slice %174 {offsets = [8, 0], sizes = [8, 128], strides = [1, 1]} : vector<32x128xf32> to vector<8x128xf32>
    %225 = vector.extract_strided_slice %174 {offsets = [16, 0], sizes = [8, 128], strides = [1, 1]} : vector<32x128xf32> to vector<8x128xf32>
    %226 = vector.extract_strided_slice %174 {offsets = [24, 0], sizes = [8, 128], strides = [1, 1]} : vector<32x128xf32> to vector<8x128xf32>
    %227 = tpu.concatenate %223, %224, %225, %226 in 1 : vector<8x128xf32>, vector<8x128xf32>, vector<8x128xf32>, vector<8x128xf32> -> vector<8x512xf32>
    %228 = tpu.concatenate %186, %198, %210, %222 in 0 : vector<128x128xf32>, vector<128x128xf32>, vector<128x128xf32>, vector<128x128xf32> -> vector<512x128xf32>
    %cst_84 = arith.constant dense<0.000000e+00> : vector<8x128xf32>
    %229 = tpu.matmul %227, %228, %cst_84 {dimension_numbers = #tpu.dot_dimension_numbers<[1], [0], [0], [1], [0, 0, 1, 1], [], []>} : vector<8x512xf32>, vector<512x128xf32>, vector<8x128xf32> -> vector<8x128xf32>
    %230 = arith.addf %229, %164 : vector<8x128xf32>
    %cst_85 = arith.constant dense<0.000000e+00> : vector<8x128xf32>
    %231 = tpu.matmul %230, %167, %cst_85 {dimension_numbers = #tpu.dot_dimension_numbers<[1], [0], [0], [1], [0, 0, 1, 1], [], []>} : vector<8x128xf32>, vector<128x128xf32>, vector<8x128xf32> -> vector<8x128xf32>
    %232 = vector.broadcast %165 : vector<1x128xf32> to vector<8x128xf32>
    %233 = arith.addf %231, %232 : vector<8x128xf32>
    %cst_86 = arith.constant 0.000000e+00 : f32
    %234 = vector.broadcast %cst_86 : f32 to vector<8x128xf32>
    %235 = arith.maximumf %233, %234 : vector<8x128xf32>
    %c248 = arith.constant 248 : index
    %c0_87 = arith.constant 0 : index
    %236 = vector.load %arg1[%c248, %c0_87] : memref<250x8xf32, #tpu.memory_space<vmem>>, vector<2x8xf32>
    %cst_88 = arith.constant dense<0.000000e+00> : vector<2x128xf32>
    %237 = tpu.matmul %236, %235, %cst_88 {dimension_numbers = #tpu.dot_dimension_numbers<[1], [0], [0], [1], [0, 0, 1, 1], [], []>} : vector<2x8xf32>, vector<8x128xf32>, vector<2x128xf32> -> vector<2x128xf32>
    %cst_89 = arith.constant dense<0.000000e+00> : vector<2x128xf32>
    %238 = tpu.matmul %237, %168, %cst_89 {dimension_numbers = #tpu.dot_dimension_numbers<[1], [0], [0], [1], [0, 0, 1, 1], [], []>} : vector<2x128xf32>, vector<128x128xf32>, vector<2x128xf32> -> vector<2x128xf32>
    %239 = vector.broadcast %166 : vector<1x128xf32> to vector<2x128xf32>
    %240 = arith.addf %238, %239 : vector<2x128xf32>
    %241 = vector.extract_strided_slice %240 {offsets = [0, 0], sizes = [2, 7], strides = [1, 1]} : vector<2x128xf32> to vector<2x7xf32>
    %c0_90 = arith.constant 0 : index
    %c0_91 = arith.constant 0 : index
    %242 = vector.load %arg4[%c0_90, %c0_91] : memref<2x7xf32, #tpu.memory_space<vmem>>, vector<2x7xf32>
    tpu.vector_store %arg4[%c0_90, %c0_91], %241 {strides = array<i32>} : memref<2x7xf32, #tpu.memory_space<vmem>>, vector<2x7xf32>,
    return
  }
}

</mosaic_0001>

<bundles_post_ra>
// kernel: tile.136
= control target key start
LH: loop header
LB: loop body
LE: loop exit
PB: predicated region body
PF: predicated region fallthrough
CT: control target
= control target key end

     0   :  { %s22_s0 = inlined_call_operand.vmem [shape: f32[4], index: 0, kind: input, shape index: {}]   ;;  %s23_s1 = inlined_call_operand.vmem [shape: f32[2,4], index: 1, kind: output, shape index: {}]  }
   0x1   :  { %v4_v0 = vld [vmem:[%s22_s0] ss:$0 sm:$0xff] }
   0x2   :  { %5 = vst [vmem:[%s23_s1] sm:$0x3] %v4_v0 }

// kernel: tile.137
= control target key start
LH: loop header
LB: loop body
LE: loop exit
PB: predicated region body
PF: predicated region fallthrough
CT: control target
= control target key end

     0   :  { %vm7_vm0 = vcmask 31744   ;;  %vm13_vm1 = vcmask 64544   ;;  %s39_s0 = inlined_call_operand.vmem [shape: f32[2,4], index: 0, kind: input, shape index: {}]   ;;  %s40_s1 = inlined_call_operand.vmem [shape: f32[8], index: 1, kind: output, shape index: {}]  }
   0x1   :  { %v4_v0 = vld [vmem:[%s39_s0] sm:$0x3]  ;;  %s22_s0 = smov 4  }
   0x2   :  { %5 = vst [vmem:[#allocation1] sm:$0x3] %v4_v0 }
   0x9   :  { %v10_v1 = vld [vmem:[#allocation1 + $0x1] sm:$0x1]   ;;  %v6_v2 = vld [vmem:[#allocation1] sm:$0x1]  }
   0xa   :  { %11 = vrot.lane.b32.xlu0 %v10_v1, %s22_s0  ;;  %8 = vst.msk [vmem:[#allocation0] sm:$0x1] %vm7_vm0, %v6_v2  }
  0x7c   :  { %v12_v3 = vpop.permute.xlu0 %11  }
  0x7d   :  { %14 = vst.msk [vmem:[#allocation0] sm:$0x1] %vm13_vm1, %v12_v3  }
  0x84   :  { %v18_v4 = vld [vmem:[#allocation0] sm:$0x1] }
  0x85   :  { %20 = vst [vmem:[%s40_s1] sm:$0x1] %v18_v4 }

// kernel: attention_forward.1
= control target key start
LH: loop header
LB: loop body
LE: loop exit
PB: predicated region body
PF: predicated region fallthrough
CT: control target
= control target key end

     0   :  { %vm21_vm0 = vcmask 64512   ;;  %v10291_v2 = vmov 0.0   ;;  %vm7247_vm1 = vmmov 0   ;;  %s10286_s0 = inlined_call_operand.vmem [shape: f32[8,128], index: 0, kind: input, shape index: {}]   ;;  %s10287_s1 = inlined_call_operand.vmem [shape: f32[250,8], index: 1, kind: input, shape index: {}]   ;;  %s10288_s2 = inlined_call_operand.vmem [shape: f32[200,128], index: 2, kind: input, shape index: {}]   ;;  %s10289_s3 = inlined_call_operand.vmem [shape: f32[768,128], index: 3, kind: input, shape index: {}]   ;;  %s10290_s4 = inlined_call_operand.hbm [shape: f32[2,7], index: 4, kind: output, shape index: {}]  }
   0x1   :  { %v19_v0 = vld [vmem:[%s10286_s0] sm:$0xff]  ;;  %5885 = vmatprep.subr.mxu0 %v10291_v2  ;;  %5887 = vmatprep.mubr.msk.f32.mxu0 %vm7247_vm1, %v10291_v2 }
   0x2   :  { %v18_v1 = vld [vmem:[%s10287_s1] sm:$0xff] }
   0x3   :  { %9 = vsyncpa [#allocation3], 0  ;;  %5886 = vmatpush3.msra.mxu0 %v19_v0  ;;  %v95_v3 = vld [vmem:[%s10287_s1 + $0x8] sm:$0xff]  ;;  %v20_v4 = vld [vmem:[%s10288_s2] sm:$0xff]  ;;  %s7249_s30 = smov [#allocation2]   ;;  %vm5083_vm2 = vcmask 50176  }
   0x4   :  { %5888 = vmatmul.mubr.msk.f32.vlgmr.msra.gmra.mrb[0].mxu0 %vm21_vm0, %v18_v1  ;;  %5892 = vmatprep.mubr.msk.f32.mxu1 %vm21_vm0, %v95_v3  ;;  %v96_v8 = vld [vmem:[%s10287_s1 + $0x10] sm:$0xff]  ;;  %v97_v9 = vld [vmem:[%s10287_s1 + $0x18] sm:$0xff]  ;;  %v98_v10 = vld [vmem:[%s10287_s1 + $0x20] sm:$0xff]  ;;  %s5091_s5 = sshll.u32 %s7249_s30, 4  ;;  %s5092_s5 = int_to_ptr.vmem [resolvable:$true] %s5091_s5 }
   0x5   :  { %v99_v11 = vld [vmem:[%s10287_s1 + $0x28] sm:$0xff]  ;;  %v100_v12 = vld [vmem:[%s10287_s1 + $0x30] sm:$0xff]  ;;  %v101_v13 = vld [vmem:[%s10287_s1 + $0x38] sm:$0xff]  ;;  %p7227_p1 = scmp.lt.s32.totalorder %s5092_s5, %s5092_s5 }
   0x6   :  { %5903 = vmatprep.mubr.msk.f32.mxu0 %vm21_vm0, %v101_v13  ;;  %v106_v14 = vld [vmem:[%s10288_s2 + $0x10] sm:$0xff]  ;;  %v105_v15 = vld [vmem:[%s10288_s2 + $0x8] sm:$0xff]  ;;  %v102_v20 = vld [vmem:[%s10287_s1 + $0x40] sm:$0xff] }
   0x7   :  { %v108_v21 = vld [vmem:[%s10288_s2 + $0x20] sm:$0xff]  ;;  %v103_v22 = vld [vmem:[%s10287_s1 + $0x48] sm:$0xff]  ;;  %v107_v23 = vld [vmem:[%s10288_s2 + $0x18] sm:$0xff] }
   0x8   :  { %v104_v28 = vld [vmem:[%s10287_s1 + $0x50] sm:$0xff]  ;;  %v109_v31 = vld [vmem:[%s10288_s2 + $0x28] sm:$0xff] }
   0x9   :  { %v110_v29 = vld [vmem:[%s10288_s2 + $0x30] sm:$0xff] }
  0xd7   :  { %v91_v5 = vpop.f32.mrb[0].mxu0 }
  0xd8   :  { %v92_v6 = vadd.f32 %v91_v5, %v20_v4  ;;  %v5889_v7 = vpop.f32.mrb[1].mxu0 }
  0xda   :  { %5890 = vmatprep.subr.mxu1 %v92_v6 }
  0xdb   :  { %5891 = vmatpush3.msra.mxu1 %v92_v6 }
  0xdc   :  { %5893 = vmatmul.mubr.msk.f32.vlgmr.msra.gmra.mrb[0].mxu1 %vm21_vm0, %v96_v8 }
  0xdd   :  { %5895 = vmatprep.mubr.msk.f32.mxu1 %vm21_vm0, %v97_v9 }
  0xe0   :  { %5896 = vmatmul.mubr.msk.f32.gmra.mrb[2].mxu1 %vm21_vm0, %v98_v10 }
  0xe1   :  { %5898 = vmatprep.mubr.msk.f32.mxu1 %vm21_vm0, %v99_v11 }
  0xe4   :  { %5899 = vmatmul.mubr.msk.f32.gmra.mrb[4].mxu1 %vm21_vm0, %v100_v12 }
 0x1af   :  { %v5894_v16 = vpop.f32.mrb[0].mxu1 }
 0x1b0   :  { %v236_v17 = vadd.f32 %v5894_v16, %v106_v14  ;;  %v230_v18 = vpop.f32.mrb[1].mxu1 }
 0x1b1   :  { %v231_v19 = vadd.f32 %v230_v18, %v105_v15 }
 0x1b2   :  { %5901 = vmatprep.subr.mxu0 %v236_v17 }
 0x1b3   :  { %5902 = vmatpush3.msra.mxu0 %v236_v17  ;;  %259 = vxpose.xlu0.b32.start.end [1/1] (short) %v231_v19, 128  ;;  %v5897_v24 = vpop.f32.mrb[2].mxu1 }
 0x1b4   :  { %5904 = vmatmul.mubr.msk.f32.vlgmr.msra.gmra.mrb[2].mxu0 %vm21_vm0, %v102_v20  ;;  %v246_v25 = vadd.f32 %v5897_v24, %v108_v21  ;;  %v240_v26 = vpop.f32.mrb[3].mxu1 }
 0x1b5   :  { %5906 = vmatprep.mubr.msk.f32.mxu0 %vm21_vm0, %v103_v22  ;;  %v241_v27 = vadd.f32 %v240_v26, %v107_v23 }
 0x1b6   :  { %5935 = vmatprep.subr.mxu1 %v246_v25 }
 0x1b7   :  { %5909 = vmatprep.subr.mxu0 %v241_v27  ;;  %5936 = vmatpush3.msra.mxu1 %v246_v25  ;;  %v5900_v30 = vpop.f32.mrb[4].mxu1 }
 0x1b8   :  { %5907 = vmatmul.mubr.msk.f32.gmra.mrb[4].mxu0 %vm21_vm0, %v104_v28  ;;  %v256_v32 = vadd.f32 %v5900_v30, %v110_v29  ;;  %v250_v33 = vpop.f32.mrb[5].mxu1 }
 0x1b9   :  { %5910 = vmatpush3.msra.mxu0 %v241_v27  ;;  %v251_v34 = vadd.f32 %v250_v33, %v109_v31 }
 0x1ba   :  { %5987 = vmatprep.subr.mxu1 %v256_v32 }
 0x1bb   :  { %5961 = vmatprep.subr.mxu0 %v251_v34 }
 0x233   :  { %v275_v35 = vpop.trf.xlu0 }
 0x234   :  { %5911 = vmatprep.mubr.msk.f32.mxu0 %vm21_vm0, %v275_v35  ;;  %5937 = vmatprep.mubr.msk.f32.mxu1 %vm21_vm0, %v275_v35 }
 0x237   :  { %v276_v36 = vpop.trf.xlu0 }
 0x238   :  { %5912 = vmatmul.mubr.msk.f32.vlgmr.msra.gmra.mrb[6].mxu0 %vm21_vm0, %v276_v36  ;;  %5938 = vmatmul.mubr.msk.f32.vlgmr.msra.gmra.mrb[6].mxu1 %vm21_vm0, %v276_v36 }
 0x239   :  { %5962 = vmatpush3.msra.mxu0 %v251_v34  ;;  %5988 = vmatpush3.msra.mxu1 %v256_v32 }
 0x23b   :  { %v277_v37 = vpop.trf.xlu0 }
 0x23c   :  { %5914 = vmatprep.mubr.msk.f32.mxu0 %vm21_vm0, %v277_v37  ;;  %5940 = vmatprep.mubr.msk.f32.mxu1 %vm21_vm0, %v277_v37 }
 0x23f   :  { %v278_v38 = vpop.trf.xlu0 }
 0x240   :  { %5915 = vmatmul.mubr.msk.f32.gmra.mrb[8].mxu0 %vm21_vm0, %v278_v38  ;;  %5941 = vmatmul.mubr.msk.f32.gmra.mrb[8].mxu1 %vm21_vm0, %v278_v38 }
 0x243   :  { %v279_v39 = vpop.trf.xlu0 }
 0x244   :  { %5917 = vmatprep.mubr.msk.f32.mxu0 %vm21_vm0, %v279_v39  ;;  %5943 = vmatprep.mubr.msk.f32.mxu1 %vm21_vm0, %v279_v39 }
 0x247   :  { %v280_v40 = vpop.trf.xlu0 }
 0x248   :  { %5918 = vmatmul.mubr.msk.f32.gmra.mrb[10].mxu0 %vm21_vm0, %v280_v40  ;;  %5944 = vmatmul.mubr.msk.f32.gmra.mrb[10].mxu1 %vm21_vm0, %v280_v40 }
 0x24b   :  { %v281_v41 = vpop.trf.xlu0 }
 0x24c   :  { %5920 = vmatprep.mubr.msk.f32.mxu0 %vm21_vm0, %v281_v41  ;;  %5946 = vmatprep.mubr.msk.f32.mxu1 %vm21_vm0, %v281_v41 }
 0x24f   :  { %v282_v42 = vpop.trf.xlu0 }
 0x250   :  { %5921 = vmatmul.mubr.msk.f32.gmra.mrb[12].mxu0 %vm21_vm0, %v282_v42  ;;  %5947 = vmatmul.mubr.msk.f32.gmra.mrb[12].mxu1 %vm21_vm0, %v282_v42 }
 0x253   :  { %v283_v43 = vpop.trf.xlu0 }
 0x254   :  { %5923 = vmatprep.mubr.msk.f32.mxu0 %vm21_vm0, %v283_v43  ;;  %5949 = vmatprep.mubr.msk.f32.mxu1 %vm21_vm0, %v283_v43 }
 0x257   :  { %v284_v44 = vpop.trf.xlu0 }
 0x258   :  { %5924 = vmatmul.mubr.msk.f32.gmra.mrb[14].mxu0 %vm21_vm0, %v284_v44  ;;  %5950 = vmatmul.mubr.msk.f32.gmra.mrb[14].mxu1 %vm21_vm0, %v284_v44 }
 0x25b   :  { %v285_v45 = vpop.trf.xlu0 }
 0x25c   :  { %5926 = vmatprep.mubr.msk.f32.mxu0 %vm21_vm0, %v285_v45  ;;  %5952 = vmatprep.mubr.msk.f32.mxu1 %vm21_vm0, %v285_v45 }
 0x25f   :  { %v286_v46 = vpop.trf.xlu0 }
 0x260   :  { %5927 = vmatmul.mubr.msk.f32.gmra.mrb[16].mxu0 %vm21_vm0, %v286_v46  ;;  %5953 = vmatmul.mubr.msk.f32.gmra.mrb[16].mxu1 %vm21_vm0, %v286_v46 }
 0x263   :  { %v287_v47 = vpop.trf.xlu0 }
 0x264   :  { %5929 = vmatprep.mubr.msk.f32.mxu0 %vm21_vm0, %v287_v47  ;;  %5955 = vmatprep.mubr.msk.f32.mxu1 %vm21_vm0, %v287_v47 }
 0x267   :  { %v288_v48 = vpop.trf.xlu0 }
 0x268   :  { %5930 = vmatmul.mubr.msk.f32.gmra.mrb[18].mxu0 %vm21_vm0, %v288_v48  ;;  %5956 = vmatmul.mubr.msk.f32.gmra.mrb[18].mxu1 %vm21_vm0, %v288_v48 }
 0x26b   :  { %v289_v49 = vpop.trf.xlu0 }
 0x26c   :  { %5932 = vmatprep.mubr.msk.f32.mxu0 %vm21_vm0, %v289_v49  ;;  %5958 = vmatprep.mubr.msk.f32.mxu1 %vm21_vm0, %v289_v49 }
 0x26f   :  { %v290_v50 = vpop.trf.xlu0 }
 0x270   :  { %5933 = vmatmul.mubr.msk.f32.gmra.mrb[20].mxu0 %vm21_vm0, %v290_v50  ;;  %5959 = vmatmul.mubr.msk.f32.gmra.mrb[20].mxu1 %vm21_vm0, %v290_v50 }
 0x271   :  { %5963 = vmatprep.mubr.msk.f32.mxu0 %vm21_vm0, %v275_v35  ;;  %5989 = vmatprep.mubr.msk.f32.mxu1 %vm21_vm0, %v275_v35 }
 0x274   :  { %5964 = vmatmul.mubr.msk.f32.vlgmr.msra.gmra.mrb[22].mxu0 %vm21_vm0, %v276_v36  ;;  %5990 = vmatmul.mubr.msk.f32.vlgmr.msra.gmra.mrb[22].mxu1 %vm21_vm0, %v276_v36 }
 0x275   :  { %5966 = vmatprep.mubr.msk.f32.mxu0 %vm21_vm0, %v277_v37  ;;  %5992 = vmatprep.mubr.msk.f32.mxu1 %vm21_vm0, %v277_v37 }
 0x278   :  { %5967 = vmatmul.mubr.msk.f32.gmra.mrb[24].mxu0 %vm21_vm0, %v278_v38  ;;  %5993 = vmatmul.mubr.msk.f32.gmra.mrb[24].mxu1 %vm21_vm0, %v278_v38 }
 0x279   :  { %5969 = vmatprep.mubr.msk.f32.mxu0 %vm21_vm0, %v279_v39  ;;  %5995 = vmatprep.mubr.msk.f32.mxu1 %vm21_vm0, %v279_v39 }
 0x27c   :  { %5970 = vmatmul.mubr.msk.f32.gmra.mrb[26].mxu0 %vm21_vm0, %v280_v40  ;;  %5996 = vmatmul.mubr.msk.f32.gmra.mrb[26].mxu1 %vm21_vm0, %v280_v40 }
 0x27d   :  { %5972 = vmatprep.mubr.msk.f32.mxu0 %vm21_vm0, %v281_v41  ;;  %5998 = vmatprep.mubr.msk.f32.mxu1 %vm21_vm0, %v281_v41 }
 0x280   :  { %5973 = vmatmul.mubr.msk.f32.gmra.mrb[28].mxu0 %vm21_vm0, %v282_v42  ;;  %5999 = vmatmul.mubr.msk.f32.gmra.mrb[28].mxu1 %vm21_vm0, %v282_v42 }
 0x281   :  { %5975 = vmatprep.mubr.msk.f32.mxu0 %vm21_vm0, %v283_v43  ;;  %6001 = vmatprep.mubr.msk.f32.mxu1 %vm21_vm0, %v283_v43 }
 0x284   :  { %5976 = vmatmul.mubr.msk.f32.gmra.mrb[30].mxu0 %vm21_vm0, %v284_v44  ;;  %6002 = vmatmul.mubr.msk.f32.gmra.mrb[30].mxu1 %vm21_vm0, %v284_v44 }
 0x285   :  { %5978 = vmatprep.mubr.msk.f32.mxu0 %vm21_vm0, %v285_v45  ;;  %6004 = vmatprep.mubr.msk.f32.mxu1 %vm21_vm0, %v285_v45 }
 0x287   :  { %v5905_v51 = vpop.f32.mrb[2].mxu0 }
 0x288   :  { %5979 = vmatmul.mubr.msk.f32.gmra.mrb[32].mxu0 %vm21_vm0, %v286_v46  ;;  %6005 = vmatmul.mubr.msk.f32.gmra.mrb[32].mxu1 %vm21_vm0, %v286_v46  ;;  %v7402_v52 = vpop.f32.mrb[3].mxu0 }
 0x289   :  { %10388 = vst [vmem:[#allocation5_spill] sm:$0xff] %v7402_v52  ;;  %5981 = vmatprep.mubr.msk.f32.mxu0 %vm21_vm0, %v287_v47  ;;  %6007 = vmatprep.mubr.msk.f32.mxu1 %vm21_vm0, %v287_v47 }
 0x28b   :  { %v5908_v53 = vpop.f32.mrb[4].mxu0 }
 0x28c   :  { %5982 = vmatmul.mubr.msk.f32.gmra.mrb[34].mxu0 %vm21_vm0, %v288_v48  ;;  %6008 = vmatmul.mubr.msk.f32.gmra.mrb[34].mxu1 %vm21_vm0, %v288_v48  ;;  %v7408_v54 = vpop.f32.mrb[5].mxu0 }
 0x28d   :  { %10389 = vst [vmem:[#allocation6_spill] sm:$0xff] %v7408_v54  ;;  %5984 = vmatprep.mubr.msk.f32.mxu0 %vm21_vm0, %v289_v49  ;;  %6010 = vmatprep.mubr.msk.f32.mxu1 %vm21_vm0, %v289_v49 }
 0x290   :  { %5985 = vmatmul.mubr.msk.f32.gmra.mrb[36].mxu0 %vm21_vm0, %v290_v50  ;;  %6011 = vmatmul.mubr.msk.f32.gmra.mrb[36].mxu1 %vm21_vm0, %v290_v50 }
 0x291   :  { %1508 = vmatprep.mubr.f32.mxu0 %v5905_v51  ;;  %1578 = vmatprep.mubr.f32.mxu1 %v5908_v53 }
 0x30b   :  { %v7414_v55 = vpop.f32.mrb[6].mxu0  ;;  %v7416_v56 = vpop.f32.mrb[6].mxu1 }
 0x30c   :  { %v7418_v57 = vpop.f32.mrb[7].mxu0  ;;  %v7420_v58 = vpop.f32.mrb[7].mxu1 }
 0x313   :  { %v7422_v59 = vpop.f32.mrb[8].mxu0  ;;  %v7424_v60 = vpop.f32.mrb[8].mxu1 }
 0x314   :  { %v7426_v61 = vpop.f32.mrb[9].mxu0  ;;  %v7428_v62 = vpop.f32.mrb[9].mxu1 }
 0x31b   :  { %v7430_v63 = vpop.f32.mrb[10].mxu0  ;;  %v7432_v0 = vpop.f32.mrb[10].mxu1 }
 0x31c   :  { %v582_v1 = vmax.f32 %v7414_v55, %v7430_v63  ;;  %v834_v3 = vmax.f32 %v7416_v56, %v7432_v0  ;;  %v7438_v4 = vpop.f32.mrb[11].mxu0  ;;  %v7440_v5 = vpop.f32.mrb[11].mxu1 }
 0x31d   :  { %v581_v6 = vmax.f32 %v7418_v57, %v7438_v4  ;;  %v833_v7 = vmax.f32 %v7420_v58, %v7440_v5 }
 0x323   :  { %v7446_v8 = vpop.f32.mrb[12].mxu0  ;;  %v7448_v9 = vpop.f32.mrb[12].mxu1 }
 0x324   :  { %v584_v10 = vmax.f32 %v7422_v59, %v7446_v8  ;;  %v836_v11 = vmax.f32 %v7424_v60, %v7448_v9  ;;  %v7454_v12 = vpop.f32.mrb[13].mxu0  ;;  %v7456_v13 = vpop.f32.mrb[13].mxu1 }
 0x325   :  { %v583_v14 = vmax.f32 %v7426_v61, %v7454_v12  ;;  %v835_v15 = vmax.f32 %v7428_v62, %v7456_v13 }
 0x32b   :  { %v7462_v16 = vpop.f32.mrb[14].mxu0  ;;  %v7464_v17 = vpop.f32.mrb[14].mxu1 }
 0x32c   :  { %v586_v18 = vmax.f32 %v582_v1, %v7462_v16  ;;  %v838_v19 = vmax.f32 %v834_v3, %v7464_v17  ;;  %v7468_v20 = vpop.f32.mrb[15].mxu0  ;;  %v7470_v21 = vpop.f32.mrb[15].mxu1 }
 0x32d   :  { %v585_v22 = vmax.f32 %v581_v6, %v7468_v20  ;;  %v837_v23 = vmax.f32 %v833_v7, %v7470_v21 }
 0x333   :  { %v7474_v24 = vpop.f32.mrb[16].mxu0  ;;  %v7476_v25 = vpop.f32.mrb[16].mxu1 }
 0x334   :  { %10390 = vst [vmem:[#allocation7_spill] sm:$0xff] %v7476_v25  ;;  %v588_v26 = vmax.f32 %v584_v10, %v7474_v24  ;;  %v840_v27 = vmax.f32 %v836_v11, %v7476_v25  ;;  %v7480_v28 = vpop.f32.mrb[17].mxu0  ;;  %v7482_v29 = vpop.f32.mrb[17].mxu1 }
 0x335   :  { %10391 = vst [vmem:[#allocation8_spill] sm:$0xff] %v7482_v29  ;;  %v587_v30 = vmax.f32 %v583_v14, %v7480_v28  ;;  %v839_v31 = vmax.f32 %v835_v15, %v7482_v29 }
 0x33b   :  { %v7486_v32 = vpop.f32.mrb[18].mxu0  ;;  %v7488_v33 = vpop.f32.mrb[18].mxu1 }
 0x33c   :  { %10392 = vst [vmem:[#allocation9_spill] sm:$0xff] %v7488_v33  ;;  %v590_v34 = vmax.f32 %v586_v18, %v7486_v32  ;;  %v842_v35 = vmax.f32 %v838_v19, %v7488_v33  ;;  %v7492_v36 = vpop.f32.mrb[19].mxu0  ;;  %v7494_v37 = vpop.f32.mrb[19].mxu1 }
 0x33d   :  { %10393 = vst [vmem:[#allocation10_spill] sm:$0xff] %v7494_v37  ;;  %v589_v38 = vmax.f32 %v585_v22, %v7492_v36  ;;  %v841_v39 = vmax.f32 %v837_v23, %v7494_v37 }
 0x33f   :  { %v593_v40 = vmax.f32 %v589_v38, %v590_v34  ;;  %v845_v41 = vmax.f32 %v841_v39, %v842_v35 }
 0x343   :  { %v7498_v42 = vpop.f32.mrb[20].mxu0  ;;  %v7500_v43 = vpop.f32.mrb[20].mxu1 }
 0x344   :  { %10394 = vst [vmem:[#allocation11_spill] sm:$0xff] %v7500_v43  ;;  %v592_v44 = vmax.f32 %v588_v26, %v7498_v42  ;;  %v844_v45 = vmax.f32 %v840_v27, %v7500_v43  ;;  %v7504_v46 = vpop.f32.mrb[21].mxu0  ;;  %v7506_v47 = vpop.f32.mrb[21].mxu1 }
 0x345   :  { %10395 = vst [vmem:[#allocation12_spill] sm:$0xff] %v7506_v47  ;;  %v591_v48 = vmax.f32 %v587_v30, %v7504_v46  ;;  %v843_v49 = vmax.f32 %v839_v31, %v7506_v47 }
 0x347   :  { %v594_v50 = vmax.f32 %v591_v48, %v592_v44  ;;  %v846_v51 = vmax.f32 %v843_v49, %v844_v45  ;;  %v7510_v53 = vpop.f32.mrb[22].mxu0  ;;  %v7512_v1 = vpop.f32.mrb[22].mxu1 }
 0x348   :  { %v7514_v3 = vpop.f32.mrb[23].mxu0  ;;  %v7516_v6 = vpop.f32.mrb[23].mxu1 }
 0x349   :  { %v595_v7 = vmax.f32 %v593_v40, %v594_v50  ;;  %v847_v10 = vmax.f32 %v845_v41, %v846_v51 }
 0x34b   :  { %v596_v11 = vrot.slane %v595_v7, 4  ;;  %v848_v14 = vrot.slane %v847_v10, 4  ;;  %v7518_v15 = vpop.f32.mrb[24].mxu0  ;;  %v7520_v18 = vpop.f32.mrb[24].mxu1 }
 0x34c   :  { %v7522_v19 = vpop.f32.mrb[25].mxu0  ;;  %v7524_v22 = vpop.f32.mrb[25].mxu1 }
 0x34d   :  { %v597_v23 = vmax.f32 %v595_v7, %v596_v11  ;;  %v849_v26 = vmax.f32 %v847_v10, %v848_v14 }
 0x34f   :  { %v598_v27 = vrot.slane %v597_v23, 2  ;;  %v850_v30 = vrot.slane %v849_v26, 2  ;;  %v7526_v31 = vpop.f32.mrb[26].mxu0  ;;  %v7528_v34 = vpop.f32.mrb[26].mxu1 }
 0x350   :  { %v7534_v39 = vpop.f32.mrb[27].mxu0  ;;  %v7536_v40 = vpop.f32.mrb[27].mxu1 }
 0x351   :  { %v599_v41 = vmax.f32 %v597_v23, %v598_v27  ;;  %v851_v44 = vmax.f32 %v849_v26, %v850_v30 }
 0x353   :  { %v600_v49 = vrot.slane %v599_v41, 1  ;;  %v852_v50 = vrot.slane %v851_v44, 1  ;;  %v7542_v51 = vpop.f32.mrb[28].mxu0  ;;  %v7544_v7 = vpop.f32.mrb[28].mxu1 }
 0x354   :  { %v7550_v14 = vpop.f32.mrb[29].mxu0  ;;  %v7552_v23 = vpop.f32.mrb[29].mxu1 }
 0x355   :  { %v7554_v26 = vmax.f32 %v599_v41, %v600_v49  ;;  %v7560_v2 = vmax.f32 %v851_v44, %v852_v50 }
 0x357   :  { %v602_v10 = vsub.f32 %v7418_v57, %v7554_v26  ;;  %v603_v11 = vsub.f32 %v7414_v55, %v7554_v26  ;;  %v604_v48 = vsub.f32 %v7426_v61, %v7554_v26  ;;  %v605_v41 = vsub.f32 %v7422_v59, %v7554_v26  ;;  %v7570_v49 = vpop.f32.mrb[30].mxu0  ;;  %v7572_v27 = vpop.f32.mrb[30].mxu1 }
 0x358   :  { %10396 = vst [vmem:[#allocation13_spill] sm:$0xff] %v7572_v27  ;;  %v606_v44 = vsub.f32 %v7438_v4, %v7554_v26  ;;  %v607_v50 = vsub.f32 %v7430_v63, %v7554_v26  ;;  %v608_v57 = vsub.f32 %v7454_v12, %v7554_v26  ;;  %v609_v55 = vsub.f32 %v7446_v8, %v7554_v26  ;;  %v7582_v61 = vpop.f32.mrb[31].mxu0  ;;  %v7584_v30 = vpop.f32.mrb[31].mxu1 }
 0x359   :  { %10397 = vst [vmem:[#allocation14_spill] sm:$0xff] %v7584_v30  ;;  %v610_v59 = vsub.f32 %v7468_v20, %v7554_v26  ;;  %v611_v45 = vsub.f32 %v7462_v16, %v7554_v26  ;;  %v612_v4 = vsub.f32 %v7480_v28, %v7554_v26  ;;  %v613_v63 = vsub.f32 %v7474_v24, %v7554_v26 }
 0x35a   :  { %v614_v12 = vsub.f32 %v7492_v36, %v7554_v26  ;;  %v615_v8 = vsub.f32 %v7486_v32, %v7554_v26  ;;  %v618_v35 = vmul.f32 1.442695, %v602_v10  ;;  %v620_v16 = vmul.f32 1.442695, %v603_v11 }
 0x35b   :  { %v854_v28 = vsub.f32 %v7420_v58, %v7560_v2  ;;  %v622_v54 = vmul.f32 1.442695, %v604_v48  ;;  %v855_v24 = vsub.f32 %v7416_v56, %v7560_v2  ;;  %v624_v36 = vmul.f32 1.442695, %v605_v41  ;;  %v7610_v11 = vpop.f32.mrb[32].mxu0  ;;  %v7612_v20 = vpop.f32.mrb[32].mxu1 }
 0x35c   :  { %6814 = vpow2.f32 %v618_v35  ;;  %v626_v52 = vmul.f32 1.442695, %v606_v44  ;;  %v628_v32 = vmul.f32 1.442695, %v607_v50  ;;  %v856_v38 = vsub.f32 %v7428_v62, %v7560_v2  ;;  %10398 = vst [vmem:[#allocation15_spill] sm:$0xff] %v7612_v20  ;;  %v7620_v48 = vpop.f32.mrb[33].mxu0 }
 0x35d   :  { %6816 = vpow2.f32 %v620_v16  ;;  %v857_v10 = vsub.f32 %v7424_v60, %v7560_v2  ;;  %v630_v58 = vmul.f32 1.442695, %v608_v57  ;;  %v858_v56 = vsub.f32 %v7440_v5, %v7560_v2  ;;  %v7622_v62 = vpop.f32.mrb[33].mxu1 }
 0x35e   :  { %6818 = vpow2.f32 %v622_v54  ;;  %10399 = vst [vmem:[#allocation16_spill] sm:$0xff] %v7622_v62  ;;  %v632_v57 = vmul.f32 1.442695, %v609_v55  ;;  %v634_v25 = vmul.f32 1.442695, %v610_v59 }
 0x35f   :  { %6820 = vpow2.f32 %v624_v36  ;;  %v7630_v44 = vpop.f32.mrb[34].mxu0  ;;  %v7632_v50 = vpop.f32.mrb[34].mxu1  ;;  %v636_v60 = vmul.f32 1.442695, %v611_v45  ;;  %v638_v5 = vmul.f32 1.442695, %v612_v4  ;;  %v10403_v4 = vmax.f32 %v7510_v53, %v7526_v31 }
 0x360   :  { %v7640_v54 = vpop.f32.mrb[35].mxu0  ;;  %v7642_v41 = vpop.f32.mrb[35].mxu1  ;;  %6822 = vpow2.f32 %v626_v52  ;;  %v640_v33 = vmul.f32 1.442695, %v613_v63  ;;  %v642_v29 = vmul.f32 1.442695, %v614_v12 }
 0x361   :  { %6824 = vpow2.f32 %v628_v32  ;;  %v644_v55 = vmul.f32 1.442695, %v615_v8  ;;  %v870_v43 = vmul.f32 1.442695, %v854_v28  ;;  %v872_v32 = vmul.f32 1.442695, %v855_v24 }
 0x362   :  { %6826 = vpow2.f32 %v630_v58  ;;  %v874_v58 = vmul.f32 1.442695, %v856_v38  ;;  %v1090_v63 = vmax.f32 %v10403_v4, %v7570_v49  ;;  %v876_v12 = vmul.f32 1.442695, %v857_v10 }
 0x363   :  { %v7650_v35 = vpop.f32.mrb[36].mxu0  ;;  %v7652_v36 = vpop.f32.mrb[36].mxu1  ;;  %6828 = vpow2.f32 %v632_v57  ;;  %v10404_v8 = vmax.f32 %v7512_v1, %v7528_v34  ;;  %v10405_v57 = vmax.f32 %v7514_v3, %v7534_v39  ;;  %v878_v38 = vmul.f32 1.442695, %v858_v56 }
 0x364   :  { %6830 = vpow2.f32 %v634_v25  ;;  %v7660_v47 = vpop.f32.mrb[37].mxu0  ;;  %v7662_v59 = vpop.f32.mrb[37].mxu1  ;;  %v10407_v4 = vmax.f32 %v7516_v6, %v7536_v40  ;;  %v10408_v10 = vmax.f32 %v7518_v15, %v7542_v51  ;;  %v10410_v56 = vmax.f32 %v7522_v19, %v7550_v14 }
 0x365   :  { %6832 = vpow2.f32 %v636_v60  ;;  %v1342_v28 = vmax.f32 %v10404_v8, %v7572_v27  ;;  %v1089_v60 = vmax.f32 %v10405_v57, %v7582_v61  ;;  %v10409_v8 = vmax.f32 %v7520_v18, %v7544_v7 }
 0x366   :  { %v7654_v37 = vpop.eup %6814  ;;  %6834 = vpow2.f32 %v870_v43 }
 0x367   :  { %10400 = vst [vmem:[#allocation17_spill] sm:$0xff] %v7654_v37  ;;  %v7656_v52 = vpop.eup %6816  ;;  %6836 = vpow2.f32 %v872_v32 }
 0x368   :  { %10401 = vst [vmem:[#allocation18_spill] sm:$0xff] %v7656_v52  ;;  %v650_v16 = vadd.f32 %v7656_v52, %v7654_v37  ;;  %v7664_v45 = vpop.eup %6818  ;;  %v1341_v52 = vmax.f32 %v10407_v4, %v7584_v30  ;;  %v1091_v37 = vmax.f32 %v10410_v56, %v7620_v48  ;;  %v10411_v4 = vmax.f32 %v7524_v22, %v7552_v23 }
 0x369   :  { %10402 = vst [vmem:[#allocation19_spill] sm:$0xff] %v7664_v45  ;;  %v7679_v24 = vpop.eup %6820  ;;  %6838 = vpow2.f32 %v638_v5 }
 0x36a   :  { %v651_v25 = vadd.f32 %v7664_v45, %v650_v16  ;;  %10406 = vst [vmem:[#allocation20_spill] sm:$0xff] %v7679_v24  ;;  %v1092_v16 = vmax.f32 %v10408_v10, %v7610_v11  ;;  %v1344_v45 = vmax.f32 %v10409_v8, %v7612_v20  ;;  %v1343_v27 = vmax.f32 %v10411_v4, %v7622_v62  ;;  %v7702_v30 = vpop.eup %6822 }
 0x36b   :  { %v1094_v10 = vmax.f32 %v1090_v63, %v7630_v44  ;;  %v1346_v8 = vmax.f32 %v1342_v28, %v7632_v50  ;;  %v7710_v20 = vpop.eup %6824  ;;  %6840 = vpow2.f32 %v874_v58  ;;  %v1095_v32 = vmax.f32 %v1091_v37, %v7660_v47 }
 0x36c   :  { %v652_v57 = vadd.f32 %v7679_v24, %v651_v25  ;;  %v1093_v25 = vmax.f32 %v1089_v60, %v7640_v54  ;;  %v1345_v24 = vmax.f32 %v1341_v52, %v7642_v41  ;;  %v1096_v56 = vmax.f32 %v1092_v16, %v7650_v35  ;;  %v7714_v63 = vpop.eup %6826 }
 0x36d   :  { %v1348_v62 = vmax.f32 %v1344_v45, %v7652_v36  ;;  %6842 = vpow2.f32 %v640_v33  ;;  %v1347_v60 = vmax.f32 %v1343_v27, %v7662_v59  ;;  %v10412_v52 = vsub.f32 %v7432_v0, %v7560_v2 }
 0x36e   :  { %v653_v43 = vadd.f32 %v7702_v30, %v652_v57  ;;  %v1097_v4 = vmax.f32 %v1093_v25, %v1094_v10  ;;  %v1349_v5 = vmax.f32 %v1345_v24, %v1346_v8  ;;  %v7718_v57 = vpop.eup %6828  ;;  %6844 = vpow2.f32 %v876_v12 }
 0x36f   :  { %v880_v58 = vmul.f32 1.442695, %v10412_v52  ;;  %v1098_v16 = vmax.f32 %v1095_v32, %v1096_v56  ;;  %v7723_v10 = vpop.eup %6830  ;;  %6846 = vpow2.f32 %v642_v29  ;;  %v10413_v37 = vsub.f32 %v7504_v46, %v7554_v26 }
 0x370   :  { %v654_v28 = vadd.f32 %v7710_v20, %v653_v43  ;;  %v1350_v24 = vmax.f32 %v1347_v60, %v1348_v62  ;;  %v7729_v8 = vpop.eup %6832  ;;  %6848 = vpow2.f32 %v878_v38  ;;  %v10414_v27 = vsub.f32 %v7456_v13, %v7560_v2 }
 0x371   :  { %v646_v33 = vmul.f32 1.442695, %v10413_v37  ;;  %v1099_v0 = vmax.f32 %v1097_v4, %v1098_v16  ;;  %6850 = vpow2.f32 %v644_v55  ;;  %v10415_v25 = vsub.f32 %v7498_v42, %v7554_v26  ;;  %v7741_v38 = vpop.eup %6834 }
 0x372   :  { %v655_v45 = vadd.f32 %v7714_v63, %v654_v28  ;;  %v882_v12 = vmul.f32 1.442695, %v10414_v27  ;;  %v1351_v46 = vmax.f32 %v1349_v5, %v1350_v24  ;;  %6852 = vpow2.f32 %v880_v58  ;;  %v7747_v26 = vpop.eup %6836  ;;  %v10421_v24 = vld [vmem:[#allocation7_spill] sm:$0xff] }
 0x373   :  { %v648_v29 = vmul.f32 1.442695, %v10415_v25  ;;  %v10416_v62 = vsub.f32 %v7448_v9, %v7560_v2  ;;  %v1100_v32 = vrot.slane %v1099_v0, 4  ;;  %6854 = vpow2.f32 %v646_v33  ;;  %v10419_v9 = vld [vmem:[#allocation8_spill] sm:$0xff]  ;;  %v7755_v16 = vpop.eup %6838 }
 0x374   :  { %v656_v43 = vadd.f32 %v7718_v57, %v655_v45  ;;  %v10417_v55 = vsub.f32 %v7470_v21, %v7560_v2  ;;  %v1352_v42 = vrot.slane %v1351_v46, 4  ;;  %6856 = vpow2.f32 %v882_v12  ;;  %v10423_v12 = vld [vmem:[#allocation10_spill] sm:$0xff] }
 0x375   :  { %v884_v56 = vmul.f32 1.442695, %v10416_v62  ;;  %v10418_v28 = vsub.f32 %v7464_v17, %v7560_v2  ;;  %v10420_v60 = vsub.f32 %v10419_v9, %v7560_v2  ;;  %v1101_v58 = vmax.f32 %v1099_v0, %v1100_v32  ;;  %v7760_v45 = vpop.eup %6840 }
 0x376   :  { %v657_v13 = vadd.f32 %v7723_v10, %v656_v43  ;;  %v886_v4 = vmul.f32 1.442695, %v10417_v55  ;;  %6858 = vpow2.f32 %v648_v29  ;;  %v902_v21 = vadd.f32 %v7747_v26, %v7741_v38 }
 0x377   :  { %v888_v5 = vmul.f32 1.442695, %v10418_v28  ;;  %v890_v52 = vmul.f32 1.442695, %v10420_v60  ;;  %v1353_v33 = vmax.f32 %v1351_v46, %v1352_v42  ;;  %6860 = vpow2.f32 %v884_v56  ;;  %v7768_v62 = vpop.eup %6842  ;;  %v10426_v56 = vld [vmem:[#allocation9_spill] sm:$0xff]  ;;  %v10428_v28 = vld [vmem:[#allocation12_spill] sm:$0xff] }
 0x378   :  { %v658_v37 = vadd.f32 %v7729_v8, %v657_v13  ;;  %v10422_v17 = vsub.f32 %v10421_v24, %v7560_v2  ;;  %v10424_v25 = vsub.f32 %v10423_v12, %v7560_v2  ;;  %v1102_v43 = vrot.slane %v1101_v58, 2  ;;  %v7772_v13 = vpop.eup %6844 }
 0x379   :  { %6862 = vpow2.f32 %v886_v4  ;;  %v903_v32 = vadd.f32 %v7760_v45, %v902_v21  ;;  %v1354_v46 = vrot.slane %v1353_v33, 2  ;;  %10425 = vst [vmem:[#allocation8_spill] sm:$0xff] %v7772_v13  ;;  %v10427_v55 = vsub.f32 %v10426_v56, %v7560_v2 }
 0x37a   :  { %v892_v27 = vmul.f32 1.442695, %v10422_v17  ;;  %v894_v0 = vmul.f32 1.442695, %v10424_v25  ;;  %v659_v29 = vadd.f32 %v7755_v16, %v658_v37  ;;  %6864 = vpow2.f32 %v888_v5  ;;  %v7780_v17 = vpop.eup %6846 }
 0x37b   :  { %v896_v42 = vmul.f32 1.442695, %v10427_v55  ;;  %v10429_v9 = vsub.f32 %v10428_v28, %v7560_v2  ;;  %v1103_v24 = vmax.f32 %v1101_v58, %v1102_v43  ;;  %6866 = vpow2.f32 %v890_v52  ;;  %v7784_v12 = vpop.eup %6848 }
 0x37c   :  { %v660_v37 = vadd.f32 %v7768_v62, %v659_v29  ;;  %v904_v4 = vadd.f32 %v7772_v13, %v903_v32  ;;  %v1355_v21 = vmax.f32 %v1353_v33, %v1354_v46  ;;  %10430 = vst [vmem:[#allocation7_spill] sm:$0xff] %v7784_v12  ;;  %6868 = vpow2.f32 %v892_v27  ;;  %v7786_v25 = vpop.eup %6850  ;;  %v10432_v29 = vld [vmem:[#allocation11_spill] sm:$0xff] }
 0x37d   :  { %v898_v60 = vmul.f32 1.442695, %v10429_v9  ;;  %v1104_v5 = vrot.slane %v1103_v24, 1  ;;  %6870 = vpow2.f32 %v894_v0  ;;  %v7790_v43 = vpop.eup %6852  ;;  %v10433_v52 = vsub.f32 %v10432_v29, %v7560_v2 }
 0x37e   :  { %v661_v56 = vadd.f32 %v7780_v17, %v660_v37  ;;  %v905_v55 = vadd.f32 %v7784_v12, %v904_v4  ;;  %v1356_v58 = vrot.slane %v1355_v21, 1  ;;  %10431 = vst [vmem:[#allocation10_spill] sm:$0xff] %v7790_v43  ;;  %6872 = vpow2.f32 %v896_v42  ;;  %v7797_v46 = vpop.eup %6854 }
 0x37f   :  { %v900_v32 = vmul.f32 1.442695, %v10433_v52  ;;  %v7795_v33 = vmax.f32 %v1103_v24, %v1104_v5  ;;  %6874 = vpow2.f32 %v898_v60  ;;  %v7803_v9 = vpop.eup %6856 }
 0x380   :  { %v662_v27 = vadd.f32 %v7786_v25, %v661_v56  ;;  %v906_v28 = vadd.f32 %v7790_v43, %v905_v55  ;;  %v7801_v0 = vmax.f32 %v1355_v21, %v1356_v58  ;;  %10434 = vst [vmem:[#allocation9_spill] sm:$0xff] %v7803_v9  ;;  %v7813_v4 = vpop.eup %6858 }
 0x381   :  { %v1106_v42 = vsub.f32 %v7514_v3, %v7795_v33  ;;  %v1107_v2 = vsub.f32 %v7510_v53, %v7795_v33  ;;  %v1108_v24 = vsub.f32 %v7522_v19, %v7795_v33  ;;  %v1109_v37 = vsub.f32 %v7518_v15, %v7795_v33  ;;  %v7821_v56 = vpop.eup %6860 }
 0x382   :  { %v663_v60 = vadd.f32 %v7797_v46, %v662_v27  ;;  %v907_v21 = vadd.f32 %v7803_v9, %v906_v28  ;;  %v1110_v5 = vsub.f32 %v7534_v39, %v7795_v33  ;;  %v1111_v3 = vsub.f32 %v7526_v31, %v7795_v33  ;;  %10435 = vst [vmem:[#allocation12_spill] sm:$0xff] %v7821_v56 }
 0x383   :  { %v1112_v53 = vsub.f32 %v7550_v14, %v7795_v33  ;;  %v1113_v15 = vsub.f32 %v7542_v51, %v7795_v33  ;;  %v1114_v19 = vsub.f32 %v7582_v61, %v7795_v33  ;;  %v1115_v55 = vsub.f32 %v7570_v49, %v7795_v33  ;;  %v7831_v58 = vpop.eup %6862 }
 0x384   :  { %10436 = vst [vmem:[#allocation11_spill] sm:$0xff] %v7831_v58  ;;  %v664_v39 = vadd.f32 %v7813_v4, %v663_v60  ;;  %v908_v31 = vadd.f32 %v7821_v56, %v907_v21  ;;  %v1116_v29 = vsub.f32 %v7620_v48, %v7795_v33  ;;  %v1117_v14 = vsub.f32 %v7610_v11, %v7795_v33  ;;  %v7839_v52 = vpop.eup %6864 }
 0x385   :  { %v1118_v51 = vsub.f32 %v7640_v54, %v7795_v33  ;;  %v1119_v49 = vsub.f32 %v7630_v44, %v7795_v33  ;;  %v1120_v61 = vsub.f32 %v7660_v47, %v7795_v33  ;;  %v7849_v28 = vpop.eup %6866  ;;  %v1122_v11 = vmul.f32 1.442695, %v1106_v42 }
 0x386   :  { %v665_v48 = vrot.slane %v664_v39, 4  ;;  %v909_v60 = vadd.f32 %v7831_v58, %v908_v31  ;;  %v1124_v21 = vmul.f32 1.442695, %v1107_v2  ;;  %v7852_v56 = vpop.eup %6868  ;;  %6876 = vpow2.f32 %v900_v32 }
 0x387   :  { %v1126_v54 = vmul.f32 1.442695, %v1108_v24  ;;  %v1128_v9 = vmul.f32 1.442695, %v1109_v37  ;;  %v1358_v44 = vsub.f32 %v7516_v6, %v7801_v0  ;;  %v7856_v43 = vpop.eup %6870  ;;  %6878 = vpow2.f32 %v1122_v11 }
 0x388   :  { %v666_v47 = vadd.f32 %v665_v48, %v664_v39  ;;  %v910_v27 = vadd.f32 %v7839_v52, %v909_v60  ;;  %v1130_v12 = vmul.f32 1.442695, %v1110_v5  ;;  %v7859_v13 = vpop.eup %6872  ;;  %6880 = vpow2.f32 %v1124_v21 }
 0x389   :  { %v1132_v42 = vmul.f32 1.442695, %v1111_v3  ;;  %v1134_v2 = vmul.f32 1.442695, %v1112_v53  ;;  %v7861_v31 = vpop.eup %6874  ;;  %6882 = vpow2.f32 %v1126_v54  ;;  %v1136_v37 = vmul.f32 1.442695, %v1113_v15 }
 0x38a   :  { %v667_v32 = vrot.slane %v666_v47, 2  ;;  %v911_v24 = vadd.f32 %v7849_v28, %v910_v27  ;;  %6884 = vpow2.f32 %v1128_v9  ;;  %v1138_v6 = vmul.f32 1.442695, %v1114_v19 }
 0x38b   :  { %v1140_v58 = vmul.f32 1.442695, %v1115_v55  ;;  %v1142_v39 = vmul.f32 1.442695, %v1116_v29  ;;  %6886 = vpow2.f32 %v1130_v12  ;;  %v1144_v5 = vmul.f32 1.442695, %v1117_v14 }
 0x38c   :  { %v668_v48 = vadd.f32 %v667_v32, %v666_v47  ;;  %v912_v60 = vadd.f32 %v7852_v56, %v911_v24  ;;  %6888 = vpow2.f32 %v1132_v42  ;;  %v1146_v11 = vmul.f32 1.442695, %v1118_v51  ;;  %v10439_v47 = vld [vmem:[#allocation16_spill] sm:$0xff]  ;;  %v10440_v42 = vld [vmem:[#allocation15_spill] sm:$0xff] }
 0x38d   :  { %v1148_v3 = vmul.f32 1.442695, %v1119_v49  ;;  %v1359_v53 = vsub.f32 %v7512_v1, %v7801_v0  ;;  %v1150_v54 = vmul.f32 1.442695, %v1120_v61  ;;  %v1360_v9 = vsub.f32 %v7524_v22, %v7801_v0 }
 0x38e   :  { %v669_v21 = vrot.slane %v668_v48, 1  ;;  %v913_v27 = vadd.f32 %v7856_v43, %v912_v60  ;;  %6890 = vpow2.f32 %v1134_v2  ;;  %v1361_v15 = vsub.f32 %v7520_v18, %v7801_v0  ;;  %v10437_v18 = vld [vmem:[#allocation14_spill] sm:$0xff]  ;;  %v10442_v2 = vld [vmem:[#allocation17_spill] sm:$0xff] }
 0x38f   :  { %v1362_v12 = vsub.f32 %v7536_v40, %v7801_v0  ;;  %v1363_v19 = vsub.f32 %v7528_v34, %v7801_v0  ;;  %6892 = vpow2.f32 %v1136_v37  ;;  %v1364_v29 = vsub.f32 %v7552_v23, %v7801_v0  ;;  %v10438_v40 = vld [vmem:[#allocation13_spill] sm:$0xff] }
 0x390   :  { %v670_v55 = vadd.f32 %v669_v21, %v668_v48  ;;  %v914_v1 = vadd.f32 %v7859_v13, %v913_v27  ;;  %v7879_v14 = vpop.eup %6876  ;;  %6894 = vpow2.f32 %v1138_v6  ;;  %v1365_v22 = vsub.f32 %v7544_v7, %v7801_v0 }
 0x391   :  { %v1366_v51 = vsub.f32 %v10437_v18, %v7801_v0  ;;  %v1367_v49 = vsub.f32 %v10438_v40, %v7801_v0  ;;  %v7887_v34 = vpop.eup %6878  ;;  %v1374_v27 = vmul.f32 1.442695, %v1358_v44  ;;  %v1376_v40 = vmul.f32 1.442695, %v1359_v53 }
 0x392   :  { %6896 = vrcp.f32 %v670_v55  ;;  %v915_v61 = vadd.f32 %v7861_v31, %v914_v1  ;;  %v7894_v32 = vpop.eup %6880 }
 0x393   :  { %6898 = vpow2.f32 %v1140_v58  ;;  %v7902_v6 = vpop.eup %6882  ;;  %v1154_v60 = vadd.f32 %v7894_v32, %v7887_v34 }
 0x394   :  { %v916_v48 = vadd.f32 %v7879_v14, %v915_v61  ;;  %6900 = vpow2.f32 %v1142_v39  ;;  %v7909_v21 = vpop.eup %6884  ;;  %v10441_v39 = vsub.f32 %v7650_v35, %v7795_v33  ;;  %v1382_v35 = vmul.f32 1.442695, %v1362_v12 }
 0x395   :  { %6902 = vpow2.f32 %v1144_v5  ;;  %v7911_v55 = vpop.eup %6886  ;;  %v1155_v18 = vadd.f32 %v7902_v6, %v1154_v60  ;;  %v1378_v5 = vmul.f32 1.442695, %v1360_v9  ;;  %v1380_v60 = vmul.f32 1.442695, %v1361_v15 }
 0x396   :  { %v917_v1 = vrot.slane %v916_v48, 4  ;;  %6904 = vpow2.f32 %v1146_v11  ;;  %v7914_v37 = vpop.eup %6888  ;;  %v1152_v61 = vmul.f32 1.442695, %v10441_v39  ;;  %v1384_v33 = vmul.f32 1.442695, %v1363_v19 }
 0x397   :  { %6906 = vpow2.f32 %v1148_v3  ;;  %v1156_v58 = vadd.f32 %v7909_v21, %v1155_v18  ;;  %v1388_v18 = vmul.f32 1.442695, %v1365_v22  ;;  %v1390_v39 = vmul.f32 1.442695, %v1366_v51 }
 0x398   :  { %v918_v24 = vadd.f32 %v917_v1, %v916_v48  ;;  %6908 = vpow2.f32 %v1150_v54  ;;  %v7920_v44 = vpop.eup %6890  ;;  %v1386_v48 = vmul.f32 1.442695, %v1364_v29  ;;  %v1392_v51 = vmul.f32 1.442695, %v1367_v49 }
 0x399   :  { %6910 = vpow2.f32 %v1374_v27  ;;  %v7922_v7 = vpop.eup %6892  ;;  %v1157_v53 = vadd.f32 %v7911_v55, %v1156_v58  ;;  %v10443_v58 = vld [vmem:[#allocation18_spill] sm:$0xff] }
 0x39a   :  { %v919_v11 = vrot.slane %v918_v24, 2  ;;  %6912 = vpow2.f32 %v1376_v40  ;;  %v7925_v3 = vpop.eup %6894  ;;  %v10444_v40 = vld [vmem:[#allocation19_spill] sm:$0xff] }
 0x39b   :  { %6914 = vpow2.f32 %v1152_v61  ;;  %v1158_v9 = vadd.f32 %v7914_v37, %v1157_v53 }
 0x39c   :  { %v6897_v54 = vpop.eup %6896  ;;  %v920_v1 = vadd.f32 %v919_v11, %v918_v24  ;;  %6916 = vpow2.f32 %v1378_v5  ;;  %v10445_v24 = vld [vmem:[#allocation20_spill] sm:$0xff] }
 0x39d   :  { %v7928_v27 = vpop.eup %6898  ;;  %v7931_v23 = vmul.f32 %v6897_v54, %v10442_v2  ;;  %v7934_v15 = vmul.f32 %v6897_v54, %v10443_v58  ;;  %v7937_v61 = vmul.f32 %v6897_v54, %v10444_v40  ;;  %v1159_v29 = vadd.f32 %v7920_v44, %v1158_v9 }
 0x39e   :  { %v7939_v12 = vpop.eup %6900  ;;  %v921_v19 = vrot.slane %v920_v1, 1  ;;  %6918 = vpow2.f32 %v1380_v60  ;;  %v7943_v22 = vmul.f32 %v6897_v54, %v10445_v24  ;;  %v7950_v11 = vmul.f32 %v6897_v54, %v7702_v30 }
 0x39f   :  { %v7945_v5 = vpop.eup %6902  ;;  %v7953_v53 = vmul.f32 %v6897_v54, %v7710_v20  ;;  %v1160_v60 = vadd.f32 %v7922_v7, %v1159_v29  ;;  %6920 = vpow2.f32 %v1382_v35  ;;  %v7965_v30 = vmul.f32 %v6897_v54, %v7714_v63 }
 0x3a0   :  { %v7955_v58 = vpop.eup %6904  ;;  %v922_v40 = vadd.f32 %v921_v19, %v920_v1  ;;  %6922 = vpow2.f32 %v1384_v33  ;;  %v7968_v20 = vmul.f32 %v6897_v54, %v7718_v57  ;;  %v7974_v1 = vmul.f32 %v6897_v54, %v7723_v10 }
 0x3a1   :  { %v7960_v24 = vpop.eup %6906  ;;  %v1161_v35 = vadd.f32 %v7925_v3, %v1160_v60  ;;  %v7977_v19 = vmul.f32 %v6897_v54, %v7729_v8  ;;  %v10449_v63 = vsub.f32 %v10439_v47, %v7801_v0  ;;  %v7987_v49 = vmul.f32 %v6897_v54, %v7755_v16 }
 0x3a2   :  { %10446 = vst [vmem:[#allocation14_spill] sm:$0xff] %v7960_v24  ;;  %v7970_v2 = vpop.eup %6908  ;;  %6924 = vrcp.f32 %v922_v40  ;;  %v7990_v40 = vmul.f32 %v6897_v54, %v7768_v62  ;;  %v7998_v47 = vmul.f32 %v6897_v54, %v7780_v17  ;;  %v10451_v16 = vsub.f32 %v10440_v42, %v7801_v0 }
 0x3a3   :  { %10447 = vst [vmem:[#allocation13_spill] sm:$0xff] %v7970_v2  ;;  %v7979_v33 = vpop.eup %6910  ;;  %v1394_v29 = vmul.f32 1.442695, %v10449_v63  ;;  %v1162_v8 = vadd.f32 %v7928_v27, %v1161_v35  ;;  %6926 = vpow2.f32 %v1386_v48  ;;  %v8010_v48 = vmul.f32 %v6897_v54, %v7786_v25 }
 0x3a4   :  { %10448 = vst [vmem:[#allocation16_spill] sm:$0xff] %v7979_v33  ;;  %v7992_v10 = vpop.eup %6912  ;;  %v1396_v57 = vmul.f32 1.442695, %v10451_v16  ;;  %6928 = vpow2.f32 %v1388_v18  ;;  %v8016_v60 = vmul.f32 %v6897_v54, %v7797_v46  ;;  %v8019_v42 = vmul.f32 %v6897_v54, %v7813_v4 }
 0x3a5   :  { %10450 = vst [vmem:[#allocation15_spill] sm:$0xff] %v7992_v10  ;;  %v8000_v63 = vpop.eup %6914  ;;  %v1406_v62 = vadd.f32 %v7992_v10, %v7979_v33  ;;  %v1163_v17 = vadd.f32 %v7939_v12, %v1162_v8  ;;  %6930 = vpow2.f32 %v1390_v39  ;;  %v10453_v16 = vsub.f32 %v7642_v41, %v7801_v0 }
 0x3a6   :  { %v8012_v35 = vpop.eup %6916  ;;  %6932 = vpow2.f32 %v1392_v51  ;;  %v10455_v46 = vsub.f32 %v7632_v50, %v7801_v0 }
 0x3a7   :  { %10452 = vst [vmem:[#allocation17_spill] sm:$0xff] %v8012_v35  ;;  %v1398_v10 = vmul.f32 1.442695, %v10453_v16  ;;  %v1407_v9 = vadd.f32 %v8012_v35, %v1406_v62  ;;  %v1164_v18 = vadd.f32 %v7945_v5, %v1163_v17  ;;  %6934 = vpow2.f32 %v1394_v29 }
 0x3a8   :  { %v8027_v33 = vpop.eup %6918  ;;  %v1400_v4 = vmul.f32 1.442695, %v10455_v46  ;;  %6936 = vpow2.f32 %v1396_v57  ;;  %v10458_v16 = vsub.f32 %v7662_v59, %v7801_v0  ;;  %v10461_v59 = vld [vmem:[#allocation7_spill] sm:$0xff] }
 0x3a9   :  { %10454 = vst [vmem:[#allocation18_spill] sm:$0xff] %v8027_v33  ;;  %v1408_v41 = vadd.f32 %v8027_v33, %v1407_v9  ;;  %v8036_v39 = vpop.eup %6920  ;;  %v1165_v8 = vadd.f32 %v7955_v58, %v1164_v18  ;;  %6938 = vpow2.f32 %v1398_v10  ;;  %v10459_v9 = vsub.f32 %v7652_v36, %v7801_v0 }
 0x3aa   :  { %10456 = vst [vmem:[#allocation19_spill] sm:$0xff] %v8036_v39  ;;  %v8039_v62 = vpop.eup %6922  ;;  %6940 = vpow2.f32 %v1400_v4  ;;  %v1402_v29 = vmul.f32 1.442695, %v10458_v16 }
 0x3ab   :  { %10457 = vst [vmem:[#allocation20_spill] sm:$0xff] %v8039_v62  ;;  %v1409_v51 = vadd.f32 %v8036_v39, %v1408_v41  ;;  %v1166_v50 = vadd.f32 %v7960_v24, %v1165_v8  ;;  %v1404_v46 = vmul.f32 1.442695, %v10459_v9  ;;  %v10460_v8 = vld [vmem:[#allocation8_spill] sm:$0xff]  ;;  %v10462_v39 = vld [vmem:[#allocation10_spill] sm:$0xff] }
 0x3ac   :  { %v6925_v17 = vpop.eup %6924  ;;  %6942 = vpow2.f32 %v1402_v29  ;;  %v10468_v29 = vpack.c.bf16 %v7953_v53, %v7950_v11  ;;  %v10470_v53 = vpack.c.bf16 %v7977_v19, %v7974_v1  ;;  %v10472_v1 = vpack.c.bf16 %v8010_v48, %v7998_v47 }
 0x3ad   :  { %v1410_v18 = vadd.f32 %v8039_v62, %v1409_v51  ;;  %v924_v57 = vmul.f32 %v6925_v17, %v7741_v38  ;;  %v925_v10 = vmul.f32 %v6925_v17, %v7747_v26  ;;  %v926_v41 = vmul.f32 %v6925_v17, %v7760_v45  ;;  %v8053_v54 = vpop.eup %6926  ;;  %v10463_v51 = vld [vmem:[#allocation9_spill] sm:$0xff]  ;;  %v10464_v38 = vld [vmem:[#allocation12_spill] sm:$0xff] }
 0x3ae   :  { %v1167_v4 = vadd.f32 %v7970_v2, %v1166_v50  ;;  %v927_v25 = vmul.f32 %v6925_v17, %v10460_v8  ;;  %v928_v16 = vmul.f32 %v6925_v17, %v10461_v59  ;;  %v929_v33 = vmul.f32 %v6925_v17, %v10462_v39  ;;  %v8062_v26 = vpop.eup %6928  ;;  %v10465_v50 = vld [vmem:[#allocation11_spill] sm:$0xff] }
 0x3af   :  { %v1411_v36 = vadd.f32 %v8053_v54, %v1410_v18  ;;  %v6474_v0 = vpack.c.bf16 %v925_v10, %v924_v57  ;;  %v930_v9 = vmul.f32 %v6925_v17, %v10463_v51  ;;  %v931_v62 = vmul.f32 %v6925_v17, %v10464_v38  ;;  %v8066_v8 = vpop.eup %6930 }
 0x3b0   :  { %v1168_v45 = vadd.f32 %v8000_v63, %v1167_v4  ;;  %v6478_v35 = vpack.c.bf16 %v927_v25, %v926_v41  ;;  %v6482_v24 = vpack.c.bf16 %v929_v33, %v928_v16  ;;  %v932_v2 = vmul.f32 %v6925_v17, %v10465_v50  ;;  %v8071_v10 = vpop.eup %6932 }
 0x3b1   :  { %v1412_v59 = vadd.f32 %v8062_v26, %v1411_v36  ;;  %6475 = vmatprep.subr.bf16.mxu0 %v6474_v0  ;;  %v6486_v39 = vpack.c.bf16 %v931_v62, %v930_v9  ;;  %v933_v18 = vmul.f32 %v6925_v17, %v7839_v52  ;;  %v934_v57 = vmul.f32 %v6925_v17, %v7849_v28  ;;  %v8079_v16 = vpop.eup %6934 }
 0x3b2   :  { %v1169_v51 = vrot.slane %v1168_v45, 4  ;;  %v10466_v4 = vpack.c.bf16 %v7934_v15, %v7931_v23  ;;  %v935_v33 = vmul.f32 %v6925_v17, %v7852_v56  ;;  %v936_v25 = vmul.f32 %v6925_v17, %v7856_v43  ;;  %v8084_v0 = vpop.eup %6936 }
 0x3b3   :  { %v937_v41 = vmul.f32 %v6925_v17, %v7859_v13  ;;  %v1413_v62 = vadd.f32 %v8066_v8, %v1412_v59  ;;  %v6490_v52 = vpack.c.bf16 %v933_v18, %v932_v2  ;;  %v938_v28 = vmul.f32 %v6925_v17, %v7861_v31  ;;  %v8086_v9 = vpop.eup %6938 }
 0x3b4   :  { %6477 = vmatpush3.bf16.msra.mxu0 %v10466_v4  ;;  %v939_v36 = vmul.f32 %v6925_v17, %v7879_v14  ;;  %v1170_v23 = vadd.f32 %v1169_v51, %v1168_v45  ;;  %v6494_v15 = vpack.c.bf16 %v935_v33, %v934_v57  ;;  %v8089_v38 = vpop.eup %6940  ;;  %6944 = vpow2.f32 %v1404_v46 }
 0x3b5   :  { %6479 = vmatprep.subr.bf16.mxu0 %v6478_v35  ;;  %v6498_v56 = vpack.c.bf16 %v937_v41, %v936_v25  ;;  %v1414_v13 = vadd.f32 %v8071_v10, %v1413_v62  ;;  %v10467_v31 = vpack.c.bf16 %v7943_v22, %v7937_v61  ;;  %v10469_v61 = vpack.c.bf16 %v7968_v20, %v7965_v30 }
 0x3b6   :  { %v6502_v43 = vpack.c.bf16 %v939_v36, %v938_v28  ;;  %v1171_v50 = vrot.slane %v1170_v23, 2  ;;  %v8101_v18 = vpop.eup %6942  ;;  %v10471_v51 = vpack.c.bf16 %v7990_v40, %v7987_v49 }
 0x3b7   :  { %v1415_v14 = vadd.f32 %v8079_v16, %v1414_v13 }
 0x3b8   :  { %6481 = vmatpush3.bf16.msra.mxu0 %v10467_v31  ;;  %v1172_v2 = vadd.f32 %v1171_v50, %v1170_v23  ;;  %v10476_v31 = vld [vmem:[#allocation5_spill] sm:$0xff] }
 0x3b9   :  { %6483 = vmatprep.subr.bf16.mxu0 %v6482_v24  ;;  %v1416_v35 = vadd.f32 %v8084_v0, %v1415_v14  ;;  %v10478_v14 = vld [vmem:[#allocation16_spill] sm:$0xff] }
 0x3ba   :  { %v1173_v17 = vrot.slane %v1172_v2, 1 }
 0x3bb   :  { %v1417_v45 = vadd.f32 %v8086_v9, %v1416_v35  ;;  %v10480_v35 = vld [vmem:[#allocation17_spill] sm:$0xff] }
 0x3bc   :  { %6485 = vmatpush3.bf16.msra.mxu0 %v10468_v29  ;;  %v1174_v59 = vadd.f32 %v1173_v17, %v1172_v2  ;;  %v10481_v29 = vld [vmem:[#allocation18_spill] sm:$0xff] }
 0x3bd   :  { %6487 = vmatprep.subr.bf16.mxu0 %v6486_v39  ;;  %v1418_v46 = vadd.f32 %v8089_v38, %v1417_v45 }
 0x3be   :  { %6946 = vrcp.f32 %v1174_v59  ;;  %v8107_v24 = vpop.eup %6944  ;;  %v10482_v59 = vld [vmem:[#allocation19_spill] sm:$0xff] }
 0x3bf   :  { %v1419_v22 = vadd.f32 %v8101_v18, %v1418_v46  ;;  %v10483_v46 = vld [vmem:[#allocation20_spill] sm:$0xff] }
 0x3c0   :  { %6489 = vmatpush3.bf16.msra.mxu0 %v10469_v61 }
 0x3c1   :  { %6491 = vmatprep.subr.bf16.mxu0 %v6490_v52  ;;  %v1420_v11 = vadd.f32 %v8107_v24, %v1419_v22 }
 0x3c3   :  { %v1421_v39 = vrot.slane %v1420_v11, 4 }
 0x3c4   :  { %6493 = vmatpush3.bf16.msra.mxu0 %v10470_v53 }
 0x3c5   :  { %6495 = vmatprep.subr.bf16.mxu0 %v6494_v15  ;;  %v1422_v57 = vadd.f32 %v1421_v39, %v1420_v11 }
 0x3c7   :  { %v1423_v30 = vrot.slane %v1422_v57, 2 }
 0x3c8   :  { %6497 = vmatpush3.bf16.msra.mxu0 %v10471_v51  ;;  %v6947_v20 = vpop.eup %6946 }
 0x3c9   :  { %6499 = vmatprep.subr.bf16.mxu0 %v6498_v56  ;;  %v1424_v4 = vadd.f32 %v1423_v30, %v1422_v57  ;;  %v1176_v33 = vmul.f32 %v6947_v20, %v7887_v34  ;;  %v1177_v25 = vmul.f32 %v6947_v20, %v7894_v32  ;;  %v1178_v41 = vmul.f32 %v6947_v20, %v7902_v6 }
 0x3ca   :  { %v1179_v19 = vmul.f32 %v6947_v20, %v7909_v21  ;;  %v1180_v62 = vmul.f32 %v6947_v20, %v7911_v55  ;;  %v1181_v49 = vmul.f32 %v6947_v20, %v7914_v37  ;;  %v1182_v40 = vmul.f32 %v6947_v20, %v7920_v44 }
 0x3cb   :  { %v1425_v52 = vrot.slane %v1424_v4, 1  ;;  %v6508_v28 = vpack.c.bf16 %v1177_v25, %v1176_v33  ;;  %v1183_v34 = vmul.f32 %v6947_v20, %v7922_v7  ;;  %v1184_v32 = vmul.f32 %v6947_v20, %v7925_v3  ;;  %v10474_v7 = vld [vmem:[#allocation14_spill] sm:$0xff]  ;;  %v10475_v3 = vld [vmem:[#allocation13_spill] sm:$0xff] }
 0x3cc   :  { %6501 = vmatpush3.bf16.msra.mxu0 %v10472_v1  ;;  %v6512_v6 = vpack.c.bf16 %v1179_v19, %v1178_v41  ;;  %v6516_v36 = vpack.c.bf16 %v1181_v49, %v1180_v62  ;;  %v1185_v47 = vmul.f32 %v6947_v20, %v7928_v27  ;;  %v1186_v48 = vmul.f32 %v6947_v20, %v7939_v12  ;;  %v117_v62 = vld [vmem:[%s10289_s3 + $0x18] sm:$0xff] }
 0x3cd   :  { %6503 = vmatprep.subr.bf16.mxu0 %v6502_v43  ;;  %v1426_v21 = vadd.f32 %v1425_v52, %v1424_v4  ;;  %v6520_v23 = vpack.c.bf16 %v1183_v34, %v1182_v40  ;;  %v1187_v55 = vmul.f32 %v6947_v20, %v7945_v5  ;;  %v1188_v37 = vmul.f32 %v6947_v20, %v7955_v58  ;;  %v118_v40 = vld [vmem:[%s10289_s3 + $0x20] sm:$0xff]  ;;  %v119_v52 = vld [vmem:[%s10289_s3 + $0x28] sm:$0xff]  ;;  %v120_v34 = vld [vmem:[%s10289_s3 + $0x30] sm:$0xff] }
 0x3ce   :  { %v10473_v44 = vpack.c.bf16 %v8019_v42, %v8016_v60  ;;  %v6524_v15 = vpack.c.bf16 %v1185_v47, %v1184_v32  ;;  %v1189_v56 = vmul.f32 %v6947_v20, %v10474_v7  ;;  %v1190_v13 = vmul.f32 %v6947_v20, %v10475_v3  ;;  %v10479_v42 = vld [vmem:[#allocation15_spill] sm:$0xff]  ;;  %v123_v47 = vld [vmem:[%s10289_s3 + $0x48] sm:$0xff] }
 0x3cf   :  { %v1191_v43 = vmul.f32 %v6947_v20, %v8000_v63  ;;  %6948 = vrcp.f32 %v1426_v21  ;;  %v6528_v27 = vpack.c.bf16 %v1187_v55, %v1186_v48  ;;  %v10477_v5 = vmov 0.0   ;;  %v121_v32 = vld [vmem:[%s10289_s3 + $0x38] sm:$0xff]  ;;  %v124_v21 = vld [vmem:[%s10289_s3 + $0x50] sm:$0xff] }
 0x3d0   :  { %6505 = vmatpush3.bf16.msra.mxu0 %v10473_v44  ;;  %v6532_v12 = vpack.c.bf16 %v1189_v56, %v1188_v37  ;;  %v126_v37 = vld [vmem:[%s10289_s3 + $0x60] sm:$0xff]  ;;  %v127_v44 = vld [vmem:[%s10289_s3 + $0x68] sm:$0xff]  ;;  %v128_v7 = vld [vmem:[%s10289_s3 + $0x70] sm:$0xff] }
 0x3d1   :  { %v6536_v50 = vpack.c.bf16 %v1191_v43, %v1190_v13  ;;  %v129_v56 = vld [vmem:[%s10289_s3 + $0x78] sm:$0xff]  ;;  %v130_v13 = vld [vmem:[%s10289_s3 + $0x80] sm:$0xff]  ;;  %v131_v43 = vld [vmem:[%s10289_s3 + $0x88] sm:$0xff] }
 0x3d2   :  { %v6560_v3 = vpack.c.bf16 %v129_v56, %v128_v7 }
 0x3d3   :  { %1509 = vmatmul.mubr.f32.vlgmr.msra.gmra.mrb[38].mxu0 %v10476_v31 }
 0x3d4   :  { %6045 = vmatprep.mubr.msk.f32.mxu0 %vm7247_vm1, %v10477_v5 }
 0x3d9   :  { %v6949_v58 = vpop.eup %6948 }
 0x3da   :  { %v1428_v60 = vmul.f32 %v6949_v58, %v10478_v14  ;;  %v1429_v2 = vmul.f32 %v6949_v58, %v10479_v42  ;;  %v1430_v17 = vmul.f32 %v6949_v58, %v10480_v35  ;;  %v1431_v45 = vmul.f32 %v6949_v58, %v10481_v29  ;;  %v135_v14 = vld [vmem:[%s10289_s3 + $0xa8] sm:$0xff]  ;;  %v136_v42 = vld [vmem:[%s10289_s3 + $0xb0] sm:$0xff] }
 0x3db   :  { %v1432_v63 = vmul.f32 %v6949_v58, %v10482_v59  ;;  %v1433_v61 = vmul.f32 %v6949_v58, %v10483_v46  ;;  %v1434_v22 = vmul.f32 %v6949_v58, %v8053_v54  ;;  %v1435_v11 = vmul.f32 %v6949_v58, %v8062_v26  ;;  %v139_v29 = vld [vmem:[%s10289_s3 + $0xc8] sm:$0xff]  ;;  %v140_v59 = vld [vmem:[%s10289_s3 + $0xd0] sm:$0xff] }
 0x3dc   :  { %v6506_v53 = vpack.c.bf16 %v1429_v2, %v1428_v60  ;;  %v6510_v39 = vpack.c.bf16 %v1431_v45, %v1430_v17  ;;  %v1436_v57 = vmul.f32 %v6949_v58, %v8066_v8  ;;  %v1437_v51 = vmul.f32 %v6949_v58, %v8071_v10  ;;  %v137_v2 = vld [vmem:[%s10289_s3 + $0xb8] sm:$0xff]  ;;  %v138_v17 = vld [vmem:[%s10289_s3 + $0xc0] sm:$0xff] }
 0x3dd   :  { %v6514_v30 = vpack.c.bf16 %v1433_v61, %v1432_v63  ;;  %v6518_v20 = vpack.c.bf16 %v1435_v11, %v1434_v22  ;;  %v1438_v4 = vmul.f32 %v6949_v58, %v8079_v16  ;;  %v1439_v33 = vmul.f32 %v6949_v58, %v8084_v0  ;;  %v10484_v16 = vld [vmem:[#allocation6_spill] sm:$0xff]  ;;  %v114_v0 = vld [vmem:[%s10289_s3] sm:$0xff]  ;;  %v141_v63 = vld [vmem:[%s10289_s3 + $0xd8] sm:$0xff] }
 0x3de   :  { %6507 = vmatprep.subr.bf16.mxu1 %v6506_v53  ;;  %v6522_v25 = vpack.c.bf16 %v1437_v51, %v1436_v57  ;;  %v1440_v41 = vmul.f32 %v6949_v58, %v8086_v9  ;;  %v1441_v54 = vmul.f32 %v6949_v58, %v8089_v38  ;;  %v1442_v26 = vmul.f32 %v6949_v58, %v8101_v18  ;;  %v115_v9 = vld [vmem:[%s10289_s3 + $0x8] sm:$0xff]  ;;  %v116_v38 = vld [vmem:[%s10289_s3 + $0x10] sm:$0xff]  ;;  %v142_v61 = vld [vmem:[%s10289_s3 + $0xe0] sm:$0xff] }
 0x3df   :  { %6509 = vmatpush3.bf16.msra.mxu1 %v6508_v28  ;;  %v6526_v1 = vpack.c.bf16 %v1439_v33, %v1438_v4  ;;  %v1443_v8 = vmul.f32 %v6949_v58, %v8107_v24  ;;  %v10323_v18 = vmov 0.0|0.0   ;;  %v6539_v24 = vpack.c.bf16 %v115_v9, %v114_v0  ;;  %v134_v58 = vld [vmem:[%s10289_s3 + $0xa0] sm:$0xff]  ;;  %v143_v22 = vld [vmem:[%s10289_s3 + $0xe8] sm:$0xff]  ;;  %v111_v51 = vld [vmem:[%s10288_s2 + $0x38] sm:$0xff] }
 0x3e0   :  { %6511 = vmatprep.subr.bf16.mxu1 %v6510_v39  ;;  %v6530_v10 = vpack.c.bf16 %v1441_v54, %v1440_v41  ;;  %6538 = vmatprep.subr.bf16.mxu0 %v10323_v18  ;;  %v6542_v49 = vpack.c.bf16 %v117_v62, %v116_v38  ;;  %v6545_v28 = vpack.c.bf16 %v119_v52, %v118_v40  ;;  %v144_v41 = vld [vmem:[%s10289_s3 + $0xf0] sm:$0xff]  ;;  %v145_v54 = vld [vmem:[%s10289_s3 + $0xf8] sm:$0xff]  ;;  %v5175_v9 = vld [vmem:[%s10288_s2 + $0x41] ss:$0 sm:$0xff] }
 0x3e1   :  { %v6534_v19 = vpack.c.bf16 %v1443_v8, %v1442_v26  ;;  %6540 = vmatpush3.bf16.msra.mxu0 %v6539_v24  ;;  %v6569_v60 = vpack.c.bf16 %v135_v14, %v134_v58  ;;  %v6572_v35 = vpack.c.bf16 %v137_v2, %v136_v42  ;;  %v6575_v45 = vpack.c.bf16 %v139_v29, %v138_v17  ;;  %v1733_v0 = vld [vmem:[%s10287_s1 + $0x58] sm:$0xff]  ;;  %v1735_v40 = vld [vmem:[%s10287_s1 + $0x68] sm:$0xff]  ;;  %v1736_v52 = vld [vmem:[%s10287_s1 + $0x70] sm:$0xff] }
 0x3e2   :  { %6541 = vmatprep.subr.bf16.mxu0 %v10323_v18  ;;  %v6578_v46 = vpack.c.bf16 %v141_v63, %v140_v59  ;;  %v6581_v11 = vpack.c.bf16 %v143_v22, %v142_v61  ;;  %v6584_v26 = vpack.c.bf16 %v145_v54, %v144_v41 }
 0x3e3   :  { %6513 = vmatpush3.bf16.msra.mxu1 %v6512_v6  ;;  %v6548_v6 = vpack.c.bf16 %v121_v32, %v120_v34  ;;  %v1738_v34 = vld [vmem:[%s10287_s1 + $0x80] sm:$0xff]  ;;  %v1739_v32 = vld [vmem:[%s10287_s1 + $0x88] sm:$0xff] }
 0x3e4   :  { %6515 = vmatprep.subr.bf16.mxu1 %v6514_v30 }
 0x3e5   :  { %6543 = vmatpush3.bf16.msra.mxu0 %v6542_v49  ;;  %v1734_v49 = vld [vmem:[%s10287_s1 + $0x60] sm:$0xff] }
 0x3e6   :  { %6544 = vmatprep.subr.bf16.mxu0 %v10323_v18 }
 0x3e7   :  { %6517 = vmatpush3.bf16.msra.mxu1 %v6516_v36  ;;  %v122_v36 = vld [vmem:[%s10289_s3 + $0x40] sm:$0xff] }
 0x3e8   :  { %6519 = vmatprep.subr.bf16.mxu1 %v6518_v20  ;;  %v6551_v48 = vpack.c.bf16 %v123_v47, %v122_v36  ;;  %v1743_v36 = vld [vmem:[%s10288_s2 + $0x48] sm:$0xff] }
 0x3e9   :  { %6546 = vmatpush3.bf16.msra.mxu0 %v6545_v28  ;;  %v1737_v28 = vld [vmem:[%s10287_s1 + $0x78] sm:$0xff] }
 0x3ea   :  { %6547 = vmatprep.subr.bf16.mxu0 %v10323_v18 }
 0x3eb   :  { %6521 = vmatpush3.bf16.msra.mxu1 %v6520_v23  ;;  %v125_v23 = vld [vmem:[%s10289_s3 + $0x58] sm:$0xff] }
 0x3ec   :  { %6523 = vmatprep.subr.bf16.mxu1 %v6522_v25  ;;  %v6554_v55 = vpack.c.bf16 %v125_v23, %v124_v21 }
 0x3ed   :  { %6549 = vmatpush3.bf16.msra.mxu0 %v6548_v6  ;;  %v1744_v6 = vld [vmem:[%s10288_s2 + $0x50] sm:$0xff] }
 0x3ee   :  { %6550 = vmatprep.subr.bf16.mxu0 %v10323_v18 }
 0x3ef   :  { %6525 = vmatpush3.bf16.msra.mxu1 %v6524_v15  ;;  %v6557_v15 = vpack.c.bf16 %v127_v44, %v126_v37  ;;  %v1746_v37 = vld [vmem:[%s10288_s2 + $0x60] sm:$0xff]  ;;  %v1741_v44 = vld [vmem:[%s10287_s1 + $0x98] sm:$0xff] }
 0x3f0   :  { %6527 = vmatprep.subr.bf16.mxu1 %v6526_v1  ;;  %v5174_v1 = vld [vmem:[%s10288_s2 + $0x40] ss:$0 sm:$0xff] }
 0x3f1   :  { %6552 = vmatpush3.bf16.msra.mxu0 %v6551_v48 }
 0x3f2   :  { %6553 = vmatprep.subr.bf16.mxu0 %v10323_v18 }
 0x3f3   :  { %6529 = vmatpush3.bf16.msra.mxu1 %v6528_v27  ;;  %v132_v27 = vld [vmem:[%s10289_s3 + $0x90] sm:$0xff] }
 0x3f4   :  { %6531 = vmatprep.subr.bf16.mxu1 %v6530_v10 }
 0x3f5   :  { %6555 = vmatpush3.bf16.msra.mxu0 %v6554_v55  ;;  %v1740_v55 = vld [vmem:[%s10287_s1 + $0x90] sm:$0xff] }
 0x3f6   :  { %6556 = vmatprep.subr.bf16.mxu0 %v10323_v18 }
 0x3f7   :  { %6533 = vmatpush3.bf16.msra.mxu1 %v6532_v12  ;;  %v6563_v12 = vpack.c.bf16 %v131_v43, %v130_v13  ;;  %v1742_v43 = vld [vmem:[%s10287_s1 + $0xa0] sm:$0xff] }
 0x3f8   :  { %6535 = vmatprep.subr.bf16.mxu1 %v6534_v19 }
 0x3f9   :  { %6558 = vmatpush3.bf16.msra.mxu0 %v6557_v15  ;;  %v1745_v15 = vld [vmem:[%s10288_s2 + $0x58] sm:$0xff] }
 0x3fa   :  { %6559 = vmatprep.subr.bf16.mxu0 %v10323_v18 }
 0x3fb   :  { %6537 = vmatpush3.bf16.msra.mxu1 %v6536_v50  ;;  %v133_v50 = vld [vmem:[%s10289_s3 + $0x98] sm:$0xff] }
 0x3fc   :  { %6562 = vmatprep.subr.bf16.mxu1 %v10323_v18  ;;  %v6566_v31 = vpack.c.bf16 %v133_v50, %v132_v27  ;;  %v1748_v27 = vld [vmem:[%s10288_s2 + $0x70] sm:$0xff]  ;;  %v1747_v50 = vld [vmem:[%s10288_s2 + $0x68] sm:$0xff] }
 0x3fd   :  { %6561 = vmatpush3.bf16.msra.mxu0 %v6560_v3 }
 0x3fe   :  { %1579 = vmatmul.mubr.f32.vlgmr.msra.gmra.mrb[38].mxu1 %v10484_v16 }
 0x3ff   :  { %6080 = vmatprep.mubr.msk.f32.mxu1 %vm7247_vm1, %v10477_v5  ;;  %6564 = vmatpush3.bf16.msra.mxu1 %v6563_v12 }
 0x400   :  { %6565 = vmatprep.subr.bf16.mxu1 %v10323_v18 }
 0x403   :  { %6567 = vmatpush3.bf16.msra.mxu1 %v6566_v31 }
 0x404   :  { %6568 = vmatprep.subr.bf16.mxu1 %v10323_v18 }
 0x407   :  { %6570 = vmatpush3.bf16.msra.mxu1 %v6569_v60 }
 0x408   :  { %6571 = vmatprep.subr.bf16.mxu1 %v10323_v18 }
 0x40b   :  { %6573 = vmatpush3.bf16.msra.mxu1 %v6572_v35 }
 0x40c   :  { %6574 = vmatprep.subr.bf16.mxu1 %v10323_v18 }
 0x40f   :  { %6576 = vmatpush3.bf16.msra.mxu1 %v6575_v45 }
 0x410   :  { %6577 = vmatprep.subr.bf16.mxu1 %v10323_v18 }
 0x413   :  { %6579 = vmatpush3.bf16.msra.mxu1 %v6578_v46 }
 0x414   :  { %6580 = vmatprep.subr.bf16.mxu1 %v10323_v18 }
 0x417   :  { %6582 = vmatpush3.bf16.msra.mxu1 %v6581_v11 }
 0x418   :  { %6583 = vmatprep.subr.bf16.mxu1 %v10323_v18 }
 0x41b   :  { %6585 = vmatpush3.bf16.msra.mxu1 %v6584_v26 }
 0x4a6   :  { %v5443_v53 = vpop.f32.mrb[38].mxu0 }
 0x4a7   :  { %v5444_v39 = vpop.f32.mrb[39].mxu0 }
 0x4a8   :  { %v5445_v57 = vadd.f32 %v5444_v39, %v5443_v53 }
 0x4aa   :  { %v1511_v4 = vadd.f32 %v5445_v57, %v111_v51 }
 0x4d1   :  { %v5478_v30 = vpop.f32.mrb[38].mxu1 }
 0x4d2   :  { %v5479_v20 = vpop.f32.mrb[39].mxu1 }
 0x4d3   :  { %v5480_v33 = vadd.f32 %v5479_v20, %v5478_v30 }
 0x4d5   :  { %v1581_v25 = vadd.f32 %v5480_v33, %v1511_v4 }
 0x4d7   :  { %6046 = vmatmul.mubr.f32.vlgmr.msra.gmra.mrb[40].mxu0 %v1581_v25 }
 0x4d8   :  { %6085 = vmatprep.mubr.msk.f32.mxu0 %vm21_vm0, %v1733_v0 }
 0x5aa   :  { %v1654_v8 = vpop.f32.mrb[40].mxu0 }
 0x5ab   :  { %v1655_v10 = vadd.f32 %v5174_v1, %v1654_v8  ;;  %v6047_v19 = vpop.f32.mrb[41].mxu0 }
 0x5ad   :  { %v1658_v16 = vmax.f32 %v1655_v10, 0.0 }
 0x5af   :  { %6081 = vmatmul.mubr.f32.vlgmr.msra.gmra.mrb[40].mxu1 %v1658_v16 }
 0x5b0   :  { %6096 = vmatprep.mubr.msk.f32.mxu1 %vm21_vm0, %v1739_v32 }
 0x682   :  { %v1729_v38 = vpop.f32.mrb[40].mxu1 }
 0x683   :  { %v1730_v24 = vadd.f32 %v5175_v9, %v1729_v38  ;;  %v6082_v62 = vpop.f32.mrb[41].mxu1 }
 0x685   :  { %6083 = vmatprep.subr.mxu0 %v1730_v24 }
 0x686   :  { %6084 = vmatpush3.msra.mxu0 %v1730_v24 }
 0x687   :  { %6086 = vmatmul.mubr.msk.f32.vlgmr.msra.gmra.mrb[42].mxu0 %vm21_vm0, %v1734_v49 }
 0x688   :  { %6088 = vmatprep.mubr.msk.f32.mxu0 %vm21_vm0, %v1735_v40 }
 0x68b   :  { %6089 = vmatmul.mubr.msk.f32.gmra.mrb[44].mxu0 %vm21_vm0, %v1736_v52 }
 0x68c   :  { %6091 = vmatprep.mubr.msk.f32.mxu0 %vm21_vm0, %v1737_v28 }
 0x68f   :  { %6092 = vmatmul.mubr.msk.f32.gmra.mrb[46].mxu0 %vm21_vm0, %v1738_v34 }
 0x75a   :  { %v6087_v47 = vpop.f32.mrb[42].mxu0 }
 0x75b   :  { %v1874_v48 = vadd.f32 %v6087_v47, %v1744_v6  ;;  %v1868_v21 = vpop.f32.mrb[43].mxu0 }
 0x75c   :  { %v1869_v23 = vadd.f32 %v1868_v21, %v1743_v36 }
 0x75d   :  { %6094 = vmatprep.subr.mxu1 %v1874_v48 }
 0x75e   :  { %6095 = vmatpush3.msra.mxu1 %v1874_v48  ;;  %1897 = vxpose.xlu0.b32.start.end [1/1] (short) %v1869_v23, 128  ;;  %v6090_v7 = vpop.f32.mrb[44].mxu0 }
 0x75f   :  { %6097 = vmatmul.mubr.msk.f32.vlgmr.msra.gmra.mrb[42].mxu1 %vm21_vm0, %v1740_v55  ;;  %v1884_v56 = vadd.f32 %v6090_v7, %v1746_v37  ;;  %v1878_v3 = vpop.f32.mrb[45].mxu0 }
 0x760   :  { %6099 = vmatprep.mubr.msk.f32.mxu1 %vm21_vm0, %v1741_v44  ;;  %v1879_v13 = vadd.f32 %v1878_v3, %v1745_v15 }
 0x761   :  { %6128 = vmatprep.subr.mxu0 %v1884_v56 }
 0x762   :  { %6102 = vmatprep.subr.mxu1 %v1879_v13  ;;  %6129 = vmatpush3.msra.mxu0 %v1884_v56  ;;  %v6093_v12 = vpop.f32.mrb[46].mxu0 }
 0x763   :  { %6100 = vmatmul.mubr.msk.f32.gmra.mrb[44].mxu1 %vm21_vm0, %v1742_v43  ;;  %v1894_v31 = vadd.f32 %v6093_v12, %v1748_v27  ;;  %v1888_v58 = vpop.f32.mrb[47].mxu0 }
 0x764   :  { %6103 = vmatpush3.msra.mxu1 %v1879_v13  ;;  %v1889_v14 = vadd.f32 %v1888_v58, %v1747_v50 }
 0x765   :  { %6180 = vmatprep.subr.mxu0 %v1894_v31 }
 0x766   :  { %6154 = vmatprep.subr.mxu1 %v1889_v14 }
 0x7de   :  { %v1913_v60 = vpop.trf.xlu0 }
 0x7df   :  { %6104 = vmatprep.mubr.msk.f32.mxu1 %vm21_vm0, %v1913_v60  ;;  %6130 = vmatprep.mubr.msk.f32.mxu0 %vm21_vm0, %v1913_v60 }
 0x7e2   :  { %v1914_v42 = vpop.trf.xlu0 }
 0x7e3   :  { %6105 = vmatmul.mubr.msk.f32.vlgmr.msra.gmra.mrb[46].mxu1 %vm21_vm0, %v1914_v42  ;;  %6131 = vmatmul.mubr.msk.f32.vlgmr.msra.gmra.mrb[48].mxu0 %vm21_vm0, %v1914_v42 }
 0x7e4   :  { %6155 = vmatpush3.msra.mxu1 %v1889_v14  ;;  %6181 = vmatpush3.msra.mxu0 %v1894_v31 }
 0x7e6   :  { %v1915_v2 = vpop.trf.xlu0 }
 0x7e7   :  { %6107 = vmatprep.mubr.msk.f32.mxu1 %vm21_vm0, %v1915_v2  ;;  %6133 = vmatprep.mubr.msk.f32.mxu0 %vm21_vm0, %v1915_v2 }
 0x7ea   :  { %v1916_v35 = vpop.trf.xlu0 }
 0x7eb   :  { %6108 = vmatmul.mubr.msk.f32.gmra.mrb[48].mxu1 %vm21_vm0, %v1916_v35  ;;  %6134 = vmatmul.mubr.msk.f32.gmra.mrb[50].mxu0 %vm21_vm0, %v1916_v35 }
 0x7ee   :  { %v1917_v17 = vpop.trf.xlu0 }
 0x7ef   :  { %6110 = vmatprep.mubr.msk.f32.mxu1 %vm21_vm0, %v1917_v17  ;;  %6136 = vmatprep.mubr.msk.f32.mxu0 %vm21_vm0, %v1917_v17 }
 0x7f2   :  { %v1918_v29 = vpop.trf.xlu0 }
 0x7f3   :  { %6111 = vmatmul.mubr.msk.f32.gmra.mrb[50].mxu1 %vm21_vm0, %v1918_v29  ;;  %6137 = vmatmul.mubr.msk.f32.gmra.mrb[52].mxu0 %vm21_vm0, %v1918_v29 }
 0x7f6   :  { %v1919_v45 = vpop.trf.xlu0 }
 0x7f7   :  { %6113 = vmatprep.mubr.msk.f32.mxu1 %vm21_vm0, %v1919_v45  ;;  %6139 = vmatprep.mubr.msk.f32.mxu0 %vm21_vm0, %v1919_v45 }
 0x7fa   :  { %v1920_v59 = vpop.trf.xlu0 }
 0x7fb   :  { %6114 = vmatmul.mubr.msk.f32.gmra.mrb[52].mxu1 %vm21_vm0, %v1920_v59  ;;  %6140 = vmatmul.mubr.msk.f32.gmra.mrb[54].mxu0 %vm21_vm0, %v1920_v59 }
 0x7fe   :  { %v1921_v63 = vpop.trf.xlu0 }
 0x7ff   :  { %6116 = vmatprep.mubr.msk.f32.mxu1 %vm21_vm0, %v1921_v63  ;;  %6142 = vmatprep.mubr.msk.f32.mxu0 %vm21_vm0, %v1921_v63 }
 0x802   :  { %v1922_v46 = vpop.trf.xlu0 }
 0x803   :  { %6117 = vmatmul.mubr.msk.f32.gmra.mrb[54].mxu1 %vm21_vm0, %v1922_v46  ;;  %6143 = vmatmul.mubr.msk.f32.gmra.mrb[56].mxu0 %vm21_vm0, %v1922_v46 }
 0x806   :  { %v1923_v61 = vpop.trf.xlu0 }
 0x807   :  { %6119 = vmatprep.mubr.msk.f32.mxu1 %vm21_vm0, %v1923_v61  ;;  %6145 = vmatprep.mubr.msk.f32.mxu0 %vm21_vm0, %v1923_v61 }
 0x80a   :  { %v1924_v22 = vpop.trf.xlu0 }
 0x80b   :  { %6120 = vmatmul.mubr.msk.f32.gmra.mrb[56].mxu1 %vm21_vm0, %v1924_v22  ;;  %6146 = vmatmul.mubr.msk.f32.gmra.mrb[58].mxu0 %vm21_vm0, %v1924_v22 }
 0x80e   :  { %v1925_v11 = vpop.trf.xlu0 }
 0x80f   :  { %6122 = vmatprep.mubr.msk.f32.mxu1 %vm21_vm0, %v1925_v11  ;;  %6148 = vmatprep.mubr.msk.f32.mxu0 %vm21_vm0, %v1925_v11 }
 0x812   :  { %v1926_v53 = vpop.trf.xlu0 }
 0x813   :  { %6123 = vmatmul.mubr.msk.f32.gmra.mrb[58].mxu1 %vm21_vm0, %v1926_v53  ;;  %6149 = vmatmul.mubr.msk.f32.gmra.mrb[60].mxu0 %vm21_vm0, %v1926_v53 }
 0x816   :  { %v1927_v39 = vpop.trf.xlu0 }
 0x817   :  { %6125 = vmatprep.mubr.msk.f32.mxu1 %vm21_vm0, %v1927_v39  ;;  %6151 = vmatprep.mubr.msk.f32.mxu0 %vm21_vm0, %v1927_v39 }
 0x81a   :  { %v1928_v57 = vpop.trf.xlu0 }
 0x81b   :  { %6126 = vmatmul.mubr.msk.f32.gmra.mrb[60].mxu1 %vm21_vm0, %v1928_v57  ;;  %6152 = vmatmul.mubr.msk.f32.gmra.mrb[62].mxu0 %vm21_vm0, %v1928_v57 }
 0x81c   :  { %6156 = vmatprep.mubr.msk.f32.mxu1 %vm21_vm0, %v1913_v60  ;;  %6182 = vmatprep.mubr.msk.f32.mxu0 %vm21_vm0, %v1913_v60 }
 0x81f   :  { %6157 = vmatmul.mubr.msk.f32.vlgmr.msra.gmra.mrb[62].mxu1 %vm21_vm0, %v1914_v42  ;;  %6183 = vmatmul.mubr.msk.f32.vlgmr.msra.gmra.mrb[64].mxu0 %vm21_vm0, %v1914_v42 }
 0x820   :  { %6159 = vmatprep.mubr.msk.f32.mxu1 %vm21_vm0, %v1915_v2  ;;  %6185 = vmatprep.mubr.msk.f32.mxu0 %vm21_vm0, %v1915_v2 }
 0x823   :  { %6160 = vmatmul.mubr.msk.f32.gmra.mrb[64].mxu1 %vm21_vm0, %v1916_v35  ;;  %6186 = vmatmul.mubr.msk.f32.gmra.mrb[66].mxu0 %vm21_vm0, %v1916_v35 }
 0x824   :  { %6162 = vmatprep.mubr.msk.f32.mxu1 %vm21_vm0, %v1917_v17  ;;  %6188 = vmatprep.mubr.msk.f32.mxu0 %vm21_vm0, %v1917_v17 }
 0x827   :  { %6163 = vmatmul.mubr.msk.f32.gmra.mrb[66].mxu1 %vm21_vm0, %v1918_v29  ;;  %6189 = vmatmul.mubr.msk.f32.gmra.mrb[68].mxu0 %vm21_vm0, %v1918_v29 }
 0x828   :  { %6165 = vmatprep.mubr.msk.f32.mxu1 %vm21_vm0, %v1919_v45  ;;  %6191 = vmatprep.mubr.msk.f32.mxu0 %vm21_vm0, %v1919_v45 }
 0x82b   :  { %6166 = vmatmul.mubr.msk.f32.gmra.mrb[68].mxu1 %vm21_vm0, %v1920_v59  ;;  %6192 = vmatmul.mubr.msk.f32.gmra.mrb[70].mxu0 %vm21_vm0, %v1920_v59 }
 0x82c   :  { %6168 = vmatprep.mubr.msk.f32.mxu1 %vm21_vm0, %v1921_v63  ;;  %6194 = vmatprep.mubr.msk.f32.mxu0 %vm21_vm0, %v1921_v63 }
 0x82f   :  { %6169 = vmatmul.mubr.msk.f32.gmra.mrb[70].mxu1 %vm21_vm0, %v1922_v46  ;;  %6195 = vmatmul.mubr.msk.f32.gmra.mrb[72].mxu0 %vm21_vm0, %v1922_v46 }
 0x830   :  { %6171 = vmatprep.mubr.msk.f32.mxu1 %vm21_vm0, %v1923_v61  ;;  %6197 = vmatprep.mubr.msk.f32.mxu0 %vm21_vm0, %v1923_v61 }
 0x832   :  { %v6098_v51 = vpop.f32.mrb[42].mxu1 }
 0x833   :  { %6172 = vmatmul.mubr.msk.f32.gmra.mrb[72].mxu1 %vm21_vm0, %v1924_v22  ;;  %6198 = vmatmul.mubr.msk.f32.gmra.mrb[74].mxu0 %vm21_vm0, %v1924_v22  ;;  %v8395_v30 = vpop.f32.mrb[43].mxu1 }
 0x834   :  { %10485 = vst [vmem:[#allocation8_spill] sm:$0xff] %v8395_v30  ;;  %6174 = vmatprep.mubr.msk.f32.mxu1 %vm21_vm0, %v1925_v11  ;;  %6200 = vmatprep.mubr.msk.f32.mxu0 %vm21_vm0, %v1925_v11 }
 0x836   :  { %v6101_v20 = vpop.f32.mrb[44].mxu1 }
 0x837   :  { %6175 = vmatmul.mubr.msk.f32.gmra.mrb[74].mxu1 %vm21_vm0, %v1926_v53  ;;  %6201 = vmatmul.mubr.msk.f32.gmra.mrb[76].mxu0 %vm21_vm0, %v1926_v53  ;;  %v8401_v4 = vpop.f32.mrb[45].mxu1 }
 0x838   :  { %10486 = vst [vmem:[#allocation7_spill] sm:$0xff] %v8401_v4  ;;  %6177 = vmatprep.mubr.msk.f32.mxu1 %vm21_vm0, %v1927_v39  ;;  %6203 = vmatprep.mubr.msk.f32.mxu0 %vm21_vm0, %v1927_v39 }
 0x83b   :  { %6178 = vmatmul.mubr.msk.f32.gmra.mrb[76].mxu1 %vm21_vm0, %v1928_v57  ;;  %6204 = vmatmul.mubr.msk.f32.gmra.mrb[78].mxu0 %vm21_vm0, %v1928_v57 }
 0x83c   :  { %3146 = vmatprep.mubr.f32.mxu1 %v6098_v51  ;;  %3216 = vmatprep.mubr.f32.mxu0 %v6101_v20 }
 0x8b6   :  { %v8407_v33 = vpop.f32.mrb[46].mxu1  ;;  %v8409_v25 = vpop.f32.mrb[48].mxu0 }
 0x8b7   :  { %v8411_v41 = vpop.f32.mrb[47].mxu1  ;;  %v8413_v54 = vpop.f32.mrb[49].mxu0 }
 0x8be   :  { %v8415_v26 = vpop.f32.mrb[48].mxu1  ;;  %v8417_v1 = vpop.f32.mrb[50].mxu0 }
 0x8bf   :  { %v8419_v8 = vpop.f32.mrb[49].mxu1  ;;  %v8421_v10 = vpop.f32.mrb[51].mxu0 }
 0x8c6   :  { %v8423_v19 = vpop.f32.mrb[50].mxu1  ;;  %v8425_v16 = vpop.f32.mrb[52].mxu0 }
 0x8c7   :  { %v2220_v0 = vmax.f32 %v8407_v33, %v8423_v19  ;;  %v2472_v9 = vmax.f32 %v8409_v25, %v8425_v16  ;;  %v8431_v38 = vpop.f32.mrb[51].mxu1  ;;  %v8433_v24 = vpop.f32.mrb[53].mxu0 }
 0x8c8   :  { %v2219_v62 = vmax.f32 %v8411_v41, %v8431_v38  ;;  %v2471_v49 = vmax.f32 %v8413_v54, %v8433_v24 }
 0x8ce   :  { %v8439_v40 = vpop.f32.mrb[52].mxu1  ;;  %v8441_v52 = vpop.f32.mrb[54].mxu0 }
 0x8cf   :  { %v2222_v28 = vmax.f32 %v8415_v26, %v8439_v40  ;;  %v2474_v34 = vmax.f32 %v8417_v1, %v8441_v52  ;;  %v8447_v32 = vpop.f32.mrb[53].mxu1  ;;  %v8449_v6 = vpop.f32.mrb[55].mxu0 }
 0x8d0   :  { %v2221_v36 = vmax.f32 %v8419_v8, %v8447_v32  ;;  %v2473_v47 = vmax.f32 %v8421_v10, %v8449_v6 }
 0x8d6   :  { %v8455_v48 = vpop.f32.mrb[54].mxu1  ;;  %v8457_v21 = vpop.f32.mrb[56].mxu0 }
 0x8d7   :  { %v2224_v23 = vmax.f32 %v2220_v0, %v8455_v48  ;;  %v2476_v55 = vmax.f32 %v2472_v9, %v8457_v21  ;;  %v8461_v37 = vpop.f32.mrb[55].mxu1  ;;  %v8463_v44 = vpop.f32.mrb[57].mxu0 }
 0x8d8   :  { %v2223_v15 = vmax.f32 %v2219_v62, %v8461_v37  ;;  %v2475_v7 = vmax.f32 %v2471_v49, %v8463_v44 }
 0x8de   :  { %v8467_v56 = vpop.f32.mrb[56].mxu1  ;;  %v8469_v3 = vpop.f32.mrb[58].mxu0 }
 0x8df   :  { %10487 = vst [vmem:[#allocation10_spill] sm:$0xff] %v8469_v3  ;;  %v2226_v13 = vmax.f32 %v2222_v28, %v8467_v56  ;;  %v2478_v43 = vmax.f32 %v2474_v34, %v8469_v3  ;;  %v8473_v27 = vpop.f32.mrb[57].mxu1  ;;  %v8475_v12 = vpop.f32.mrb[59].mxu0 }
 0x8e0   :  { %10488 = vst [vmem:[#allocation9_spill] sm:$0xff] %v8475_v12  ;;  %v2225_v50 = vmax.f32 %v2221_v36, %v8473_v27  ;;  %v2477_v31 = vmax.f32 %v2473_v47, %v8475_v12 }
 0x8e6   :  { %v8479_v58 = vpop.f32.mrb[58].mxu1  ;;  %v8481_v14 = vpop.f32.mrb[60].mxu0 }
 0x8e7   :  { %10489 = vst [vmem:[#allocation12_spill] sm:$0xff] %v8481_v14  ;;  %v2228_v60 = vmax.f32 %v2224_v23, %v8479_v58  ;;  %v2480_v42 = vmax.f32 %v2476_v55, %v8481_v14  ;;  %v8485_v2 = vpop.f32.mrb[59].mxu1  ;;  %v8487_v35 = vpop.f32.mrb[61].mxu0 }
 0x8e8   :  { %10490 = vst [vmem:[#allocation11_spill] sm:$0xff] %v8487_v35  ;;  %v2227_v17 = vmax.f32 %v2223_v15, %v8485_v2  ;;  %v2479_v29 = vmax.f32 %v2475_v7, %v8487_v35 }
 0x8ea   :  { %v2231_v45 = vmax.f32 %v2227_v17, %v2228_v60  ;;  %v2483_v59 = vmax.f32 %v2479_v29, %v2480_v42 }
 0x8ee   :  { %v8491_v63 = vpop.f32.mrb[60].mxu1  ;;  %v8493_v46 = vpop.f32.mrb[62].mxu0 }
 0x8ef   :  { %10491 = vst [vmem:[#allocation14_spill] sm:$0xff] %v8493_v46  ;;  %v2230_v61 = vmax.f32 %v2226_v13, %v8491_v63  ;;  %v2482_v22 = vmax.f32 %v2478_v43, %v8493_v46  ;;  %v8497_v11 = vpop.f32.mrb[61].mxu1  ;;  %v8499_v53 = vpop.f32.mrb[63].mxu0 }
 0x8f0   :  { %10492 = vst [vmem:[#allocation13_spill] sm:$0xff] %v8499_v53  ;;  %v2229_v39 = vmax.f32 %v2225_v50, %v8497_v11  ;;  %v2481_v57 = vmax.f32 %v2477_v31, %v8499_v53 }
 0x8f2   :  { %v2232_v51 = vmax.f32 %v2229_v39, %v2230_v61  ;;  %v2484_v20 = vmax.f32 %v2481_v57, %v2482_v22  ;;  %v8503_v0 = vpop.f32.mrb[62].mxu1  ;;  %v8505_v9 = vpop.f32.mrb[64].mxu0 }
 0x8f3   :  { %v8507_v62 = vpop.f32.mrb[63].mxu1  ;;  %v8509_v49 = vpop.f32.mrb[65].mxu0 }
 0x8f4   :  { %v2233_v28 = vmax.f32 %v2231_v45, %v2232_v51  ;;  %v2485_v34 = vmax.f32 %v2483_v59, %v2484_v20 }
 0x8f6   :  { %v2234_v36 = vrot.slane %v2233_v28, 4  ;;  %v2486_v47 = vrot.slane %v2485_v34, 4  ;;  %v8511_v23 = vpop.f32.mrb[64].mxu1  ;;  %v8513_v55 = vpop.f32.mrb[66].mxu0 }
 0x8f7   :  { %v8515_v15 = vpop.f32.mrb[65].mxu1  ;;  %v8517_v7 = vpop.f32.mrb[67].mxu0 }
 0x8f8   :  { %v2235_v13 = vmax.f32 %v2233_v28, %v2234_v36  ;;  %v2487_v43 = vmax.f32 %v2485_v34, %v2486_v47 }
 0x8fa   :  { %v2236_v50 = vrot.slane %v2235_v13, 2  ;;  %v2488_v31 = vrot.slane %v2487_v43, 2  ;;  %v8519_v60 = vpop.f32.mrb[66].mxu1  ;;  %v8521_v42 = vpop.f32.mrb[68].mxu0 }
 0x8fb   :  { %v8527_v45 = vpop.f32.mrb[67].mxu1  ;;  %v8529_v59 = vpop.f32.mrb[69].mxu0 }
 0x8fc   :  { %v2237_v61 = vmax.f32 %v2235_v13, %v2236_v50  ;;  %v2489_v22 = vmax.f32 %v2487_v43, %v2488_v31 }
 0x8fe   :  { %v2238_v51 = vrot.slane %v2237_v61, 1  ;;  %v2490_v20 = vrot.slane %v2489_v22, 1  ;;  %v8535_v28 = vpop.f32.mrb[68].mxu1  ;;  %v8537_v34 = vpop.f32.mrb[70].mxu0 }
 0x8ff   :  { %v8543_v13 = vpop.f32.mrb[69].mxu1  ;;  %v8545_v43 = vpop.f32.mrb[71].mxu0 }
 0x900   :  { %v8547_v50 = vmax.f32 %v2237_v61, %v2238_v51  ;;  %v8553_v57 = vmax.f32 %v2489_v22, %v2490_v20 }
 0x902   :  { %v2240_v36 = vsub.f32 %v8411_v41, %v8547_v50  ;;  %v2241_v47 = vsub.f32 %v8407_v33, %v8547_v50  ;;  %v2242_v39 = vsub.f32 %v8419_v8, %v8547_v50  ;;  %v2243_v61 = vsub.f32 %v8415_v26, %v8547_v50  ;;  %v8563_v51 = vpop.f32.mrb[70].mxu1  ;;  %v8565_v31 = vpop.f32.mrb[72].mxu0 }
 0x903   :  { %10493 = vst [vmem:[#allocation5_spill] sm:$0xff] %v8565_v31  ;;  %v2244_v22 = vsub.f32 %v8431_v38, %v8547_v50  ;;  %v2245_v20 = vsub.f32 %v8423_v19, %v8547_v50  ;;  %v2246_v41 = vsub.f32 %v8447_v32, %v8547_v50  ;;  %v2247_v33 = vsub.f32 %v8439_v40, %v8547_v50  ;;  %v8575_v8 = vpop.f32.mrb[71].mxu1  ;;  %v8577_v18 = vpop.f32.mrb[73].mxu0 }
 0x904   :  { %10494 = vst [vmem:[#allocation16_spill] sm:$0xff] %v8577_v18  ;;  %v2248_v26 = vsub.f32 %v8461_v37, %v8547_v50  ;;  %v2249_v29 = vsub.f32 %v8455_v48, %v8547_v50  ;;  %v2250_v38 = vsub.f32 %v8473_v27, %v8547_v50  ;;  %v2251_v19 = vsub.f32 %v8467_v56, %v8547_v50 }
 0x905   :  { %v2252_v32 = vsub.f32 %v8485_v2, %v8547_v50  ;;  %v2253_v40 = vsub.f32 %v8479_v58, %v8547_v50  ;;  %v2256_v4 = vmul.f32 1.442695, %v2240_v36  ;;  %v2258_v48 = vmul.f32 1.442695, %v2241_v47 }
 0x906   :  { %v2492_v27 = vsub.f32 %v8413_v54, %v8553_v57  ;;  %v2260_v5 = vmul.f32 1.442695, %v2242_v39  ;;  %v2493_v56 = vsub.f32 %v8409_v25, %v8553_v57  ;;  %v2262_v2 = vmul.f32 1.442695, %v2243_v61  ;;  %v8603_v47 = vpop.f32.mrb[72].mxu1  ;;  %v8605_v37 = vpop.f32.mrb[74].mxu0 }
 0x907   :  { %6950 = vpow2.f32 %v2256_v4  ;;  %v2264_v30 = vmul.f32 1.442695, %v2244_v22  ;;  %v2266_v58 = vmul.f32 1.442695, %v2245_v20  ;;  %v2494_v17 = vsub.f32 %v8421_v10, %v8553_v57  ;;  %10495 = vst [vmem:[#allocation15_spill] sm:$0xff] %v8605_v37  ;;  %v8613_v39 = vpop.f32.mrb[73].mxu1 }
 0x908   :  { %6952 = vpow2.f32 %v2258_v48  ;;  %v2495_v36 = vsub.f32 %v8417_v1, %v8553_v57  ;;  %v2268_v54 = vmul.f32 1.442695, %v2246_v41  ;;  %v2496_v25 = vsub.f32 %v8433_v24, %v8553_v57  ;;  %v8615_v10 = vpop.f32.mrb[75].mxu0 }
 0x909   :  { %6954 = vpow2.f32 %v2260_v5  ;;  %10496 = vst [vmem:[#allocation17_spill] sm:$0xff] %v8615_v10  ;;  %v2270_v41 = vmul.f32 1.442695, %v2247_v33  ;;  %v2272_v3 = vmul.f32 1.442695, %v2248_v26 }
 0x90a   :  { %6956 = vpow2.f32 %v2262_v2  ;;  %v8623_v22 = vpop.f32.mrb[74].mxu1  ;;  %v8625_v20 = vpop.f32.mrb[76].mxu0  ;;  %v2274_v1 = vmul.f32 1.442695, %v2249_v29  ;;  %v2276_v24 = vmul.f32 1.442695, %v2250_v38  ;;  %v10500_v38 = vmax.f32 %v8503_v0, %v8519_v60 }
 0x90b   :  { %v8633_v5 = vpop.f32.mrb[75].mxu1  ;;  %v8635_v61 = vpop.f32.mrb[77].mxu0  ;;  %6958 = vpow2.f32 %v2264_v30  ;;  %v2278_v14 = vmul.f32 1.442695, %v2251_v19  ;;  %v2280_v12 = vmul.f32 1.442695, %v2252_v32 }
 0x90c   :  { %6960 = vpow2.f32 %v2266_v58  ;;  %v2282_v33 = vmul.f32 1.442695, %v2253_v40  ;;  %v2508_v46 = vmul.f32 1.442695, %v2492_v27  ;;  %v2510_v58 = vmul.f32 1.442695, %v2493_v56 }
 0x90d   :  { %6962 = vpow2.f32 %v2268_v54  ;;  %v2512_v54 = vmul.f32 1.442695, %v2494_v17  ;;  %v2728_v19 = vmax.f32 %v10500_v38, %v8563_v51  ;;  %v2514_v32 = vmul.f32 1.442695, %v2495_v36 }
 0x90e   :  { %v8643_v4 = vpop.f32.mrb[76].mxu1  ;;  %v8645_v2 = vpop.f32.mrb[78].mxu0  ;;  %6964 = vpow2.f32 %v2270_v41  ;;  %v10501_v40 = vmax.f32 %v8505_v9, %v8521_v42  ;;  %v10502_v41 = vmax.f32 %v8507_v62, %v8527_v45  ;;  %v2516_v17 = vmul.f32 1.442695, %v2496_v25 }
 0x90f   :  { %6966 = vpow2.f32 %v2272_v3  ;;  %v8653_v53 = vpop.f32.mrb[77].mxu1  ;;  %v8655_v26 = vpop.f32.mrb[79].mxu0  ;;  %v10504_v38 = vmax.f32 %v8509_v49, %v8529_v59  ;;  %v10505_v36 = vmax.f32 %v8511_v23, %v8535_v28  ;;  %v10507_v25 = vmax.f32 %v8515_v15, %v8543_v13 }
 0x910   :  { %6968 = vpow2.f32 %v2274_v1  ;;  %v2980_v27 = vmax.f32 %v10501_v40, %v8565_v31  ;;  %v2727_v1 = vmax.f32 %v10502_v41, %v8575_v8  ;;  %v10506_v40 = vmax.f32 %v8513_v55, %v8537_v34 }
 0x911   :  { %v8647_v35 = vpop.eup %6950  ;;  %6970 = vpow2.f32 %v2508_v46 }
 0x912   :  { %10497 = vst [vmem:[#allocation18_spill] sm:$0xff] %v8647_v35  ;;  %v8649_v30 = vpop.eup %6952  ;;  %6972 = vpow2.f32 %v2510_v58 }
 0x913   :  { %10498 = vst [vmem:[#allocation19_spill] sm:$0xff] %v8649_v30  ;;  %v2288_v48 = vadd.f32 %v8649_v30, %v8647_v35  ;;  %v8657_v29 = vpop.eup %6954  ;;  %v2979_v30 = vmax.f32 %v10504_v38, %v8577_v18  ;;  %v2729_v35 = vmax.f32 %v10507_v25, %v8613_v39  ;;  %v10508_v38 = vmax.f32 %v8517_v7, %v8545_v43 }
 0x914   :  { %10499 = vst [vmem:[#allocation20_spill] sm:$0xff] %v8657_v29  ;;  %v8672_v56 = vpop.eup %6956  ;;  %6974 = vpow2.f32 %v2276_v24 }
 0x915   :  { %v2289_v3 = vadd.f32 %v8657_v29, %v2288_v48  ;;  %10503 = vst [vmem:[#allocation6_spill] sm:$0xff] %v8672_v56  ;;  %v2730_v48 = vmax.f32 %v10505_v36, %v8603_v47  ;;  %v2982_v29 = vmax.f32 %v10506_v40, %v8605_v37  ;;  %v2981_v31 = vmax.f32 %v10508_v38, %v8615_v10  ;;  %v8695_v18 = vpop.eup %6958 }
 0x916   :  { %v2732_v36 = vmax.f32 %v2728_v19, %v8623_v22  ;;  %v2984_v40 = vmax.f32 %v2980_v27, %v8625_v20  ;;  %v8703_v37 = vpop.eup %6960  ;;  %6976 = vpow2.f32 %v2512_v54  ;;  %v2733_v58 = vmax.f32 %v2729_v35, %v8653_v53 }
 0x917   :  { %v2290_v41 = vadd.f32 %v8672_v56, %v2289_v3  ;;  %v2731_v3 = vmax.f32 %v2727_v1, %v8633_v5  ;;  %v2983_v56 = vmax.f32 %v2979_v30, %v8635_v61  ;;  %v2734_v25 = vmax.f32 %v2730_v48, %v8643_v4  ;;  %v8707_v19 = vpop.eup %6962 }
 0x918   :  { %v2986_v10 = vmax.f32 %v2982_v29, %v8645_v2  ;;  %6978 = vpow2.f32 %v2278_v14  ;;  %v2985_v1 = vmax.f32 %v2981_v31, %v8655_v26  ;;  %v10509_v30 = vsub.f32 %v8425_v16, %v8553_v57 }
 0x919   :  { %v2291_v46 = vadd.f32 %v8695_v18, %v2290_v41  ;;  %v2735_v38 = vmax.f32 %v2731_v3, %v2732_v36  ;;  %v2987_v24 = vmax.f32 %v2983_v56, %v2984_v40  ;;  %v8711_v41 = vpop.eup %6964  ;;  %6980 = vpow2.f32 %v2514_v32 }
 0x91a   :  { %v2518_v54 = vmul.f32 1.442695, %v10509_v30  ;;  %v2736_v48 = vmax.f32 %v2733_v58, %v2734_v25  ;;  %v8716_v36 = vpop.eup %6966  ;;  %6982 = vpow2.f32 %v2280_v12  ;;  %v10510_v35 = vsub.f32 %v8497_v11, %v8547_v50 }
 0x91b   :  { %v2292_v27 = vadd.f32 %v8703_v37, %v2291_v46  ;;  %v2988_v56 = vmax.f32 %v2985_v1, %v2986_v10  ;;  %v8722_v40 = vpop.eup %6968  ;;  %6984 = vpow2.f32 %v2516_v17  ;;  %v10511_v31 = vsub.f32 %v8449_v6, %v8553_v57 }
 0x91c   :  { %v2284_v14 = vmul.f32 1.442695, %v10510_v35  ;;  %v2737_v16 = vmax.f32 %v2735_v38, %v2736_v48  ;;  %6986 = vpow2.f32 %v2282_v33  ;;  %v10512_v3 = vsub.f32 %v8491_v63, %v8547_v50  ;;  %v8734_v17 = vpop.eup %6970 }
 0x91d   :  { %v2293_v29 = vadd.f32 %v8707_v19, %v2292_v27  ;;  %v2520_v32 = vmul.f32 1.442695, %v10511_v31  ;;  %v2989_v11 = vmax.f32 %v2987_v24, %v2988_v56  ;;  %6988 = vpow2.f32 %v2518_v54  ;;  %v8740_v50 = vpop.eup %6972  ;;  %v10518_v56 = vld [vmem:[#allocation10_spill] sm:$0xff] }
 0x91e   :  { %v2286_v12 = vmul.f32 1.442695, %v10512_v3  ;;  %v10513_v10 = vsub.f32 %v8441_v52, %v8553_v57  ;;  %v2738_v58 = vrot.slane %v2737_v16, 4  ;;  %6990 = vpow2.f32 %v2284_v14  ;;  %v10516_v52 = vld [vmem:[#allocation9_spill] sm:$0xff]  ;;  %v8748_v48 = vpop.eup %6974 }
 0x91f   :  { %v2294_v46 = vadd.f32 %v8711_v41, %v2293_v29  ;;  %v10514_v33 = vsub.f32 %v8463_v44, %v8553_v57  ;;  %v2990_v63 = vrot.slane %v2989_v11, 4  ;;  %6992 = vpow2.f32 %v2520_v32  ;;  %v10520_v32 = vld [vmem:[#allocation11_spill] sm:$0xff] }
 0x920   :  { %v2522_v25 = vmul.f32 1.442695, %v10513_v10  ;;  %v10515_v27 = vsub.f32 %v8457_v21, %v8553_v57  ;;  %v10517_v1 = vsub.f32 %v10516_v52, %v8553_v57  ;;  %v2739_v54 = vmax.f32 %v2737_v16, %v2738_v58  ;;  %v8753_v29 = vpop.eup %6976 }
 0x921   :  { %v2295_v6 = vadd.f32 %v8716_v36, %v2294_v46  ;;  %v2524_v38 = vmul.f32 1.442695, %v10514_v33  ;;  %6994 = vpow2.f32 %v2286_v12  ;;  %v2540_v44 = vadd.f32 %v8740_v50, %v8734_v17 }
 0x922   :  { %v2526_v24 = vmul.f32 1.442695, %v10515_v27  ;;  %v2528_v30 = vmul.f32 1.442695, %v10517_v1  ;;  %v2991_v14 = vmax.f32 %v2989_v11, %v2990_v63  ;;  %6996 = vpow2.f32 %v2522_v25  ;;  %v8761_v10 = vpop.eup %6978  ;;  %v10523_v25 = vld [vmem:[#allocation12_spill] sm:$0xff]  ;;  %v10525_v27 = vld [vmem:[#allocation13_spill] sm:$0xff] }
 0x923   :  { %v2296_v35 = vadd.f32 %v8722_v40, %v2295_v6  ;;  %v10519_v21 = vsub.f32 %v10518_v56, %v8553_v57  ;;  %v10521_v3 = vsub.f32 %v10520_v32, %v8553_v57  ;;  %v2740_v46 = vrot.slane %v2739_v54, 2  ;;  %v8765_v6 = vpop.eup %6980 }
 0x924   :  { %6998 = vpow2.f32 %v2524_v38  ;;  %v2541_v58 = vadd.f32 %v8753_v29, %v2540_v44  ;;  %v2992_v11 = vrot.slane %v2991_v14, 2  ;;  %10522 = vst [vmem:[#allocation9_spill] sm:$0xff] %v8765_v6  ;;  %v10524_v33 = vsub.f32 %v10523_v25, %v8553_v57 }
 0x925   :  { %v2530_v31 = vmul.f32 1.442695, %v10519_v21  ;;  %v2532_v16 = vmul.f32 1.442695, %v10521_v3  ;;  %v2297_v12 = vadd.f32 %v8748_v48, %v2296_v35  ;;  %7000 = vpow2.f32 %v2526_v24  ;;  %v8773_v21 = vpop.eup %6982 }
 0x926   :  { %v2534_v63 = vmul.f32 1.442695, %v10524_v33  ;;  %v10526_v52 = vsub.f32 %v10525_v27, %v8553_v57  ;;  %v2741_v56 = vmax.f32 %v2739_v54, %v2740_v46  ;;  %7002 = vpow2.f32 %v2528_v30  ;;  %v8777_v32 = vpop.eup %6984 }
 0x927   :  { %v2298_v35 = vadd.f32 %v8761_v10, %v2297_v12  ;;  %v2542_v38 = vadd.f32 %v8765_v6, %v2541_v58  ;;  %v2993_v44 = vmax.f32 %v2991_v14, %v2992_v11  ;;  %10527 = vst [vmem:[#allocation10_spill] sm:$0xff] %v8777_v32  ;;  %7004 = vpow2.f32 %v2530_v31  ;;  %v8779_v3 = vpop.eup %6986  ;;  %v10529_v12 = vld [vmem:[#allocation14_spill] sm:$0xff] }
 0x928   :  { %v2536_v1 = vmul.f32 1.442695, %v10526_v52  ;;  %v2742_v24 = vrot.slane %v2741_v56, 1  ;;  %7006 = vpow2.f32 %v2532_v16  ;;  %v8783_v46 = vpop.eup %6988  ;;  %v10530_v30 = vsub.f32 %v10529_v12, %v8553_v57 }
 0x929   :  { %v2299_v25 = vadd.f32 %v8773_v21, %v2298_v35  ;;  %v2543_v33 = vadd.f32 %v8777_v32, %v2542_v38  ;;  %v2994_v54 = vrot.slane %v2993_v44, 1  ;;  %10528 = vst [vmem:[#allocation11_spill] sm:$0xff] %v8783_v46  ;;  %7008 = vpow2.f32 %v2534_v63  ;;  %v8790_v11 = vpop.eup %6990 }
 0x92a   :  { %v2538_v58 = vmul.f32 1.442695, %v10530_v30  ;;  %v8788_v14 = vmax.f32 %v2741_v56, %v2742_v24  ;;  %7010 = vpow2.f32 %v2536_v1  ;;  %v8796_v52 = vpop.eup %6992 }
 0x92b   :  { %v2300_v31 = vadd.f32 %v8779_v3, %v2299_v25  ;;  %v2544_v27 = vadd.f32 %v8783_v46, %v2543_v33  ;;  %v8794_v16 = vmax.f32 %v2993_v44, %v2994_v54  ;;  %10531 = vst [vmem:[#allocation12_spill] sm:$0xff] %v8796_v52  ;;  %v8806_v38 = vpop.eup %6994 }
 0x92c   :  { %v2744_v63 = vsub.f32 %v8507_v62, %v8788_v14  ;;  %v2745_v57 = vsub.f32 %v8503_v0, %v8788_v14  ;;  %v2746_v56 = vsub.f32 %v8515_v15, %v8788_v14  ;;  %v2747_v35 = vsub.f32 %v8511_v23, %v8788_v14  ;;  %v8814_v25 = vpop.eup %6996 }
 0x92d   :  { %v2301_v1 = vadd.f32 %v8790_v11, %v2300_v31  ;;  %v2545_v44 = vadd.f32 %v8796_v52, %v2544_v27  ;;  %v2748_v24 = vsub.f32 %v8527_v45, %v8788_v14  ;;  %v2749_v62 = vsub.f32 %v8519_v60, %v8788_v14  ;;  %10532 = vst [vmem:[#allocation13_spill] sm:$0xff] %v8814_v25 }
 0x92e   :  { %v2750_v0 = vsub.f32 %v8543_v13, %v8788_v14  ;;  %v2751_v23 = vsub.f32 %v8535_v28, %v8788_v14  ;;  %v2752_v15 = vsub.f32 %v8575_v8, %v8788_v14  ;;  %v2753_v33 = vsub.f32 %v8563_v51, %v8788_v14  ;;  %v8824_v54 = vpop.eup %6998 }
 0x92f   :  { %10533 = vst [vmem:[#allocation14_spill] sm:$0xff] %v8824_v54  ;;  %v2302_v45 = vadd.f32 %v8806_v38, %v2301_v1  ;;  %v2546_v60 = vadd.f32 %v8814_v25, %v2545_v44  ;;  %v2754_v12 = vsub.f32 %v8613_v39, %v8788_v14  ;;  %v2755_v13 = vsub.f32 %v8603_v47, %v8788_v14  ;;  %v8832_v30 = vpop.eup %7000 }
 0x930   :  { %v2756_v28 = vsub.f32 %v8633_v5, %v8788_v14  ;;  %v2757_v51 = vsub.f32 %v8623_v22, %v8788_v14  ;;  %v2758_v8 = vsub.f32 %v8653_v53, %v8788_v14  ;;  %v8842_v27 = vpop.eup %7002  ;;  %v2760_v47 = vmul.f32 1.442695, %v2744_v63 }
 0x931   :  { %v2303_v39 = vrot.slane %v2302_v45, 4  ;;  %v2547_v1 = vadd.f32 %v8824_v54, %v2546_v60  ;;  %v2762_v44 = vmul.f32 1.442695, %v2745_v57  ;;  %v8845_v25 = vpop.eup %7004  ;;  %7012 = vpow2.f32 %v2538_v58 }
 0x932   :  { %v2764_v5 = vmul.f32 1.442695, %v2746_v56  ;;  %v2766_v52 = vmul.f32 1.442695, %v2747_v35  ;;  %v2996_v22 = vsub.f32 %v8509_v49, %v8794_v16  ;;  %v8849_v46 = vpop.eup %7006  ;;  %7014 = vpow2.f32 %v2760_v47 }
 0x933   :  { %v2304_v53 = vadd.f32 %v2303_v39, %v2302_v45  ;;  %v2548_v31 = vadd.f32 %v8832_v30, %v2547_v1  ;;  %v2768_v32 = vmul.f32 1.442695, %v2748_v24  ;;  %v8852_v6 = vpop.eup %7008  ;;  %7016 = vpow2.f32 %v2762_v44 }
 0x934   :  { %v2770_v63 = vmul.f32 1.442695, %v2749_v62  ;;  %v2772_v57 = vmul.f32 1.442695, %v2750_v0  ;;  %v8854_v60 = vpop.eup %7010  ;;  %7018 = vpow2.f32 %v2764_v5  ;;  %v2774_v35 = vmul.f32 1.442695, %v2751_v23 }
 0x935   :  { %v2305_v58 = vrot.slane %v2304_v53, 2  ;;  %v2549_v56 = vadd.f32 %v8842_v27, %v2548_v31  ;;  %7020 = vpow2.f32 %v2766_v52  ;;  %v2776_v49 = vmul.f32 1.442695, %v2752_v15 }
 0x936   :  { %v2778_v54 = vmul.f32 1.442695, %v2753_v33  ;;  %v2780_v45 = vmul.f32 1.442695, %v2754_v12  ;;  %7022 = vpow2.f32 %v2768_v32  ;;  %v2782_v24 = vmul.f32 1.442695, %v2755_v13 }
 0x937   :  { %v2306_v39 = vadd.f32 %v2305_v58, %v2304_v53  ;;  %v2550_v1 = vadd.f32 %v8845_v25, %v2549_v56  ;;  %7024 = vpow2.f32 %v2770_v63  ;;  %v2784_v47 = vmul.f32 1.442695, %v2756_v28  ;;  %v10536_v53 = vld [vmem:[#allocation17_spill] sm:$0xff]  ;;  %v10537_v63 = vld [vmem:[#allocation15_spill] sm:$0xff] }
 0x938   :  { %v2786_v62 = vmul.f32 1.442695, %v2757_v51  ;;  %v2997_v0 = vsub.f32 %v8505_v9, %v8794_v16  ;;  %v2788_v5 = vmul.f32 1.442695, %v2758_v8  ;;  %v2998_v52 = vsub.f32 %v8517_v7, %v8794_v16 }
 0x939   :  { %v2307_v44 = vrot.slane %v2306_v39, 1  ;;  %v2551_v31 = vadd.f32 %v8849_v46, %v2550_v1  ;;  %7026 = vpow2.f32 %v2772_v57  ;;  %v2999_v23 = vsub.f32 %v8513_v55, %v8794_v16  ;;  %v10534_v55 = vld [vmem:[#allocation16_spill] sm:$0xff]  ;;  %v10539_v57 = vld [vmem:[#allocation18_spill] sm:$0xff] }
 0x93a   :  { %v3000_v32 = vsub.f32 %v8529_v59, %v8794_v16  ;;  %v3001_v15 = vsub.f32 %v8521_v42, %v8794_v16  ;;  %7028 = vpow2.f32 %v2774_v35  ;;  %v3002_v12 = vsub.f32 %v8545_v43, %v8794_v16  ;;  %v10535_v59 = vld [vmem:[#allocation5_spill] sm:$0xff] }
 0x93b   :  { %v2308_v33 = vadd.f32 %v2307_v44, %v2306_v39  ;;  %v2552_v9 = vadd.f32 %v8852_v6, %v2551_v31  ;;  %v8872_v13 = vpop.eup %7012  ;;  %7030 = vpow2.f32 %v2776_v49  ;;  %v3003_v7 = vsub.f32 %v8537_v34, %v8794_v16 }
 0x93c   :  { %v3004_v28 = vsub.f32 %v10534_v55, %v8794_v16  ;;  %v3005_v51 = vsub.f32 %v10535_v59, %v8794_v16  ;;  %v8880_v42 = vpop.eup %7014  ;;  %v3012_v31 = vmul.f32 1.442695, %v2996_v22  ;;  %v3014_v59 = vmul.f32 1.442695, %v2997_v0 }
 0x93d   :  { %7032 = vrcp.f32 %v2308_v33  ;;  %v2553_v8 = vadd.f32 %v8854_v60, %v2552_v9  ;;  %v8887_v58 = vpop.eup %7016 }
 0x93e   :  { %7034 = vpow2.f32 %v2778_v54  ;;  %v8895_v49 = vpop.eup %7018  ;;  %v2792_v1 = vadd.f32 %v8887_v58, %v8880_v42 }
 0x93f   :  { %v2554_v39 = vadd.f32 %v8872_v13, %v2553_v8  ;;  %7036 = vpow2.f32 %v2780_v45  ;;  %v8902_v44 = vpop.eup %7020  ;;  %v10538_v45 = vsub.f32 %v8643_v4, %v8788_v14  ;;  %v3020_v4 = vmul.f32 1.442695, %v3000_v32 }
 0x940   :  { %7038 = vpow2.f32 %v2782_v24  ;;  %v8904_v33 = vpop.eup %7022  ;;  %v2793_v55 = vadd.f32 %v8895_v49, %v2792_v1  ;;  %v3016_v24 = vmul.f32 1.442695, %v2998_v52  ;;  %v3018_v1 = vmul.f32 1.442695, %v2999_v23 }
 0x941   :  { %v2555_v9 = vrot.slane %v2554_v39, 4  ;;  %7040 = vpow2.f32 %v2784_v47  ;;  %v8907_v35 = vpop.eup %7024  ;;  %v2790_v8 = vmul.f32 1.442695, %v10538_v45  ;;  %v3022_v14 = vmul.f32 1.442695, %v3001_v15 }
 0x942   :  { %7042 = vpow2.f32 %v2786_v62  ;;  %v2794_v54 = vadd.f32 %v8902_v44, %v2793_v55  ;;  %v3026_v55 = vmul.f32 1.442695, %v3003_v7  ;;  %v3028_v45 = vmul.f32 1.442695, %v3004_v28 }
 0x943   :  { %v2556_v56 = vadd.f32 %v2555_v9, %v2554_v39  ;;  %7044 = vpow2.f32 %v2788_v5  ;;  %v8913_v22 = vpop.eup %7026  ;;  %v3024_v39 = vmul.f32 1.442695, %v3002_v12  ;;  %v3030_v28 = vmul.f32 1.442695, %v3005_v51 }
 0x944   :  { %7046 = vpow2.f32 %v3012_v31  ;;  %v8915_v34 = vpop.eup %7028  ;;  %v2795_v0 = vadd.f32 %v8904_v33, %v2794_v54  ;;  %v10540_v54 = vld [vmem:[#allocation19_spill] sm:$0xff] }
 0x945   :  { %v2557_v47 = vrot.slane %v2556_v56, 2  ;;  %7048 = vpow2.f32 %v3014_v59  ;;  %v8918_v62 = vpop.eup %7030  ;;  %v10541_v59 = vld [vmem:[#allocation20_spill] sm:$0xff] }
 0x946   :  { %7050 = vpow2.f32 %v2790_v8  ;;  %v2796_v52 = vadd.f32 %v8907_v35, %v2795_v0 }
 0x947   :  { %v7033_v5 = vpop.eup %7032  ;;  %v2558_v9 = vadd.f32 %v2557_v47, %v2556_v56  ;;  %7052 = vpow2.f32 %v3016_v24  ;;  %v10542_v56 = vld [vmem:[#allocation6_spill] sm:$0xff] }
 0x948   :  { %v8921_v31 = vpop.eup %7034  ;;  %v8924_v43 = vmul.f32 %v7033_v5, %v10539_v57  ;;  %v8927_v23 = vmul.f32 %v7033_v5, %v10540_v54  ;;  %v8930_v8 = vmul.f32 %v7033_v5, %v10541_v59  ;;  %v2797_v12 = vadd.f32 %v8913_v22, %v2796_v52 }
 0x949   :  { %v8932_v32 = vpop.eup %7036  ;;  %v2559_v15 = vrot.slane %v2558_v9, 1  ;;  %7054 = vpow2.f32 %v3018_v1  ;;  %v8936_v7 = vmul.f32 %v7033_v5, %v10542_v56  ;;  %v8943_v47 = vmul.f32 %v7033_v5, %v8695_v18 }
 0x94a   :  { %v8938_v24 = vpop.eup %7038  ;;  %v8946_v0 = vmul.f32 %v7033_v5, %v8703_v37  ;;  %v2798_v1 = vadd.f32 %v8915_v34, %v2797_v12  ;;  %7056 = vpow2.f32 %v3020_v4  ;;  %v8958_v18 = vmul.f32 %v7033_v5, %v8707_v19 }
 0x94b   :  { %v8948_v54 = vpop.eup %7040  ;;  %v2560_v59 = vadd.f32 %v2559_v15, %v2558_v9  ;;  %7058 = vpow2.f32 %v3022_v14  ;;  %v8961_v37 = vmul.f32 %v7033_v5, %v8711_v41  ;;  %v8967_v9 = vmul.f32 %v7033_v5, %v8716_v36 }
 0x94c   :  { %v8953_v56 = vpop.eup %7042  ;;  %v2799_v4 = vadd.f32 %v8918_v62, %v2798_v1  ;;  %v8970_v15 = vmul.f32 %v7033_v5, %v8722_v40  ;;  %v10546_v19 = vsub.f32 %v10536_v53, %v8794_v16  ;;  %v8980_v51 = vmul.f32 %v7033_v5, %v8748_v48 }
 0x94d   :  { %10543 = vst [vmem:[#allocation16_spill] sm:$0xff] %v8953_v56  ;;  %v8963_v57 = vpop.eup %7044  ;;  %7060 = vrcp.f32 %v2560_v59  ;;  %v8983_v59 = vmul.f32 %v7033_v5, %v8761_v10  ;;  %v8991_v53 = vmul.f32 %v7033_v5, %v8773_v21  ;;  %v10548_v48 = vsub.f32 %v10537_v63, %v8794_v16 }
 0x94e   :  { %10544 = vst [vmem:[#allocation5_spill] sm:$0xff] %v8963_v57  ;;  %v8972_v14 = vpop.eup %7046  ;;  %v3032_v12 = vmul.f32 1.442695, %v10546_v19  ;;  %v2800_v40 = vadd.f32 %v8921_v31, %v2799_v4  ;;  %7062 = vpow2.f32 %v3024_v39  ;;  %v9003_v39 = vmul.f32 %v7033_v5, %v8779_v3 }
 0x94f   :  { %10545 = vst [vmem:[#allocation17_spill] sm:$0xff] %v8972_v14  ;;  %v8985_v36 = vpop.eup %7048  ;;  %v3034_v41 = vmul.f32 1.442695, %v10548_v48  ;;  %7064 = vpow2.f32 %v3026_v55  ;;  %v9009_v1 = vmul.f32 %v7033_v5, %v8790_v11  ;;  %v9012_v63 = vmul.f32 %v7033_v5, %v8806_v38 }
 0x950   :  { %10547 = vst [vmem:[#allocation15_spill] sm:$0xff] %v8985_v36  ;;  %v8993_v19 = vpop.eup %7050  ;;  %v3044_v10 = vadd.f32 %v8985_v36, %v8972_v14  ;;  %v2801_v21 = vadd.f32 %v8932_v32, %v2800_v40  ;;  %7066 = vpow2.f32 %v3028_v45  ;;  %v10550_v48 = vsub.f32 %v8635_v61, %v8794_v16 }
 0x951   :  { %v9005_v4 = vpop.eup %7052  ;;  %7068 = vpow2.f32 %v3030_v28  ;;  %v10552_v11 = vsub.f32 %v8625_v20, %v8794_v16 }
 0x952   :  { %10549 = vst [vmem:[#allocation18_spill] sm:$0xff] %v9005_v4  ;;  %v3036_v36 = vmul.f32 1.442695, %v10550_v48  ;;  %v3045_v52 = vadd.f32 %v9005_v4, %v3044_v10  ;;  %v2802_v55 = vadd.f32 %v8938_v24, %v2801_v21  ;;  %7070 = vpow2.f32 %v3032_v12 }
 0x953   :  { %v9020_v14 = vpop.eup %7054  ;;  %v3038_v38 = vmul.f32 1.442695, %v10552_v11  ;;  %7072 = vpow2.f32 %v3034_v41  ;;  %v10555_v48 = vsub.f32 %v8655_v26, %v8794_v16  ;;  %v10558_v26 = vld [vmem:[#allocation10_spill] sm:$0xff] }
 0x954   :  { %10551 = vst [vmem:[#allocation19_spill] sm:$0xff] %v9020_v14  ;;  %v3046_v61 = vadd.f32 %v9020_v14, %v3045_v52  ;;  %v9029_v45 = vpop.eup %7056  ;;  %v2803_v40 = vadd.f32 %v8948_v54, %v2802_v55  ;;  %7074 = vpow2.f32 %v3036_v36  ;;  %v10556_v52 = vsub.f32 %v8645_v2, %v8794_v16 }
 0x955   :  { %10553 = vst [vmem:[#allocation20_spill] sm:$0xff] %v9029_v45  ;;  %v9032_v10 = vpop.eup %7058  ;;  %7076 = vpow2.f32 %v3038_v38  ;;  %v3040_v12 = vmul.f32 1.442695, %v10555_v48 }
 0x956   :  { %10554 = vst [vmem:[#allocation6_spill] sm:$0xff] %v9032_v10  ;;  %v3047_v28 = vadd.f32 %v9029_v45, %v3046_v61  ;;  %v2804_v20 = vadd.f32 %v8953_v56, %v2803_v40  ;;  %v3042_v11 = vmul.f32 1.442695, %v10556_v52  ;;  %v10557_v40 = vld [vmem:[#allocation9_spill] sm:$0xff]  ;;  %v10559_v45 = vld [vmem:[#allocation11_spill] sm:$0xff] }
 0x957   :  { %v7061_v21 = vpop.eup %7060  ;;  %7078 = vpow2.f32 %v3040_v12  ;;  %v10565_v12 = vpack.c.bf16 %v8946_v0, %v8943_v47  ;;  %v10567_v0 = vpack.c.bf16 %v8970_v15, %v8967_v9  ;;  %v10569_v9 = vpack.c.bf16 %v9003_v39, %v8991_v53 }
 0x958   :  { %v3048_v55 = vadd.f32 %v9032_v10, %v3047_v28  ;;  %v2562_v41 = vmul.f32 %v7061_v21, %v8734_v17  ;;  %v2563_v36 = vmul.f32 %v7061_v21, %v8740_v50  ;;  %v2564_v61 = vmul.f32 %v7061_v21, %v8753_v29  ;;  %v9046_v5 = vpop.eup %7062  ;;  %v10560_v28 = vld [vmem:[#allocation12_spill] sm:$0xff]  ;;  %v10561_v17 = vld [vmem:[#allocation13_spill] sm:$0xff] }
 0x959   :  { %v2805_v38 = vadd.f32 %v8963_v57, %v2804_v20  ;;  %v2565_v3 = vmul.f32 %v7061_v21, %v10557_v40  ;;  %v2566_v48 = vmul.f32 %v7061_v21, %v10558_v26  ;;  %v2567_v14 = vmul.f32 %v7061_v21, %v10559_v45  ;;  %v9055_v50 = vpop.eup %7064  ;;  %v10562_v20 = vld [vmem:[#allocation14_spill] sm:$0xff] }
 0x95a   :  { %v3049_v2 = vadd.f32 %v9046_v5, %v3048_v55  ;;  %v6586_v16 = vpack.c.bf16 %v2563_v36, %v2562_v41  ;;  %v2568_v52 = vmul.f32 %v7061_v21, %v10560_v28  ;;  %v2569_v10 = vmul.f32 %v7061_v21, %v10561_v17  ;;  %v9059_v40 = vpop.eup %7066 }
 0x95b   :  { %v2806_v29 = vadd.f32 %v8993_v19, %v2805_v38  ;;  %v6590_v4 = vpack.c.bf16 %v2565_v3, %v2564_v61  ;;  %v6594_v56 = vpack.c.bf16 %v2567_v14, %v2566_v48  ;;  %v2570_v57 = vmul.f32 %v7061_v21, %v10562_v20  ;;  %v9064_v36 = vpop.eup %7068 }
 0x95c   :  { %v3050_v26 = vadd.f32 %v9055_v50, %v3049_v2  ;;  %6587 = vmatprep.subr.bf16.mxu1 %v6586_v16  ;;  %v6598_v45 = vpack.c.bf16 %v2569_v10, %v2568_v52  ;;  %v2571_v55 = vmul.f32 %v7061_v21, %v8832_v30  ;;  %v2572_v41 = vmul.f32 %v7061_v21, %v8842_v27  ;;  %v9072_v48 = vpop.eup %7070 }
 0x95d   :  { %v2807_v28 = vrot.slane %v2806_v29, 4  ;;  %v10563_v38 = vpack.c.bf16 %v8927_v23, %v8924_v43  ;;  %v2573_v14 = vmul.f32 %v7061_v21, %v8845_v25  ;;  %v2574_v3 = vmul.f32 %v7061_v21, %v8849_v46  ;;  %v9077_v16 = vpop.eup %7072 }
 0x95e   :  { %v2575_v61 = vmul.f32 %v7061_v21, %v8852_v6  ;;  %v3051_v10 = vadd.f32 %v9059_v40, %v3050_v26  ;;  %v6602_v30 = vpack.c.bf16 %v2571_v55, %v2570_v57  ;;  %v2576_v27 = vmul.f32 %v7061_v21, %v8854_v60  ;;  %v9079_v52 = vpop.eup %7074 }
 0x95f   :  { %6589 = vmatpush3.bf16.msra.mxu1 %v10563_v38  ;;  %v2577_v2 = vmul.f32 %v7061_v21, %v8872_v13  ;;  %v2808_v43 = vadd.f32 %v2807_v28, %v2806_v29  ;;  %v6606_v23 = vpack.c.bf16 %v2573_v14, %v2572_v41  ;;  %v9082_v17 = vpop.eup %7076  ;;  %7080 = vpow2.f32 %v3042_v11 }
 0x960   :  { %6591 = vmatprep.subr.bf16.mxu1 %v6590_v4  ;;  %v6610_v25 = vpack.c.bf16 %v2575_v61, %v2574_v3  ;;  %v3052_v6 = vadd.f32 %v9064_v36, %v3051_v10  ;;  %v10564_v60 = vpack.c.bf16 %v8936_v7, %v8930_v8  ;;  %v10566_v8 = vpack.c.bf16 %v8961_v37, %v8958_v18 }
 0x961   :  { %v6614_v46 = vpack.c.bf16 %v2577_v2, %v2576_v27  ;;  %v2809_v20 = vrot.slane %v2808_v43, 2  ;;  %v9094_v55 = vpop.eup %7078  ;;  %v10568_v28 = vpack.c.bf16 %v8983_v59, %v8980_v51 }
 0x962   :  { %v3053_v13 = vadd.f32 %v9072_v48, %v3052_v6 }
 0x963   :  { %6593 = vmatpush3.bf16.msra.mxu1 %v10564_v60  ;;  %v2810_v57 = vadd.f32 %v2809_v20, %v2808_v43 }
 0x964   :  { %6595 = vmatprep.subr.bf16.mxu1 %v6594_v56  ;;  %v3054_v4 = vadd.f32 %v9077_v16, %v3053_v13 }
 0x965   :  { %v2811_v21 = vrot.slane %v2810_v57, 1 }
 0x966   :  { %v3055_v29 = vadd.f32 %v9079_v52, %v3054_v4 }
 0x967   :  { %6597 = vmatpush3.bf16.msra.mxu1 %v10565_v12  ;;  %v2812_v26 = vadd.f32 %v2811_v21, %v2810_v57  ;;  %v10577_v57 = vld [vmem:[#allocation15_spill] sm:$0xff]  ;;  %v10578_v21 = vld [vmem:[#allocation18_spill] sm:$0xff] }
 0x968   :  { %6599 = vmatprep.subr.bf16.mxu1 %v6598_v45  ;;  %v3056_v11 = vadd.f32 %v9082_v17, %v3055_v29  ;;  %v10579_v29 = vld [vmem:[#allocation19_spill] sm:$0xff] }
 0x969   :  { %7082 = vrcp.f32 %v2812_v26  ;;  %v9100_v56 = vpop.eup %7080  ;;  %v10580_v26 = vld [vmem:[#allocation20_spill] sm:$0xff] }
 0x96a   :  { %v3057_v7 = vadd.f32 %v9094_v55, %v3056_v11 }
 0x96b   :  { %6601 = vmatpush3.bf16.msra.mxu1 %v10566_v8  ;;  %v10581_v8 = vld [vmem:[#allocation6_spill] sm:$0xff] }
 0x96c   :  { %6603 = vmatprep.subr.bf16.mxu1 %v6602_v30  ;;  %v3058_v47 = vadd.f32 %v9100_v56, %v3057_v7 }
 0x96e   :  { %v3059_v45 = vrot.slane %v3058_v47, 4 }
 0x96f   :  { %6605 = vmatpush3.bf16.msra.mxu1 %v10567_v0 }
 0x970   :  { %6607 = vmatprep.subr.bf16.mxu1 %v6606_v23  ;;  %v3060_v41 = vadd.f32 %v3059_v45, %v3058_v47 }
 0x972   :  { %v3061_v18 = vrot.slane %v3060_v41, 2 }
 0x973   :  { %6609 = vmatpush3.bf16.msra.mxu1 %v10568_v28  ;;  %v7083_v37 = vpop.eup %7082 }
 0x974   :  { %6611 = vmatprep.subr.bf16.mxu1 %v6610_v25  ;;  %v3062_v38 = vadd.f32 %v3061_v18, %v3060_v41  ;;  %v2814_v14 = vmul.f32 %v7083_v37, %v8880_v42  ;;  %v2815_v3 = vmul.f32 %v7083_v37, %v8887_v58  ;;  %v2816_v61 = vmul.f32 %v7083_v37, %v8895_v49 }
 0x975   :  { %v2817_v15 = vmul.f32 %v7083_v37, %v8902_v44  ;;  %v2818_v10 = vmul.f32 %v7083_v37, %v8904_v33  ;;  %v2819_v51 = vmul.f32 %v7083_v37, %v8907_v35  ;;  %v2820_v59 = vmul.f32 %v7083_v37, %v8913_v22 }
 0x976   :  { %v3063_v30 = vrot.slane %v3062_v38, 1  ;;  %v6620_v27 = vpack.c.bf16 %v2815_v3, %v2814_v14  ;;  %v2821_v42 = vmul.f32 %v7083_v37, %v8915_v34  ;;  %v2822_v58 = vmul.f32 %v7083_v37, %v8918_v62  ;;  %v10571_v34 = vld [vmem:[#allocation16_spill] sm:$0xff]  ;;  %v10572_v62 = vld [vmem:[#allocation5_spill] sm:$0xff] }
 0x977   :  { %6613 = vmatpush3.bf16.msra.mxu1 %v10569_v9  ;;  %v6624_v49 = vpack.c.bf16 %v2817_v15, %v2816_v61  ;;  %v6628_v2 = vpack.c.bf16 %v2819_v51, %v2818_v10  ;;  %v2823_v53 = vmul.f32 %v7083_v37, %v8921_v31  ;;  %v2824_v39 = vmul.f32 %v7083_v37, %v8932_v32 }
 0x978   :  { %6615 = vmatprep.subr.bf16.mxu1 %v6614_v46  ;;  %v3064_v44 = vadd.f32 %v3063_v30, %v3062_v38  ;;  %v6632_v43 = vpack.c.bf16 %v2821_v42, %v2820_v59  ;;  %v2825_v33 = vmul.f32 %v7083_v37, %v8938_v24  ;;  %v2826_v35 = vmul.f32 %v7083_v37, %v8948_v54  ;;  %v10574_v24 = vld [vmem:[#allocation8_spill] sm:$0xff]  ;;  %v1757_v30 = vld [vmem:[%s10289_s3 + $0x128] sm:$0xff]  ;;  %v1758_v42 = vld [vmem:[%s10289_s3 + $0x130] sm:$0xff] }
 0x979   :  { %v10570_v22 = vpack.c.bf16 %v9012_v63, %v9009_v1  ;;  %v6636_v23 = vpack.c.bf16 %v2823_v53, %v2822_v58  ;;  %v2827_v25 = vmul.f32 %v7083_v37, %v10571_v34  ;;  %v2828_v6 = vmul.f32 %v7083_v37, %v10572_v62  ;;  %v10576_v63 = vld [vmem:[#allocation17_spill] sm:$0xff]  ;;  %v1759_v58 = vld [vmem:[%s10289_s3 + $0x138] sm:$0xff]  ;;  %v1766_v34 = vld [vmem:[%s10289_s3 + $0x170] sm:$0xff] }
 0x97a   :  { %v2829_v46 = vmul.f32 %v7083_v37, %v8993_v19  ;;  %7084 = vrcp.f32 %v3064_v44  ;;  %v6640_v31 = vpack.c.bf16 %v2825_v33, %v2824_v39  ;;  %v10573_v32 = vmov 0.0|0.0   ;;  %v1756_v59 = vld [vmem:[%s10289_s3 + $0x120] sm:$0xff]  ;;  %v1761_v53 = vld [vmem:[%s10289_s3 + $0x148] sm:$0xff]  ;;  %v1762_v44 = vld [vmem:[%s10289_s3 + $0x150] sm:$0xff] }
 0x97b   :  { %6617 = vmatpush3.bf16.msra.mxu1 %v10570_v22  ;;  %v6644_v20 = vpack.c.bf16 %v2827_v25, %v2826_v35  ;;  %v10575_v54 = vmov 0.0   ;;  %v1764_v35 = vld [vmem:[%s10289_s3 + $0x160] sm:$0xff]  ;;  %v1765_v22 = vld [vmem:[%s10289_s3 + $0x168] sm:$0xff]  ;;  %v1767_v25 = vld [vmem:[%s10289_s3 + $0x178] sm:$0xff] }
 0x97c   :  { %6650 = vmatprep.subr.bf16.mxu1 %v10573_v32  ;;  %v6648_v60 = vpack.c.bf16 %v2829_v46, %v2828_v6  ;;  %v6672_v62 = vpack.c.bf16 %v1767_v25, %v1766_v34  ;;  %v1768_v6 = vld [vmem:[%s10289_s3 + $0x180] sm:$0xff]  ;;  %v1769_v46 = vld [vmem:[%s10289_s3 + $0x188] sm:$0xff] }
 0x97e   :  { %3147 = vmatmul.mubr.f32.vlgmr.msra.gmra.mrb[78].mxu1 %v10574_v24 }
 0x97f   :  { %6238 = vmatprep.mubr.msk.f32.mxu1 %vm7247_vm1, %v10575_v54 }
 0x984   :  { %v7085_v1 = vpop.eup %7084 }
 0x985   :  { %v3066_v13 = vmul.f32 %v7085_v1, %v10576_v63  ;;  %v3067_v4 = vmul.f32 %v7085_v1, %v10577_v57  ;;  %v3068_v12 = vmul.f32 %v7085_v1, %v10578_v21  ;;  %v3069_v19 = vmul.f32 %v7085_v1, %v10579_v29  ;;  %v1773_v63 = vld [vmem:[%s10289_s3 + $0x1a8] sm:$0xff]  ;;  %v1774_v57 = vld [vmem:[%s10289_s3 + $0x1b0] sm:$0xff] }
 0x986   :  { %v3070_v11 = vmul.f32 %v7085_v1, %v10580_v26  ;;  %v3071_v7 = vmul.f32 %v7085_v1, %v10581_v8  ;;  %v3072_v47 = vmul.f32 %v7085_v1, %v9046_v5  ;;  %v3073_v0 = vmul.f32 %v7085_v1, %v9055_v50  ;;  %v1777_v29 = vld [vmem:[%s10289_s3 + $0x1c8] sm:$0xff]  ;;  %v1778_v26 = vld [vmem:[%s10289_s3 + $0x1d0] sm:$0xff] }
 0x987   :  { %v6618_v45 = vpack.c.bf16 %v3067_v4, %v3066_v13  ;;  %v6622_v41 = vpack.c.bf16 %v3069_v19, %v3068_v12  ;;  %v3074_v28 = vmul.f32 %v7085_v1, %v9059_v40  ;;  %v3075_v18 = vmul.f32 %v7085_v1, %v9064_v36  ;;  %v1775_v4 = vld [vmem:[%s10289_s3 + $0x1b8] sm:$0xff]  ;;  %v1776_v12 = vld [vmem:[%s10289_s3 + $0x1c0] sm:$0xff] }
 0x988   :  { %v6626_v37 = vpack.c.bf16 %v3071_v7, %v3070_v11  ;;  %v6630_v38 = vpack.c.bf16 %v3073_v0, %v3072_v47  ;;  %v3076_v14 = vmul.f32 %v7085_v1, %v9072_v48  ;;  %v3077_v3 = vmul.f32 %v7085_v1, %v9077_v16  ;;  %v10582_v48 = vld [vmem:[#allocation7_spill] sm:$0xff]  ;;  %v1752_v16 = vld [vmem:[%s10289_s3 + $0x100] sm:$0xff]  ;;  %v1781_v47 = vld [vmem:[%s10289_s3 + $0x1e8] sm:$0xff] }
 0x989   :  { %6619 = vmatprep.subr.bf16.mxu0 %v6618_v45  ;;  %v6634_v61 = vpack.c.bf16 %v3075_v18, %v3074_v28  ;;  %v3078_v9 = vmul.f32 %v7085_v1, %v9079_v52  ;;  %v3079_v5 = vmul.f32 %v7085_v1, %v9082_v17  ;;  %v3080_v50 = vmul.f32 %v7085_v1, %v9094_v55  ;;  %v1753_v52 = vld [vmem:[%s10289_s3 + $0x108] sm:$0xff]  ;;  %v1754_v17 = vld [vmem:[%s10289_s3 + $0x110] sm:$0xff]  ;;  %v1779_v11 = vld [vmem:[%s10289_s3 + $0x1d8] sm:$0xff] }
 0x98a   :  { %6621 = vmatpush3.bf16.msra.mxu0 %v6620_v27  ;;  %v6638_v15 = vpack.c.bf16 %v3077_v3, %v3076_v14  ;;  %v3081_v40 = vmul.f32 %v7085_v1, %v9100_v56  ;;  %v6651_v55 = vpack.c.bf16 %v1753_v52, %v1752_v16  ;;  %v1755_v56 = vld [vmem:[%s10289_s3 + $0x118] sm:$0xff]  ;;  %v6657_v27 = vpack.c.bf16 %v1757_v30, %v1756_v59  ;;  %v1772_v1 = vld [vmem:[%s10289_s3 + $0x1a0] sm:$0xff]  ;;  %v3371_v16 = vld [vmem:[%s10287_s1 + $0xa8] sm:$0xff] }
 0x98b   :  { %6623 = vmatprep.subr.bf16.mxu0 %v6622_v41  ;;  %v6642_v36 = vpack.c.bf16 %v3079_v5, %v3078_v9  ;;  %v6654_v51 = vpack.c.bf16 %v1755_v56, %v1754_v17  ;;  %v6681_v13 = vpack.c.bf16 %v1773_v63, %v1772_v1  ;;  %v6684_v21 = vpack.c.bf16 %v1775_v4, %v1774_v57  ;;  %v1780_v7 = vld [vmem:[%s10289_s3 + $0x1e0] sm:$0xff]  ;;  %v1749_v18 = vld [vmem:[%s10288_s2 + $0x78] sm:$0xff]  ;;  %v1782_v9 = vld [vmem:[%s10289_s3 + $0x1f0] sm:$0xff] }
 0x98c   :  { %v6646_v10 = vpack.c.bf16 %v3081_v40, %v3080_v50  ;;  %6652 = vmatpush3.bf16.msra.mxu1 %v6651_v55  ;;  %v6687_v19 = vpack.c.bf16 %v1777_v29, %v1776_v12  ;;  %v6690_v8 = vpack.c.bf16 %v1779_v11, %v1778_v26  ;;  %v6693_v0 = vpack.c.bf16 %v1781_v47, %v1780_v7  ;;  %v1783_v5 = vld [vmem:[%s10289_s3 + $0x1f8] sm:$0xff]  ;;  %v5251_v52 = vld [vmem:[%s10288_s2 + $0x81] ss:$0 sm:$0xff] }
 0x98d   :  { %6653 = vmatprep.subr.bf16.mxu1 %v10573_v32  ;;  %v6696_v50 = vpack.c.bf16 %v1783_v5, %v1782_v9  ;;  %v3373_v59 = vld [vmem:[%s10287_s1 + $0xb8] sm:$0xff]  ;;  %v3374_v30 = vld [vmem:[%s10287_s1 + $0xc0] sm:$0xff] }
 0x98e   :  { %6625 = vmatpush3.bf16.msra.mxu0 %v6624_v49  ;;  %v6660_v49 = vpack.c.bf16 %v1759_v58, %v1758_v42  ;;  %v3376_v42 = vld [vmem:[%s10287_s1 + $0xd0] sm:$0xff]  ;;  %v3377_v58 = vld [vmem:[%s10287_s1 + $0xd8] sm:$0xff] }
 0x98f   :  { %6627 = vmatprep.subr.bf16.mxu0 %v6626_v37 }
 0x990   :  { %6655 = vmatpush3.bf16.msra.mxu1 %v6654_v51  ;;  %v3372_v51 = vld [vmem:[%s10287_s1 + $0xb0] sm:$0xff] }
 0x991   :  { %6656 = vmatprep.subr.bf16.mxu1 %v10573_v32 }
 0x992   :  { %6629 = vmatpush3.bf16.msra.mxu0 %v6628_v2  ;;  %v1760_v2 = vld [vmem:[%s10289_s3 + $0x140] sm:$0xff] }
 0x993   :  { %6631 = vmatprep.subr.bf16.mxu0 %v6630_v38  ;;  %v6663_v39 = vpack.c.bf16 %v1761_v53, %v1760_v2  ;;  %v3381_v2 = vld [vmem:[%s10288_s2 + $0x88] sm:$0xff] }
 0x994   :  { %6658 = vmatpush3.bf16.msra.mxu1 %v6657_v27  ;;  %v3375_v27 = vld [vmem:[%s10287_s1 + $0xc8] sm:$0xff] }
 0x995   :  { %6659 = vmatprep.subr.bf16.mxu1 %v10573_v32 }
 0x996   :  { %6633 = vmatpush3.bf16.msra.mxu0 %v6632_v43  ;;  %v1763_v43 = vld [vmem:[%s10289_s3 + $0x158] sm:$0xff] }
 0x997   :  { %6635 = vmatprep.subr.bf16.mxu0 %v6634_v61  ;;  %v6666_v33 = vpack.c.bf16 %v1763_v43, %v1762_v44 }
 0x998   :  { %6661 = vmatpush3.bf16.msra.mxu1 %v6660_v49  ;;  %v3382_v49 = vld [vmem:[%s10288_s2 + $0x90] sm:$0xff] }
 0x999   :  { %6662 = vmatprep.subr.bf16.mxu1 %v10573_v32 }
 0x99a   :  { %6637 = vmatpush3.bf16.msra.mxu0 %v6636_v23  ;;  %v6669_v23 = vpack.c.bf16 %v1765_v22, %v1764_v35  ;;  %v3384_v35 = vld [vmem:[%s10288_s2 + $0xa0] sm:$0xff]  ;;  %v3379_v22 = vld [vmem:[%s10287_s1 + $0xe8] sm:$0xff] }
 0x99b   :  { %6639 = vmatprep.subr.bf16.mxu0 %v6638_v15  ;;  %v5250_v15 = vld [vmem:[%s10288_s2 + $0x80] ss:$0 sm:$0xff] }
 0x99c   :  { %6664 = vmatpush3.bf16.msra.mxu1 %v6663_v39 }
 0x99d   :  { %6665 = vmatprep.subr.bf16.mxu1 %v10573_v32 }
 0x99e   :  { %6641 = vmatpush3.bf16.msra.mxu0 %v6640_v31  ;;  %v1770_v31 = vld [vmem:[%s10289_s3 + $0x190] sm:$0xff] }
 0x99f   :  { %6643 = vmatprep.subr.bf16.mxu0 %v6642_v36 }
 0x9a0   :  { %6667 = vmatpush3.bf16.msra.mxu1 %v6666_v33  ;;  %v3378_v33 = vld [vmem:[%s10287_s1 + $0xe0] sm:$0xff] }
 0x9a1   :  { %6668 = vmatprep.subr.bf16.mxu1 %v10573_v32 }
 0x9a2   :  { %6645 = vmatpush3.bf16.msra.mxu0 %v6644_v20  ;;  %v6675_v20 = vpack.c.bf16 %v1769_v46, %v1768_v6  ;;  %v3380_v46 = vld [vmem:[%s10287_s1 + $0xf0] sm:$0xff] }
 0x9a3   :  { %6647 = vmatprep.subr.bf16.mxu0 %v6646_v10 }
 0x9a4   :  { %6670 = vmatpush3.bf16.msra.mxu1 %v6669_v23  ;;  %v3383_v23 = vld [vmem:[%s10288_s2 + $0x98] sm:$0xff] }
 0x9a5   :  { %6671 = vmatprep.subr.bf16.mxu1 %v10573_v32 }
 0x9a6   :  { %6649 = vmatpush3.bf16.msra.mxu0 %v6648_v60  ;;  %v1771_v60 = vld [vmem:[%s10289_s3 + $0x198] sm:$0xff] }
 0x9a7   :  { %6674 = vmatprep.subr.bf16.mxu0 %v10573_v32  ;;  %v6678_v24 = vpack.c.bf16 %v1771_v60, %v1770_v31  ;;  %v3386_v31 = vld [vmem:[%s10288_s2 + $0xb0] sm:$0xff]  ;;  %v3385_v60 = vld [vmem:[%s10288_s2 + $0xa8] sm:$0xff] }
 0x9a8   :  { %6673 = vmatpush3.bf16.msra.mxu1 %v6672_v62 }
 0x9a9   :  { %3217 = vmatmul.mubr.f32.vlgmr.msra.gmra.mrb[80].mxu0 %v10582_v48 }
 0x9aa   :  { %6273 = vmatprep.mubr.msk.f32.mxu0 %vm7247_vm1, %v10575_v54  ;;  %6676 = vmatpush3.bf16.msra.mxu0 %v6675_v20 }
 0x9ab   :  { %6677 = vmatprep.subr.bf16.mxu0 %v10573_v32 }
 0x9ae   :  { %6679 = vmatpush3.bf16.msra.mxu0 %v6678_v24 }
 0x9af   :  { %6680 = vmatprep.subr.bf16.mxu0 %v10573_v32 }
 0x9b2   :  { %6682 = vmatpush3.bf16.msra.mxu0 %v6681_v13 }
 0x9b3   :  { %6683 = vmatprep.subr.bf16.mxu0 %v10573_v32 }
 0x9b6   :  { %6685 = vmatpush3.bf16.msra.mxu0 %v6684_v21 }
 0x9b7   :  { %6686 = vmatprep.subr.bf16.mxu0 %v10573_v32 }
 0x9ba   :  { %6688 = vmatpush3.bf16.msra.mxu0 %v6687_v19 }
 0x9bb   :  { %6689 = vmatprep.subr.bf16.mxu0 %v10573_v32 }
 0x9be   :  { %6691 = vmatpush3.bf16.msra.mxu0 %v6690_v8 }
 0x9bf   :  { %6692 = vmatprep.subr.bf16.mxu0 %v10573_v32 }
 0x9c2   :  { %6694 = vmatpush3.bf16.msra.mxu0 %v6693_v0 }
 0x9c3   :  { %6695 = vmatprep.subr.bf16.mxu0 %v10573_v32 }
 0x9c6   :  { %6697 = vmatpush3.bf16.msra.mxu0 %v6696_v50 }
 0xa51   :  { %v5627_v45 = vpop.f32.mrb[78].mxu1 }
 0xa52   :  { %v5628_v41 = vpop.f32.mrb[79].mxu1 }
 0xa53   :  { %v5629_v28 = vadd.f32 %v5628_v41, %v5627_v45 }
 0xa55   :  { %v3149_v14 = vadd.f32 %v5629_v28, %v1749_v18 }
 0xa7c   :  { %v5662_v37 = vpop.f32.mrb[80].mxu0 }
 0xa7d   :  { %v5663_v38 = vpop.f32.mrb[81].mxu0 }
 0xa7e   :  { %v5664_v3 = vadd.f32 %v5663_v38, %v5662_v37 }
 0xa80   :  { %v3219_v61 = vadd.f32 %v5664_v3, %v3149_v14 }
 0xa82   :  { %6239 = vmatmul.mubr.f32.vlgmr.msra.gmra.mrb[80].mxu1 %v3219_v61 }
 0xa83   :  { %6278 = vmatprep.mubr.msk.f32.mxu1 %vm21_vm0, %v3371_v16 }
 0xb55   :  { %v3292_v40 = vpop.f32.mrb[80].mxu1 }
 0xb56   :  { %v3293_v36 = vadd.f32 %v5250_v15, %v3292_v40  ;;  %v6240_v10 = vpop.f32.mrb[81].mxu1 }
 0xb58   :  { %v3296_v48 = vmax.f32 %v3293_v36, 0.0 }
 0xb5a   :  { %6274 = vmatmul.mubr.f32.vlgmr.msra.gmra.mrb[82].mxu0 %v3296_v48 }
 0xb5b   :  { %6289 = vmatprep.mubr.msk.f32.mxu0 %vm21_vm0, %v3377_v58 }
 0xc2d   :  { %v3367_v17 = vpop.f32.mrb[82].mxu0 }
 0xc2e   :  { %v3368_v55 = vadd.f32 %v5251_v52, %v3367_v17  ;;  %v6275_v56 = vpop.f32.mrb[83].mxu0 }
 0xc30   :  { %6276 = vmatprep.subr.mxu1 %v3368_v55 }
 0xc31   :  { %6277 = vmatpush3.msra.mxu1 %v3368_v55 }
 0xc32   :  { %6279 = vmatmul.mubr.msk.f32.vlgmr.msra.gmra.mrb[82].mxu1 %vm21_vm0, %v3372_v51 }
 0xc33   :  { %6281 = vmatprep.mubr.msk.f32.mxu1 %vm21_vm0, %v3373_v59 }
 0xc36   :  { %6282 = vmatmul.mubr.msk.f32.gmra.mrb[84].mxu1 %vm21_vm0, %v3374_v30 }
 0xc37   :  { %6284 = vmatprep.mubr.msk.f32.mxu1 %vm21_vm0, %v3375_v27 }
 0xc3a   :  { %6285 = vmatmul.mubr.msk.f32.gmra.mrb[86].mxu1 %vm21_vm0, %v3376_v42 }
 0xd05   :  { %v6280_v53 = vpop.f32.mrb[82].mxu1 }
 0xd06   :  { %v3512_v39 = vadd.f32 %v6280_v53, %v3382_v49  ;;  %v3506_v44 = vpop.f32.mrb[83].mxu1 }
 0xd07   :  { %v3507_v43 = vadd.f32 %v3506_v44, %v3381_v2 }
 0xd08   :  { %6287 = vmatprep.subr.mxu0 %v3512_v39 }
 0xd09   :  { %6288 = vmatpush3.msra.mxu0 %v3512_v39  ;;  %3535 = vxpose.xlu1.b32.start.end [1/1] (short) %v3507_v43, 128  ;;  %v6283_v34 = vpop.f32.mrb[84].mxu1 }
 0xd0a   :  { %6290 = vmatmul.mubr.msk.f32.vlgmr.msra.gmra.mrb[84].mxu0 %vm21_vm0, %v3378_v33  ;;  %v3522_v25 = vadd.f32 %v6283_v34, %v3384_v35  ;;  %v3516_v62 = vpop.f32.mrb[85].mxu1 }
 0xd0b   :  { %6292 = vmatprep.mubr.msk.f32.mxu0 %vm21_vm0, %v3379_v22  ;;  %v3517_v6 = vadd.f32 %v3516_v62, %v3383_v23 }
 0xd0c   :  { %6321 = vmatprep.subr.mxu1 %v3522_v25 }
 0xd0d   :  { %6295 = vmatprep.subr.mxu0 %v3517_v6  ;;  %6322 = vmatpush3.msra.mxu1 %v3522_v25  ;;  %v6286_v20 = vpop.f32.mrb[86].mxu1 }
 0xd0e   :  { %6293 = vmatmul.mubr.msk.f32.gmra.mrb[86].mxu0 %vm21_vm0, %v3380_v46  ;;  %v3532_v24 = vadd.f32 %v6286_v20, %v3386_v31  ;;  %v3526_v1 = vpop.f32.mrb[87].mxu1 }
 0xd0f   :  { %6296 = vmatpush3.msra.mxu0 %v3517_v6  ;;  %v3527_v63 = vadd.f32 %v3526_v1, %v3385_v60 }
 0xd10   :  { %6373 = vmatprep.subr.mxu1 %v3532_v24 }
 0xd11   :  { %6347 = vmatprep.subr.mxu0 %v3527_v63 }
 0xd89   :  { %v3551_v13 = vpop.trf.xlu1 }
 0xd8a   :  { %6297 = vmatprep.mubr.msk.f32.mxu0 %vm21_vm0, %v3551_v13  ;;  %6323 = vmatprep.mubr.msk.f32.mxu1 %vm21_vm0, %v3551_v13 }
 0xd8d   :  { %v3552_v57 = vpop.trf.xlu1 }
 0xd8e   :  { %6298 = vmatmul.mubr.msk.f32.vlgmr.msra.gmra.mrb[88].mxu0 %vm21_vm0, %v3552_v57  ;;  %6324 = vmatmul.mubr.msk.f32.vlgmr.msra.gmra.mrb[88].mxu1 %vm21_vm0, %v3552_v57 }
 0xd8f   :  { %6348 = vmatpush3.msra.mxu0 %v3527_v63  ;;  %6374 = vmatpush3.msra.mxu1 %v3532_v24 }
 0xd91   :  { %v3553_v4 = vpop.trf.xlu1 }
 0xd92   :  { %6300 = vmatprep.mubr.msk.f32.mxu0 %vm21_vm0, %v3553_v4  ;;  %6326 = vmatprep.mubr.msk.f32.mxu1 %vm21_vm0, %v3553_v4 }
 0xd95   :  { %v3554_v21 = vpop.trf.xlu1 }
 0xd96   :  { %6301 = vmatmul.mubr.msk.f32.gmra.mrb[90].mxu0 %vm21_vm0, %v3554_v21  ;;  %6327 = vmatmul.mubr.msk.f32.gmra.mrb[90].mxu1 %vm21_vm0, %v3554_v21 }
 0xd99   :  { %v3555_v12 = vpop.trf.xlu1 }
 0xd9a   :  { %6303 = vmatprep.mubr.msk.f32.mxu0 %vm21_vm0, %v3555_v12  ;;  %6329 = vmatprep.mubr.msk.f32.mxu1 %vm21_vm0, %v3555_v12 }
 0xd9d   :  { %v3556_v29 = vpop.trf.xlu1 }
 0xd9e   :  { %6304 = vmatmul.mubr.msk.f32.gmra.mrb[92].mxu0 %vm21_vm0, %v3556_v29  ;;  %6330 = vmatmul.mubr.msk.f32.gmra.mrb[92].mxu1 %vm21_vm0, %v3556_v29 }
 0xda1   :  { %v3557_v19 = vpop.trf.xlu1 }
 0xda2   :  { %6306 = vmatprep.mubr.msk.f32.mxu0 %vm21_vm0, %v3557_v19  ;;  %6332 = vmatprep.mubr.msk.f32.mxu1 %vm21_vm0, %v3557_v19 }
 0xda5   :  { %v3558_v26 = vpop.trf.xlu1 }
 0xda6   :  { %6307 = vmatmul.mubr.msk.f32.gmra.mrb[94].mxu0 %vm21_vm0, %v3558_v26  ;;  %6333 = vmatmul.mubr.msk.f32.gmra.mrb[94].mxu1 %vm21_vm0, %v3558_v26 }
 0xda9   :  { %v3559_v11 = vpop.trf.xlu1 }
 0xdaa   :  { %6309 = vmatprep.mubr.msk.f32.mxu0 %vm21_vm0, %v3559_v11  ;;  %6335 = vmatprep.mubr.msk.f32.mxu1 %vm21_vm0, %v3559_v11 }
 0xdad   :  { %v3560_v8 = vpop.trf.xlu1 }
 0xdae   :  { %6310 = vmatmul.mubr.msk.f32.gmra.mrb[96].mxu0 %vm21_vm0, %v3560_v8  ;;  %6336 = vmatmul.mubr.msk.f32.gmra.mrb[96].mxu1 %vm21_vm0, %v3560_v8 }
 0xdb1   :  { %v3561_v7 = vpop.trf.xlu1 }
 0xdb2   :  { %6312 = vmatprep.mubr.msk.f32.mxu0 %vm21_vm0, %v3561_v7  ;;  %6338 = vmatprep.mubr.msk.f32.mxu1 %vm21_vm0, %v3561_v7 }
 0xdb5   :  { %v3562_v47 = vpop.trf.xlu1 }
 0xdb6   :  { %6313 = vmatmul.mubr.msk.f32.gmra.mrb[98].mxu0 %vm21_vm0, %v3562_v47  ;;  %6339 = vmatmul.mubr.msk.f32.gmra.mrb[98].mxu1 %vm21_vm0, %v3562_v47 }
 0xdb9   :  { %v3563_v0 = vpop.trf.xlu1 }
 0xdba   :  { %6315 = vmatprep.mubr.msk.f32.mxu0 %vm21_vm0, %v3563_v0  ;;  %6341 = vmatprep.mubr.msk.f32.mxu1 %vm21_vm0, %v3563_v0 }
 0xdbd   :  { %v3564_v45 = vpop.trf.xlu1 }
 0xdbe   :  { %6316 = vmatmul.mubr.msk.f32.gmra.mrb[100].mxu0 %vm21_vm0, %v3564_v45  ;;  %6342 = vmatmul.mubr.msk.f32.gmra.mrb[100].mxu1 %vm21_vm0, %v3564_v45 }
 0xdc1   :  { %v3565_v41 = vpop.trf.xlu1 }
 0xdc2   :  { %6318 = vmatprep.mubr.msk.f32.mxu0 %vm21_vm0, %v3565_v41  ;;  %6344 = vmatprep.mubr.msk.f32.mxu1 %vm21_vm0, %v3565_v41 }
 0xdc5   :  { %v3566_v28 = vpop.trf.xlu1 }
 0xdc6   :  { %6319 = vmatmul.mubr.msk.f32.gmra.mrb[102].mxu0 %vm21_vm0, %v3566_v28  ;;  %6345 = vmatmul.mubr.msk.f32.gmra.mrb[102].mxu1 %vm21_vm0, %v3566_v28 }
 0xdc7   :  { %6349 = vmatprep.mubr.msk.f32.mxu0 %vm21_vm0, %v3551_v13  ;;  %6375 = vmatprep.mubr.msk.f32.mxu1 %vm21_vm0, %v3551_v13 }
 0xdca   :  { %6350 = vmatmul.mubr.msk.f32.vlgmr.msra.gmra.mrb[104].mxu0 %vm21_vm0, %v3552_v57  ;;  %6376 = vmatmul.mubr.msk.f32.vlgmr.msra.gmra.mrb[104].mxu1 %vm21_vm0, %v3552_v57 }
 0xdcb   :  { %6352 = vmatprep.mubr.msk.f32.mxu0 %vm21_vm0, %v3553_v4  ;;  %6378 = vmatprep.mubr.msk.f32.mxu1 %vm21_vm0, %v3553_v4 }
 0xdce   :  { %6353 = vmatmul.mubr.msk.f32.gmra.mrb[106].mxu0 %vm21_vm0, %v3554_v21  ;;  %6379 = vmatmul.mubr.msk.f32.gmra.mrb[106].mxu1 %vm21_vm0, %v3554_v21 }
 0xdcf   :  { %6355 = vmatprep.mubr.msk.f32.mxu0 %vm21_vm0, %v3555_v12  ;;  %6381 = vmatprep.mubr.msk.f32.mxu1 %vm21_vm0, %v3555_v12 }
 0xdd2   :  { %6356 = vmatmul.mubr.msk.f32.gmra.mrb[108].mxu0 %vm21_vm0, %v3556_v29  ;;  %6382 = vmatmul.mubr.msk.f32.gmra.mrb[108].mxu1 %vm21_vm0, %v3556_v29 }
 0xdd3   :  { %6358 = vmatprep.mubr.msk.f32.mxu0 %vm21_vm0, %v3557_v19  ;;  %6384 = vmatprep.mubr.msk.f32.mxu1 %vm21_vm0, %v3557_v19 }
 0xdd6   :  { %6359 = vmatmul.mubr.msk.f32.gmra.mrb[110].mxu0 %vm21_vm0, %v3558_v26  ;;  %6385 = vmatmul.mubr.msk.f32.gmra.mrb[110].mxu1 %vm21_vm0, %v3558_v26 }
 0xdd7   :  { %6361 = vmatprep.mubr.msk.f32.mxu0 %vm21_vm0, %v3559_v11  ;;  %6387 = vmatprep.mubr.msk.f32.mxu1 %vm21_vm0, %v3559_v11 }
 0xdda   :  { %6362 = vmatmul.mubr.msk.f32.gmra.mrb[112].mxu0 %vm21_vm0, %v3560_v8  ;;  %6388 = vmatmul.mubr.msk.f32.gmra.mrb[112].mxu1 %vm21_vm0, %v3560_v8 }
 0xddb   :  { %6364 = vmatprep.mubr.msk.f32.mxu0 %vm21_vm0, %v3561_v7  ;;  %6390 = vmatprep.mubr.msk.f32.mxu1 %vm21_vm0, %v3561_v7 }
 0xddd   :  { %v6291_v18 = vpop.f32.mrb[84].mxu0 }
 0xdde   :  { %6365 = vmatmul.mubr.msk.f32.gmra.mrb[114].mxu0 %vm21_vm0, %v3562_v47  ;;  %6391 = vmatmul.mubr.msk.f32.gmra.mrb[114].mxu1 %vm21_vm0, %v3562_v47  ;;  %v9388_v37 = vpop.f32.mrb[85].mxu0 }
 0xddf   :  { %10583 = vst [vmem:[#allocation9_spill] sm:$0xff] %v9388_v37  ;;  %6367 = vmatprep.mubr.msk.f32.mxu0 %vm21_vm0, %v3563_v0  ;;  %6393 = vmatprep.mubr.msk.f32.mxu1 %vm21_vm0, %v3563_v0 }
 0xde1   :  { %v6294_v38 = vpop.f32.mrb[86].mxu0 }
 0xde2   :  { %6368 = vmatmul.mubr.msk.f32.gmra.mrb[116].mxu0 %vm21_vm0, %v3564_v45  ;;  %6394 = vmatmul.mubr.msk.f32.gmra.mrb[116].mxu1 %vm21_vm0, %v3564_v45  ;;  %v9394_v14 = vpop.f32.mrb[87].mxu0 }
 0xde3   :  { %10584 = vst [vmem:[#allocation10_spill] sm:$0xff] %v9394_v14  ;;  %6370 = vmatprep.mubr.msk.f32.mxu0 %vm21_vm0, %v3565_v41  ;;  %6396 = vmatprep.mubr.msk.f32.mxu1 %vm21_vm0, %v3565_v41 }
 0xde6   :  { %6371 = vmatmul.mubr.msk.f32.gmra.mrb[118].mxu0 %vm21_vm0, %v3566_v28  ;;  %6397 = vmatmul.mubr.msk.f32.gmra.mrb[118].mxu1 %vm21_vm0, %v3566_v28 }
 0xde7   :  { %4784 = vmatprep.mubr.f32.mxu0 %v6291_v18  ;;  %4854 = vmatprep.mubr.f32.mxu1 %v6294_v38 }
 0xe61   :  { %v9400_v3 = vpop.f32.mrb[88].mxu0  ;;  %v9402_v61 = vpop.f32.mrb[88].mxu1 }
 0xe62   :  { %v9404_v9 = vpop.f32.mrb[89].mxu0  ;;  %v9406_v5 = vpop.f32.mrb[89].mxu1 }
 0xe69   :  { %v9408_v50 = vpop.f32.mrb[90].mxu0  ;;  %v9410_v15 = vpop.f32.mrb[90].mxu1 }
 0xe6a   :  { %v9412_v40 = vpop.f32.mrb[91].mxu0  ;;  %v9414_v36 = vpop.f32.mrb[91].mxu1 }
 0xe71   :  { %v9416_v10 = vpop.f32.mrb[92].mxu0  ;;  %v9418_v48 = vpop.f32.mrb[92].mxu1 }
 0xe72   :  { %v3858_v16 = vmax.f32 %v9400_v3, %v9416_v10  ;;  %v4110_v52 = vmax.f32 %v9402_v61, %v9418_v48  ;;  %v9424_v17 = vpop.f32.mrb[93].mxu0  ;;  %v9426_v55 = vpop.f32.mrb[93].mxu1 }
 0xe73   :  { %v3857_v56 = vmax.f32 %v9404_v9, %v9424_v17  ;;  %v4109_v51 = vmax.f32 %v9406_v5, %v9426_v55 }
 0xe79   :  { %v9432_v59 = vpop.f32.mrb[94].mxu0  ;;  %v9434_v30 = vpop.f32.mrb[94].mxu1 }
 0xe7a   :  { %v3860_v27 = vmax.f32 %v9408_v50, %v9432_v59  ;;  %v4112_v42 = vmax.f32 %v9410_v15, %v9434_v30  ;;  %v9440_v58 = vpop.f32.mrb[95].mxu0  ;;  %v9442_v49 = vpop.f32.mrb[95].mxu1 }
 0xe7b   :  { %v3859_v2 = vmax.f32 %v9412_v40, %v9440_v58  ;;  %v4111_v53 = vmax.f32 %v9414_v36, %v9442_v49 }
 0xe81   :  { %v9448_v39 = vpop.f32.mrb[96].mxu0  ;;  %v9450_v44 = vpop.f32.mrb[96].mxu1 }
 0xe82   :  { %v3862_v43 = vmax.f32 %v3858_v16, %v9448_v39  ;;  %v4114_v33 = vmax.f32 %v4110_v52, %v9450_v44  ;;  %v9454_v35 = vpop.f32.mrb[97].mxu0  ;;  %v9456_v22 = vpop.f32.mrb[97].mxu1 }
 0xe83   :  { %v3861_v23 = vmax.f32 %v3857_v56, %v9454_v35  ;;  %v4113_v34 = vmax.f32 %v4109_v51, %v9456_v22 }
 0xe89   :  { %v9460_v25 = vpop.f32.mrb[98].mxu0  ;;  %v9462_v62 = vpop.f32.mrb[98].mxu1 }
 0xe8a   :  { %10585 = vst [vmem:[#allocation11_spill] sm:$0xff] %v9462_v62  ;;  %v3864_v6 = vmax.f32 %v3860_v27, %v9460_v25  ;;  %v4116_v46 = vmax.f32 %v4112_v42, %v9462_v62  ;;  %v9466_v31 = vpop.f32.mrb[99].mxu0  ;;  %v9468_v20 = vpop.f32.mrb[99].mxu1 }
 0xe8b   :  { %10586 = vst [vmem:[#allocation12_spill] sm:$0xff] %v9468_v20  ;;  %v3863_v60 = vmax.f32 %v3859_v2, %v9466_v31  ;;  %v4115_v24 = vmax.f32 %v4111_v53, %v9468_v20 }
 0xe91   :  { %v9472_v1 = vpop.f32.mrb[100].mxu0  ;;  %v9474_v63 = vpop.f32.mrb[100].mxu1 }
 0xe92   :  { %10587 = vst [vmem:[#allocation13_spill] sm:$0xff] %v9474_v63  ;;  %v3866_v13 = vmax.f32 %v3862_v43, %v9472_v1  ;;  %v4118_v57 = vmax.f32 %v4114_v33, %v9474_v63  ;;  %v9478_v4 = vpop.f32.mrb[101].mxu0  ;;  %v9480_v21 = vpop.f32.mrb[101].mxu1 }
 0xe93   :  { %10588 = vst [vmem:[#allocation14_spill] sm:$0xff] %v9480_v21  ;;  %v3865_v12 = vmax.f32 %v3861_v23, %v9478_v4  ;;  %v4117_v29 = vmax.f32 %v4113_v34, %v9480_v21 }
 0xe95   :  { %v3869_v19 = vmax.f32 %v3865_v12, %v3866_v13  ;;  %v4121_v26 = vmax.f32 %v4117_v29, %v4118_v57 }
 0xe99   :  { %v9484_v11 = vpop.f32.mrb[102].mxu0  ;;  %v9486_v8 = vpop.f32.mrb[102].mxu1 }
 0xe9a   :  { %10589 = vst [vmem:[#allocation16_spill] sm:$0xff] %v9486_v8  ;;  %v3868_v7 = vmax.f32 %v3864_v6, %v9484_v11  ;;  %v4120_v47 = vmax.f32 %v4116_v46, %v9486_v8  ;;  %v9490_v0 = vpop.f32.mrb[103].mxu0  ;;  %v9492_v45 = vpop.f32.mrb[103].mxu1 }
 0xe9b   :  { %10590 = vst [vmem:[#allocation5_spill] sm:$0xff] %v9492_v45  ;;  %v3867_v41 = vmax.f32 %v3863_v60, %v9490_v0  ;;  %v4119_v28 = vmax.f32 %v4115_v24, %v9492_v45 }
 0xe9d   :  { %v3870_v18 = vmax.f32 %v3867_v41, %v3868_v7  ;;  %v4122_v38 = vmax.f32 %v4119_v28, %v4120_v47  ;;  %v9496_v16 = vpop.f32.mrb[104].mxu0  ;;  %v9498_v52 = vpop.f32.mrb[104].mxu1 }
 0xe9e   :  { %v9500_v56 = vpop.f32.mrb[105].mxu0  ;;  %v9502_v51 = vpop.f32.mrb[105].mxu1 }
 0xe9f   :  { %v3871_v27 = vmax.f32 %v3869_v19, %v3870_v18  ;;  %v4123_v42 = vmax.f32 %v4121_v26, %v4122_v38 }
 0xea1   :  { %v3872_v2 = vrot.slane %v3871_v27, 4  ;;  %v4124_v53 = vrot.slane %v4123_v42, 4  ;;  %v9504_v43 = vpop.f32.mrb[106].mxu0  ;;  %v9506_v33 = vpop.f32.mrb[106].mxu1 }
 0xea2   :  { %v9508_v23 = vpop.f32.mrb[107].mxu0  ;;  %v9510_v34 = vpop.f32.mrb[107].mxu1 }
 0xea3   :  { %v3873_v6 = vmax.f32 %v3871_v27, %v3872_v2  ;;  %v4125_v46 = vmax.f32 %v4123_v42, %v4124_v53 }
 0xea5   :  { %v3874_v60 = vrot.slane %v3873_v6, 2  ;;  %v4126_v24 = vrot.slane %v4125_v46, 2  ;;  %v9512_v13 = vpop.f32.mrb[108].mxu0  ;;  %v9514_v57 = vpop.f32.mrb[108].mxu1 }
 0xea6   :  { %v9520_v19 = vpop.f32.mrb[109].mxu0  ;;  %v9522_v26 = vpop.f32.mrb[109].mxu1 }
 0xea7   :  { %v3875_v7 = vmax.f32 %v3873_v6, %v3874_v60  ;;  %v4127_v47 = vmax.f32 %v4125_v46, %v4126_v24 }
 0xea9   :  { %v3876_v18 = vrot.slane %v3875_v7, 1  ;;  %v4128_v38 = vrot.slane %v4127_v47, 1  ;;  %v9528_v27 = vpop.f32.mrb[110].mxu0  ;;  %v9530_v42 = vpop.f32.mrb[110].mxu1 }
 0xeaa   :  { %v9536_v6 = vpop.f32.mrb[111].mxu0  ;;  %v9538_v46 = vpop.f32.mrb[111].mxu1 }
 0xeab   :  { %v9540_v60 = vmax.f32 %v3875_v7, %v3876_v18  ;;  %v9546_v41 = vmax.f32 %v4127_v47, %v4128_v38 }
 0xead   :  { %v3878_v2 = vsub.f32 %v9404_v9, %v9540_v60  ;;  %v3879_v53 = vsub.f32 %v9400_v3, %v9540_v60  ;;  %v3880_v29 = vsub.f32 %v9412_v40, %v9540_v60  ;;  %v3881_v7 = vsub.f32 %v9408_v50, %v9540_v60  ;;  %v9556_v18 = vpop.f32.mrb[112].mxu0  ;;  %v9558_v24 = vpop.f32.mrb[112].mxu1 }
 0xeae   :  { %10591 = vst [vmem:[#allocation8_spill] sm:$0xff] %v9558_v24  ;;  %v3882_v47 = vsub.f32 %v9424_v17, %v9540_v60  ;;  %v3883_v38 = vsub.f32 %v9416_v10, %v9540_v60  ;;  %v3884_v9 = vsub.f32 %v9440_v58, %v9540_v60  ;;  %v3885_v3 = vsub.f32 %v9432_v59, %v9540_v60  ;;  %v9568_v40 = vpop.f32.mrb[113].mxu0  ;;  %v9570_v28 = vpop.f32.mrb[113].mxu1 }
 0xeaf   :  { %10592 = vst [vmem:[#allocation17_spill] sm:$0xff] %v9570_v28  ;;  %v3886_v50 = vsub.f32 %v9454_v35, %v9540_v60  ;;  %v3887_v12 = vsub.f32 %v9448_v39, %v9540_v60  ;;  %v3888_v17 = vsub.f32 %v9466_v31, %v9540_v60  ;;  %v3889_v10 = vsub.f32 %v9460_v25, %v9540_v60 }
 0xeb0   :  { %v3890_v58 = vsub.f32 %v9478_v4, %v9540_v60  ;;  %v3891_v59 = vsub.f32 %v9472_v1, %v9540_v60  ;;  %v3894_v54 = vmul.f32 1.442695, %v3878_v2  ;;  %v3896_v39 = vmul.f32 1.442695, %v3879_v53 }
 0xeb1   :  { %v4130_v31 = vsub.f32 %v9406_v5, %v9546_v41  ;;  %v3898_v37 = vmul.f32 1.442695, %v3880_v29  ;;  %v4131_v25 = vsub.f32 %v9402_v61, %v9546_v41  ;;  %v3900_v4 = vmul.f32 1.442695, %v3881_v7  ;;  %v9596_v53 = vpop.f32.mrb[114].mxu0  ;;  %v9598_v35 = vpop.f32.mrb[114].mxu1 }
 0xeb2   :  { %7086 = vpow2.f32 %v3894_v54  ;;  %v3902_v32 = vmul.f32 1.442695, %v3882_v47  ;;  %v3904_v1 = vmul.f32 1.442695, %v3883_v38  ;;  %v4132_v14 = vsub.f32 %v9414_v36, %v9546_v41  ;;  %10593 = vst [vmem:[#allocation15_spill] sm:$0xff] %v9598_v35  ;;  %v9606_v29 = vpop.f32.mrb[115].mxu0 }
 0xeb3   :  { %7088 = vpow2.f32 %v3896_v39  ;;  %v4133_v2 = vsub.f32 %v9410_v15, %v9546_v41  ;;  %v3906_v5 = vmul.f32 1.442695, %v3884_v9  ;;  %v4134_v61 = vsub.f32 %v9426_v55, %v9546_v41  ;;  %v9608_v36 = vpop.f32.mrb[115].mxu1 }
 0xeb4   :  { %7090 = vpow2.f32 %v3898_v37  ;;  %10594 = vst [vmem:[#allocation18_spill] sm:$0xff] %v9608_v36  ;;  %v3908_v9 = vmul.f32 1.442695, %v3885_v3  ;;  %v3910_v62 = vmul.f32 1.442695, %v3886_v50 }
 0xeb5   :  { %7092 = vpow2.f32 %v3900_v4  ;;  %v9616_v47 = vpop.f32.mrb[116].mxu0  ;;  %v9618_v38 = vpop.f32.mrb[116].mxu1  ;;  %v3912_v15 = vmul.f32 1.442695, %v3887_v12  ;;  %v3914_v55 = vmul.f32 1.442695, %v3888_v17  ;;  %v10598_v17 = vmax.f32 %v9496_v16, %v9512_v13 }
 0xeb6   :  { %v9626_v37 = vpop.f32.mrb[117].mxu0  ;;  %v9628_v7 = vpop.f32.mrb[117].mxu1  ;;  %7094 = vpow2.f32 %v3902_v32  ;;  %v3916_v63 = vmul.f32 1.442695, %v3889_v10  ;;  %v3918_v20 = vmul.f32 1.442695, %v3890_v58 }
 0xeb7   :  { %7096 = vpow2.f32 %v3904_v1  ;;  %v3920_v3 = vmul.f32 1.442695, %v3891_v59  ;;  %v4146_v8 = vmul.f32 1.442695, %v4130_v31  ;;  %v4148_v1 = vmul.f32 1.442695, %v4131_v25 }
 0xeb8   :  { %7098 = vpow2.f32 %v3906_v5  ;;  %v4150_v5 = vmul.f32 1.442695, %v4132_v14  ;;  %v4366_v10 = vmax.f32 %v10598_v17, %v9556_v18  ;;  %v4152_v58 = vmul.f32 1.442695, %v4133_v2 }
 0xeb9   :  { %v9636_v54 = vpop.f32.mrb[118].mxu0  ;;  %v9638_v4 = vpop.f32.mrb[118].mxu1  ;;  %7100 = vpow2.f32 %v3908_v9  ;;  %v10599_v59 = vmax.f32 %v9498_v52, %v9514_v57  ;;  %v10600_v9 = vmax.f32 %v9500_v56, %v9520_v19  ;;  %v4154_v14 = vmul.f32 1.442695, %v4134_v61 }
 0xeba   :  { %7102 = vpow2.f32 %v3910_v62  ;;  %v9646_v45 = vpop.f32.mrb[119].mxu0  ;;  %v9648_v50 = vpop.f32.mrb[119].mxu1  ;;  %v10602_v17 = vmax.f32 %v9502_v51, %v9522_v26  ;;  %v10603_v2 = vmax.f32 %v9504_v43, %v9528_v27  ;;  %v10605_v61 = vmax.f32 %v9508_v23, %v9536_v6 }
 0xebb   :  { %7104 = vpow2.f32 %v3912_v15  ;;  %v4618_v31 = vmax.f32 %v10599_v59, %v9558_v24  ;;  %v4365_v15 = vmax.f32 %v10600_v9, %v9568_v40  ;;  %v10604_v59 = vmax.f32 %v9506_v33, %v9530_v42 }
 0xebc   :  { %v9640_v21 = vpop.eup %7086  ;;  %7106 = vpow2.f32 %v4146_v8 }
 0xebd   :  { %10595 = vst [vmem:[#allocation19_spill] sm:$0xff] %v9640_v21  ;;  %v9642_v32 = vpop.eup %7088  ;;  %7108 = vpow2.f32 %v4148_v1 }
 0xebe   :  { %10596 = vst [vmem:[#allocation20_spill] sm:$0xff] %v9642_v32  ;;  %v3926_v39 = vadd.f32 %v9642_v32, %v9640_v21  ;;  %v9650_v12 = vpop.eup %7090  ;;  %v4617_v32 = vmax.f32 %v10602_v17, %v9570_v28  ;;  %v4367_v21 = vmax.f32 %v10605_v61, %v9606_v29  ;;  %v10606_v17 = vmax.f32 %v9510_v34, %v9538_v46 }
 0xebf   :  { %10597 = vst [vmem:[#allocation6_spill] sm:$0xff] %v9650_v12  ;;  %v9665_v25 = vpop.eup %7092  ;;  %7110 = vpow2.f32 %v3914_v55 }
 0xec0   :  { %v3927_v62 = vadd.f32 %v9650_v12, %v3926_v39  ;;  %10601 = vst [vmem:[#allocation7_spill] sm:$0xff] %v9665_v25  ;;  %v4368_v39 = vmax.f32 %v10603_v2, %v9596_v53  ;;  %v4620_v12 = vmax.f32 %v10604_v59, %v9598_v35  ;;  %v4619_v24 = vmax.f32 %v10606_v17, %v9608_v36  ;;  %v9688_v28 = vpop.eup %7094 }
 0xec1   :  { %v4370_v2 = vmax.f32 %v4366_v10, %v9616_v47  ;;  %v4622_v59 = vmax.f32 %v4618_v31, %v9618_v38  ;;  %v9696_v35 = vpop.eup %7096  ;;  %7112 = vpow2.f32 %v4150_v5  ;;  %v4371_v1 = vmax.f32 %v4367_v21, %v9646_v45 }
 0xec2   :  { %v3928_v9 = vadd.f32 %v9665_v25, %v3927_v62  ;;  %v4369_v62 = vmax.f32 %v4365_v15, %v9626_v37  ;;  %v4621_v25 = vmax.f32 %v4617_v32, %v9628_v7  ;;  %v4372_v61 = vmax.f32 %v4368_v39, %v9636_v54  ;;  %v9700_v10 = vpop.eup %7098 }
 0xec3   :  { %v4624_v36 = vmax.f32 %v4620_v12, %v9638_v4  ;;  %7114 = vpow2.f32 %v3916_v63  ;;  %v4623_v15 = vmax.f32 %v4619_v24, %v9648_v50  ;;  %v10607_v32 = vsub.f32 %v9418_v48, %v9546_v41 }
 0xec4   :  { %v3929_v8 = vadd.f32 %v9688_v28, %v3928_v9  ;;  %v4373_v17 = vmax.f32 %v4369_v62, %v4370_v2  ;;  %v4625_v55 = vmax.f32 %v4621_v25, %v4622_v59  ;;  %v9704_v9 = vpop.eup %7100  ;;  %7116 = vpow2.f32 %v4152_v58 }
 0xec5   :  { %v4156_v5 = vmul.f32 1.442695, %v10607_v32  ;;  %v4374_v39 = vmax.f32 %v4371_v1, %v4372_v61  ;;  %v9709_v2 = vpop.eup %7102  ;;  %7118 = vpow2.f32 %v3918_v20  ;;  %v10608_v21 = vsub.f32 %v9490_v0, %v9540_v60 }
 0xec6   :  { %v3930_v31 = vadd.f32 %v9696_v35, %v3929_v8  ;;  %v4626_v25 = vmax.f32 %v4623_v15, %v4624_v36  ;;  %v9715_v59 = vpop.eup %7104  ;;  %7120 = vpow2.f32 %v4154_v14  ;;  %v10609_v24 = vsub.f32 %v9442_v49, %v9546_v41 }
 0xec7   :  { %v3922_v63 = vmul.f32 1.442695, %v10608_v21  ;;  %v4375_v48 = vmax.f32 %v4373_v17, %v4374_v39  ;;  %7122 = vpow2.f32 %v3920_v3  ;;  %v10610_v62 = vsub.f32 %v9484_v11, %v9540_v60  ;;  %v9727_v14 = vpop.eup %7106 }
 0xec8   :  { %v3931_v12 = vadd.f32 %v9700_v10, %v3930_v31  ;;  %v4158_v58 = vmul.f32 1.442695, %v10609_v24  ;;  %v4627_v0 = vmax.f32 %v4625_v55, %v4626_v25  ;;  %7124 = vpow2.f32 %v4156_v5  ;;  %v9733_v60 = vpop.eup %7108  ;;  %v10616_v25 = vld [vmem:[#allocation11_spill] sm:$0xff] }
 0xec9   :  { %v3924_v20 = vmul.f32 1.442695, %v10610_v62  ;;  %v10611_v36 = vsub.f32 %v9434_v30, %v9546_v41  ;;  %v4376_v1 = vrot.slane %v4375_v48, 4  ;;  %7126 = vpow2.f32 %v3922_v63  ;;  %v10614_v30 = vld [vmem:[#allocation12_spill] sm:$0xff]  ;;  %v9741_v39 = vpop.eup %7110 }
 0xeca   :  { %v3932_v8 = vadd.f32 %v9704_v9, %v3931_v12  ;;  %v10612_v3 = vsub.f32 %v9456_v22, %v9546_v41  ;;  %v4628_v11 = vrot.slane %v4627_v0, 4  ;;  %7128 = vpow2.f32 %v4158_v58  ;;  %v10618_v58 = vld [vmem:[#allocation14_spill] sm:$0xff] }
 0xecb   :  { %v4160_v61 = vmul.f32 1.442695, %v10611_v36  ;;  %v10613_v31 = vsub.f32 %v9450_v44, %v9546_v41  ;;  %v10615_v15 = vsub.f32 %v10614_v30, %v9546_v41  ;;  %v4377_v5 = vmax.f32 %v4375_v48, %v4376_v1  ;;  %v9746_v12 = vpop.eup %7112 }
 0xecc   :  { %v3933_v49 = vadd.f32 %v9709_v2, %v3932_v8  ;;  %v4162_v17 = vmul.f32 1.442695, %v10612_v3  ;;  %7130 = vpow2.f32 %v3924_v20  ;;  %v4178_v22 = vadd.f32 %v9733_v60, %v9727_v14 }
 0xecd   :  { %v4164_v55 = vmul.f32 1.442695, %v10613_v31  ;;  %v4166_v32 = vmul.f32 1.442695, %v10615_v15  ;;  %v4629_v63 = vmax.f32 %v4627_v0, %v4628_v11  ;;  %7132 = vpow2.f32 %v4160_v61  ;;  %v9754_v36 = vpop.eup %7114  ;;  %v10621_v61 = vld [vmem:[#allocation13_spill] sm:$0xff] }
 0xece   :  { %v3934_v21 = vadd.f32 %v9715_v59, %v3933_v49  ;;  %v10617_v44 = vsub.f32 %v10616_v25, %v9546_v41  ;;  %v10619_v62 = vsub.f32 %v10618_v58, %v9546_v41  ;;  %v4378_v8 = vrot.slane %v4377_v5, 2  ;;  %v9758_v49 = vpop.eup %7116  ;;  %v10623_v31 = vld [vmem:[#allocation5_spill] sm:$0xff] }
 0xecf   :  { %7134 = vpow2.f32 %v4162_v17  ;;  %v4179_v1 = vadd.f32 %v9746_v12, %v4178_v22  ;;  %v4630_v0 = vrot.slane %v4629_v63, 2  ;;  %10620 = vst [vmem:[#allocation12_spill] sm:$0xff] %v9758_v49  ;;  %v10622_v3 = vsub.f32 %v10621_v61, %v9546_v41 }
 0xed0   :  { %v4168_v24 = vmul.f32 1.442695, %v10617_v44  ;;  %v4170_v48 = vmul.f32 1.442695, %v10619_v62  ;;  %v3935_v20 = vadd.f32 %v9741_v39, %v3934_v21  ;;  %7136 = vpow2.f32 %v4164_v55  ;;  %v9766_v44 = vpop.eup %7118 }
 0xed1   :  { %v4172_v11 = vmul.f32 1.442695, %v10622_v3  ;;  %v10624_v30 = vsub.f32 %v10623_v31, %v9546_v41  ;;  %v4379_v25 = vmax.f32 %v4377_v5, %v4378_v8  ;;  %7138 = vpow2.f32 %v4166_v32  ;;  %v9770_v58 = vpop.eup %7120 }
 0xed2   :  { %v3936_v21 = vadd.f32 %v9754_v36, %v3935_v20  ;;  %v4180_v17 = vadd.f32 %v9758_v49, %v4179_v1  ;;  %v4631_v22 = vmax.f32 %v4629_v63, %v4630_v0  ;;  %10625 = vst [vmem:[#allocation11_spill] sm:$0xff] %v9770_v58  ;;  %7140 = vpow2.f32 %v4168_v24  ;;  %v9772_v62 = vpop.eup %7122  ;;  %v10627_v20 = vld [vmem:[#allocation16_spill] sm:$0xff] }
 0xed3   :  { %v4174_v15 = vmul.f32 1.442695, %v10624_v30  ;;  %v4380_v55 = vrot.slane %v4379_v25, 1  ;;  %7142 = vpow2.f32 %v4170_v48  ;;  %v9776_v8 = vpop.eup %7124  ;;  %v10628_v32 = vsub.f32 %v10627_v20, %v9546_v41 }
 0xed4   :  { %v3937_v61 = vadd.f32 %v9766_v44, %v3936_v21  ;;  %v4181_v3 = vadd.f32 %v9770_v58, %v4180_v17  ;;  %v4632_v5 = vrot.slane %v4631_v22, 1  ;;  %10626 = vst [vmem:[#allocation14_spill] sm:$0xff] %v9776_v8  ;;  %7144 = vpow2.f32 %v4172_v11  ;;  %v9783_v0 = vpop.eup %7126 }
 0xed5   :  { %v4176_v1 = vmul.f32 1.442695, %v10628_v32  ;;  %v9781_v63 = vmax.f32 %v4379_v25, %v4380_v55  ;;  %7146 = vpow2.f32 %v4174_v15  ;;  %v9789_v30 = vpop.eup %7128 }
 0xed6   :  { %v3938_v24 = vadd.f32 %v9772_v62, %v3937_v61  ;;  %v4182_v31 = vadd.f32 %v9776_v8, %v4181_v3  ;;  %v9787_v48 = vmax.f32 %v4631_v22, %v4632_v5  ;;  %10629 = vst [vmem:[#allocation13_spill] sm:$0xff] %v9789_v30  ;;  %v9799_v17 = vpop.eup %7130 }
 0xed7   :  { %v4382_v11 = vsub.f32 %v9500_v56, %v9781_v63  ;;  %v4383_v41 = vsub.f32 %v9496_v16, %v9781_v63  ;;  %v4384_v25 = vsub.f32 %v9508_v23, %v9781_v63  ;;  %v4385_v21 = vsub.f32 %v9504_v43, %v9781_v63  ;;  %v9807_v61 = vpop.eup %7132 }
 0xed8   :  { %v3939_v15 = vadd.f32 %v9783_v0, %v3938_v24  ;;  %v4183_v22 = vadd.f32 %v9789_v30, %v4182_v31  ;;  %v4386_v55 = vsub.f32 %v9520_v19, %v9781_v63  ;;  %v4387_v56 = vsub.f32 %v9512_v13, %v9781_v63  ;;  %10630 = vst [vmem:[#allocation5_spill] sm:$0xff] %v9807_v61 }
 0xed9   :  { %v4388_v16 = vsub.f32 %v9536_v6, %v9781_v63  ;;  %v4389_v43 = vsub.f32 %v9528_v27, %v9781_v63  ;;  %v4390_v23 = vsub.f32 %v9568_v40, %v9781_v63  ;;  %v4391_v3 = vsub.f32 %v9556_v18, %v9781_v63  ;;  %v9817_v5 = vpop.eup %7134 }
 0xeda   :  { %10631 = vst [vmem:[#allocation16_spill] sm:$0xff] %v9817_v5  ;;  %v3940_v19 = vadd.f32 %v9799_v17, %v3939_v15  ;;  %v4184_v13 = vadd.f32 %v9807_v61, %v4183_v22  ;;  %v4392_v20 = vsub.f32 %v9606_v29, %v9781_v63  ;;  %v4393_v6 = vsub.f32 %v9596_v53, %v9781_v63  ;;  %v9825_v32 = vpop.eup %7136 }
 0xedb   :  { %v4394_v27 = vsub.f32 %v9626_v37, %v9781_v63  ;;  %v4395_v18 = vsub.f32 %v9616_v47, %v9781_v63  ;;  %v4396_v40 = vsub.f32 %v9646_v45, %v9781_v63  ;;  %v9835_v31 = vpop.eup %7138  ;;  %v4398_v53 = vmul.f32 1.442695, %v4382_v11 }
 0xedc   :  { %v3941_v29 = vrot.slane %v3940_v19, 4  ;;  %v4185_v15 = vadd.f32 %v9817_v5, %v4184_v13  ;;  %v4400_v22 = vmul.f32 1.442695, %v4383_v41  ;;  %v9838_v61 = vpop.eup %7140  ;;  %7148 = vpow2.f32 %v4176_v1 }
 0xedd   :  { %v4402_v37 = vmul.f32 1.442695, %v4384_v25  ;;  %v4404_v30 = vmul.f32 1.442695, %v4385_v21  ;;  %v4634_v47 = vsub.f32 %v9502_v51, %v9787_v48  ;;  %v9842_v8 = vpop.eup %7142  ;;  %7150 = vpow2.f32 %v4398_v53 }
 0xede   :  { %v3942_v45 = vadd.f32 %v3941_v29, %v3940_v19  ;;  %v4186_v24 = vadd.f32 %v9825_v32, %v4185_v15  ;;  %v4406_v58 = vmul.f32 1.442695, %v4386_v55  ;;  %v9845_v49 = vpop.eup %7144  ;;  %7152 = vpow2.f32 %v4400_v22 }
 0xedf   :  { %v4408_v11 = vmul.f32 1.442695, %v4387_v56  ;;  %v4410_v41 = vmul.f32 1.442695, %v4388_v16  ;;  %v9847_v13 = vpop.eup %7146  ;;  %7154 = vpow2.f32 %v4402_v37  ;;  %v4412_v21 = vmul.f32 1.442695, %v4389_v43 }
 0xee0   :  { %v3943_v1 = vrot.slane %v3942_v45, 2  ;;  %v4187_v25 = vadd.f32 %v9835_v31, %v4186_v24  ;;  %7156 = vpow2.f32 %v4404_v30  ;;  %v4414_v51 = vmul.f32 1.442695, %v4390_v23 }
 0xee1   :  { %v4416_v5 = vmul.f32 1.442695, %v4391_v3  ;;  %v4418_v19 = vmul.f32 1.442695, %v4392_v20  ;;  %7158 = vpow2.f32 %v4406_v58  ;;  %v4420_v55 = vmul.f32 1.442695, %v4393_v6 }
 0xee2   :  { %v3944_v29 = vadd.f32 %v3943_v1, %v3942_v45  ;;  %v4188_v15 = vadd.f32 %v9838_v61, %v4187_v25  ;;  %7160 = vpow2.f32 %v4408_v11  ;;  %v4422_v53 = vmul.f32 1.442695, %v4394_v27  ;;  %v10634_v45 = vld [vmem:[#allocation18_spill] sm:$0xff]  ;;  %v10635_v11 = vld [vmem:[#allocation15_spill] sm:$0xff] }
 0xee3   :  { %v4424_v56 = vmul.f32 1.442695, %v4395_v18  ;;  %v4635_v16 = vsub.f32 %v9498_v52, %v9787_v48  ;;  %v4426_v37 = vmul.f32 1.442695, %v4396_v40  ;;  %v4636_v30 = vsub.f32 %v9510_v34, %v9787_v48 }
 0xee4   :  { %v3945_v22 = vrot.slane %v3944_v29, 1  ;;  %v4189_v24 = vadd.f32 %v9842_v8, %v4188_v15  ;;  %7162 = vpow2.f32 %v4410_v41  ;;  %v4637_v43 = vsub.f32 %v9506_v33, %v9787_v48  ;;  %v10632_v33 = vld [vmem:[#allocation17_spill] sm:$0xff]  ;;  %v10637_v41 = vld [vmem:[#allocation19_spill] sm:$0xff] }
 0xee5   :  { %v4638_v58 = vsub.f32 %v9522_v26, %v9787_v48  ;;  %v4639_v23 = vsub.f32 %v9514_v57, %v9787_v48  ;;  %7164 = vpow2.f32 %v4412_v21  ;;  %v4640_v20 = vsub.f32 %v9538_v46, %v9787_v48  ;;  %v10633_v26 = vld [vmem:[#allocation8_spill] sm:$0xff] }
 0xee6   :  { %v3946_v3 = vadd.f32 %v3945_v22, %v3944_v29  ;;  %v4190_v52 = vadd.f32 %v9845_v49, %v4189_v24  ;;  %v9865_v6 = vpop.eup %7148  ;;  %7166 = vpow2.f32 %v4414_v51  ;;  %v4641_v34 = vsub.f32 %v9530_v42, %v9787_v48 }
 0xee7   :  { %v4642_v27 = vsub.f32 %v10632_v33, %v9787_v48  ;;  %v4643_v18 = vsub.f32 %v10633_v26, %v9787_v48  ;;  %v9873_v57 = vpop.eup %7150  ;;  %v4650_v24 = vmul.f32 1.442695, %v4634_v47  ;;  %v4652_v26 = vmul.f32 1.442695, %v4635_v16 }
 0xee8   :  { %7168 = vrcp.f32 %v3946_v3  ;;  %v4191_v40 = vadd.f32 %v9847_v13, %v4190_v52  ;;  %v9880_v1 = vpop.eup %7152 }
 0xee9   :  { %7170 = vpow2.f32 %v4416_v5  ;;  %v9888_v51 = vpop.eup %7154  ;;  %v4430_v15 = vadd.f32 %v9880_v1, %v9873_v57 }
 0xeea   :  { %v4192_v29 = vadd.f32 %v9865_v6, %v4191_v40  ;;  %7172 = vpow2.f32 %v4418_v19  ;;  %v9895_v22 = vpop.eup %7156  ;;  %v10636_v19 = vsub.f32 %v9636_v54, %v9781_v63  ;;  %v4658_v54 = vmul.f32 1.442695, %v4638_v58 }
 0xeeb   :  { %7174 = vpow2.f32 %v4420_v55  ;;  %v9897_v3 = vpop.eup %7158  ;;  %v4431_v33 = vadd.f32 %v9888_v51, %v4430_v15  ;;  %v4654_v55 = vmul.f32 1.442695, %v4636_v30  ;;  %v4656_v15 = vmul.f32 1.442695, %v4637_v43 }
 0xeec   :  { %v4193_v52 = vrot.slane %v4192_v29, 4  ;;  %7176 = vpow2.f32 %v4422_v53  ;;  %v9900_v21 = vpop.eup %7160  ;;  %v4428_v40 = vmul.f32 1.442695, %v10636_v19  ;;  %v4660_v63 = vmul.f32 1.442695, %v4639_v23 }
 0xeed   :  { %7178 = vpow2.f32 %v4424_v56  ;;  %v4432_v5 = vadd.f32 %v9895_v22, %v4431_v33  ;;  %v4664_v33 = vmul.f32 1.442695, %v4641_v34  ;;  %v4666_v19 = vmul.f32 1.442695, %v4642_v27 }
 0xeee   :  { %v4194_v25 = vadd.f32 %v4193_v52, %v4192_v29  ;;  %7180 = vpow2.f32 %v4426_v37  ;;  %v9906_v47 = vpop.eup %7162  ;;  %v4662_v29 = vmul.f32 1.442695, %v4640_v20  ;;  %v4668_v27 = vmul.f32 1.442695, %v4643_v18 }
 0xeef   :  { %7182 = vpow2.f32 %v4650_v24  ;;  %v9908_v42 = vpop.eup %7164  ;;  %v4433_v16 = vadd.f32 %v9897_v3, %v4432_v5  ;;  %v10638_v5 = vld [vmem:[#allocation20_spill] sm:$0xff] }
 0xef0   :  { %v4195_v53 = vrot.slane %v4194_v25, 2  ;;  %7184 = vpow2.f32 %v4652_v26  ;;  %v9911_v56 = vpop.eup %7166  ;;  %v10639_v26 = vld [vmem:[#allocation6_spill] sm:$0xff] }
 0xef1   :  { %7186 = vpow2.f32 %v4428_v40  ;;  %v4434_v30 = vadd.f32 %v9900_v21, %v4433_v16 }
 0xef2   :  { %v7169_v37 = vpop.eup %7168  ;;  %v4196_v52 = vadd.f32 %v4195_v53, %v4194_v25  ;;  %7188 = vpow2.f32 %v4654_v55  ;;  %v10640_v25 = vld [vmem:[#allocation7_spill] sm:$0xff] }
 0xef3   :  { %v9914_v24 = vpop.eup %7170  ;;  %v9917_v46 = vmul.f32 %v7169_v37, %v10637_v41  ;;  %v9920_v43 = vmul.f32 %v7169_v37, %v10638_v5  ;;  %v9923_v40 = vmul.f32 %v7169_v37, %v10639_v26  ;;  %v4435_v20 = vadd.f32 %v9906_v47, %v4434_v30 }
 0xef4   :  { %v9925_v58 = vpop.eup %7172  ;;  %v4197_v23 = vrot.slane %v4196_v52, 1  ;;  %7190 = vpow2.f32 %v4656_v15  ;;  %v9929_v34 = vmul.f32 %v7169_v37, %v10640_v25  ;;  %v9936_v53 = vmul.f32 %v7169_v37, %v9688_v28 }
 0xef5   :  { %v9931_v55 = vpop.eup %7174  ;;  %v9939_v16 = vmul.f32 %v7169_v37, %v9696_v35  ;;  %v4436_v15 = vadd.f32 %v9908_v42, %v4435_v20  ;;  %7192 = vpow2.f32 %v4658_v54  ;;  %v9951_v28 = vmul.f32 %v7169_v37, %v9700_v10 }
 0xef6   :  { %v9941_v5 = vpop.eup %7176  ;;  %v4198_v26 = vadd.f32 %v4197_v23, %v4196_v52  ;;  %7194 = vpow2.f32 %v4660_v63  ;;  %v9954_v35 = vmul.f32 %v7169_v37, %v9704_v9  ;;  %v9960_v52 = vmul.f32 %v7169_v37, %v9709_v2 }
 0xef7   :  { %v9946_v25 = vpop.eup %7178  ;;  %v4437_v54 = vadd.f32 %v9911_v56, %v4436_v15  ;;  %v9963_v23 = vmul.f32 %v7169_v37, %v9715_v59  ;;  %v10644_v10 = vsub.f32 %v10634_v45, %v9787_v48  ;;  %v9973_v18 = vmul.f32 %v7169_v37, %v9741_v39 }
 0xef8   :  { %10641 = vst [vmem:[#allocation17_spill] sm:$0xff] %v9946_v25  ;;  %v9956_v41 = vpop.eup %7180  ;;  %7196 = vrcp.f32 %v4198_v26  ;;  %v9976_v26 = vmul.f32 %v7169_v37, %v9754_v36  ;;  %v9984_v45 = vmul.f32 %v7169_v37, %v9766_v44  ;;  %v10646_v39 = vsub.f32 %v10635_v11, %v9787_v48 }
 0xef9   :  { %10642 = vst [vmem:[#allocation8_spill] sm:$0xff] %v9956_v41  ;;  %v9965_v63 = vpop.eup %7182  ;;  %v4670_v20 = vmul.f32 1.442695, %v10644_v10  ;;  %v4438_v59 = vadd.f32 %v9914_v24, %v4437_v54  ;;  %7198 = vpow2.f32 %v4662_v29  ;;  %v9996_v29 = vmul.f32 %v7169_v37, %v9772_v62 }
 0xefa   :  { %10643 = vst [vmem:[#allocation18_spill] sm:$0xff] %v9965_v63  ;;  %v9978_v2 = vpop.eup %7184  ;;  %v4672_v9 = vmul.f32 1.442695, %v10646_v39  ;;  %7200 = vpow2.f32 %v4664_v33  ;;  %v10002_v15 = vmul.f32 %v7169_v37, %v9783_v0  ;;  %v10005_v11 = vmul.f32 %v7169_v37, %v9799_v17 }
 0xefb   :  { %10645 = vst [vmem:[#allocation15_spill] sm:$0xff] %v9978_v2  ;;  %v9986_v10 = vpop.eup %7186  ;;  %v4682_v36 = vadd.f32 %v9978_v2, %v9965_v63  ;;  %v4439_v44 = vadd.f32 %v9925_v58, %v4438_v59  ;;  %7202 = vpow2.f32 %v4666_v19  ;;  %v10648_v39 = vsub.f32 %v9628_v7, %v9787_v48 }
 0xefc   :  { %v9998_v54 = vpop.eup %7188  ;;  %7204 = vpow2.f32 %v4668_v27  ;;  %v10650_v0 = vsub.f32 %v9618_v38, %v9787_v48 }
 0xefd   :  { %10647 = vst [vmem:[#allocation19_spill] sm:$0xff] %v9998_v54  ;;  %v4674_v2 = vmul.f32 1.442695, %v10648_v39  ;;  %v4683_v30 = vadd.f32 %v9998_v54, %v4682_v36  ;;  %v4440_v33 = vadd.f32 %v9931_v55, %v4439_v44  ;;  %7206 = vpow2.f32 %v4670_v20 }
 0xefe   :  { %v10013_v63 = vpop.eup %7190  ;;  %v4676_v17 = vmul.f32 1.442695, %v10650_v0  ;;  %7208 = vpow2.f32 %v4672_v9  ;;  %v10653_v39 = vsub.f32 %v9648_v50, %v9787_v48  ;;  %v10656_v50 = vld [vmem:[#allocation11_spill] sm:$0xff] }
 0xeff   :  { %10649 = vst [vmem:[#allocation20_spill] sm:$0xff] %v10013_v63  ;;  %v4684_v7 = vadd.f32 %v10013_v63, %v4683_v30  ;;  %v10022_v19 = vpop.eup %7192  ;;  %v4441_v59 = vadd.f32 %v9941_v5, %v4440_v33  ;;  %7210 = vpow2.f32 %v4674_v2  ;;  %v10654_v30 = vsub.f32 %v9638_v4, %v9787_v48 }
 0xf00   :  { %10651 = vst [vmem:[#allocation6_spill] sm:$0xff] %v10022_v19  ;;  %v10025_v36 = vpop.eup %7194  ;;  %7212 = vpow2.f32 %v4676_v17  ;;  %v4678_v20 = vmul.f32 1.442695, %v10653_v39 }
 0xf01   :  { %10652 = vst [vmem:[#allocation7_spill] sm:$0xff] %v10025_v36  ;;  %v4685_v27 = vadd.f32 %v10022_v19, %v4684_v7  ;;  %v4442_v38 = vadd.f32 %v9946_v25, %v4441_v59  ;;  %v4680_v0 = vmul.f32 1.442695, %v10654_v30  ;;  %v10655_v59 = vld [vmem:[#allocation12_spill] sm:$0xff]  ;;  %v10657_v19 = vld [vmem:[#allocation14_spill] sm:$0xff] }
 0xf02   :  { %v7197_v44 = vpop.eup %7196  ;;  %7214 = vpow2.f32 %v4678_v20  ;;  %v10663_v20 = vpack.c.bf16 %v9939_v16, %v9936_v53  ;;  %v10665_v16 = vpack.c.bf16 %v9963_v23, %v9960_v52  ;;  %v10667_v52 = vpack.c.bf16 %v9996_v29, %v9984_v45 }
 0xf03   :  { %v4686_v33 = vadd.f32 %v10025_v36, %v4685_v27  ;;  %v4200_v9 = vmul.f32 %v7197_v44, %v9727_v14  ;;  %v4201_v2 = vmul.f32 %v7197_v44, %v9733_v60  ;;  %v4202_v7 = vmul.f32 %v7197_v44, %v9746_v12  ;;  %v10039_v37 = vpop.eup %7198  ;;  %v10658_v27 = vld [vmem:[#allocation13_spill] sm:$0xff] }
 0xf04   :  { %v4443_v17 = vadd.f32 %v9956_v41, %v4442_v38  ;;  %v4203_v62 = vmul.f32 %v7197_v44, %v10655_v59  ;;  %v4204_v39 = vmul.f32 %v7197_v44, %v10656_v50  ;;  %v4205_v63 = vmul.f32 %v7197_v44, %v10657_v19  ;;  %v10659_v14 = vld [vmem:[#allocation5_spill] sm:$0xff]  ;;  %v10048_v60 = vpop.eup %7200  ;;  %v10660_v38 = vld [vmem:[#allocation16_spill] sm:$0xff] }
 0xf05   :  { %v4687_v4 = vadd.f32 %v10039_v37, %v4686_v33  ;;  %v6698_v48 = vpack.c.bf16 %v4201_v2, %v4200_v9  ;;  %v4206_v30 = vmul.f32 %v7197_v44, %v10658_v27  ;;  %v4207_v36 = vmul.f32 %v7197_v44, %v10659_v14  ;;  %v10052_v59 = vpop.eup %7202 }
 0xf06   :  { %v4444_v12 = vadd.f32 %v9986_v10, %v4443_v17  ;;  %v6702_v54 = vpack.c.bf16 %v4203_v62, %v4202_v7  ;;  %v6706_v25 = vpack.c.bf16 %v4205_v63, %v4204_v39  ;;  %v4208_v41 = vmul.f32 %v7197_v44, %v10660_v38  ;;  %v10057_v2 = vpop.eup %7204 }
 0xf07   :  { %v4688_v50 = vadd.f32 %v10048_v60, %v4687_v4  ;;  %6699 = vmatprep.subr.bf16.mxu0 %v6698_v48  ;;  %v6710_v19 = vpack.c.bf16 %v4207_v36, %v4206_v30  ;;  %v4209_v33 = vmul.f32 %v7197_v44, %v9825_v32  ;;  %v4210_v9 = vmul.f32 %v7197_v44, %v9835_v31  ;;  %v10065_v39 = vpop.eup %7206 }
 0xf08   :  { %v4445_v27 = vrot.slane %v4444_v12, 4  ;;  %v10661_v17 = vpack.c.bf16 %v9920_v43, %v9917_v46  ;;  %v4211_v63 = vmul.f32 %v7197_v44, %v9838_v61  ;;  %v4212_v62 = vmul.f32 %v7197_v44, %v9842_v8  ;;  %v10070_v48 = vpop.eup %7208 }
 0xf09   :  { %v4213_v7 = vmul.f32 %v7197_v44, %v9845_v49  ;;  %v4689_v36 = vadd.f32 %v10052_v59, %v4688_v50  ;;  %v6714_v32 = vpack.c.bf16 %v4209_v33, %v4208_v41  ;;  %v4214_v31 = vmul.f32 %v7197_v44, %v9847_v13  ;;  %v10072_v30 = vpop.eup %7210 }
 0xf0a   :  { %6701 = vmatpush3.bf16.msra.mxu0 %v10661_v17  ;;  %v4215_v4 = vmul.f32 %v7197_v44, %v9865_v6  ;;  %v4446_v46 = vadd.f32 %v4445_v27, %v4444_v12  ;;  %v6718_v43 = vpack.c.bf16 %v4211_v63, %v4210_v9  ;;  %v10075_v14 = vpop.eup %7212  ;;  %7216 = vpow2.f32 %v4680_v0 }
 0xf0b   :  { %6703 = vmatprep.subr.bf16.mxu0 %v6702_v54  ;;  %v6722_v61 = vpack.c.bf16 %v4213_v7, %v4212_v62  ;;  %v4690_v49 = vadd.f32 %v10057_v2, %v4689_v36  ;;  %v10662_v13 = vpack.c.bf16 %v9929_v34, %v9923_v40  ;;  %v10664_v40 = vpack.c.bf16 %v9954_v35, %v9951_v28 }
 0xf0c   :  { %v6726_v8 = vpack.c.bf16 %v4215_v4, %v4214_v31  ;;  %v4447_v38 = vrot.slane %v4446_v46, 2  ;;  %v10087_v33 = vpop.eup %7214  ;;  %v10666_v27 = vpack.c.bf16 %v9976_v26, %v9973_v18 }
 0xf0d   :  { %v4691_v6 = vadd.f32 %v10065_v39, %v4690_v49 }
 0xf0e   :  { %6705 = vmatpush3.bf16.msra.mxu0 %v10662_v13  ;;  %v4448_v41 = vadd.f32 %v4447_v38, %v4446_v46 }
 0xf0f   :  { %6707 = vmatprep.subr.bf16.mxu0 %v6706_v25  ;;  %v4692_v54 = vadd.f32 %v10070_v48, %v4691_v6 }
 0xf10   :  { %v4449_v44 = vrot.slane %v4448_v41, 1 }
 0xf11   :  { %v4693_v12 = vadd.f32 %v10072_v30, %v4692_v54 }
 0xf12   :  { %6709 = vmatpush3.bf16.msra.mxu0 %v10663_v20  ;;  %v4450_v50 = vadd.f32 %v4449_v44, %v4448_v41  ;;  %v10675_v41 = vld [vmem:[#allocation15_spill] sm:$0xff] }
 0xf13   :  { %6711 = vmatprep.subr.bf16.mxu0 %v6710_v19  ;;  %v4694_v0 = vadd.f32 %v10075_v14, %v4693_v12  ;;  %v10676_v44 = vld [vmem:[#allocation19_spill] sm:$0xff]  ;;  %v10677_v12 = vld [vmem:[#allocation20_spill] sm:$0xff] }
 0xf14   :  { %7218 = vrcp.f32 %v4450_v50  ;;  %v10093_v25 = vpop.eup %7216  ;;  %v10678_v50 = vld [vmem:[#allocation6_spill] sm:$0xff] }
 0xf15   :  { %v4695_v34 = vadd.f32 %v10087_v33, %v4694_v0 }
 0xf16   :  { %6713 = vmatpush3.bf16.msra.mxu0 %v10664_v40  ;;  %v10679_v40 = vld [vmem:[#allocation7_spill] sm:$0xff] }
 0xf17   :  { %6715 = vmatprep.subr.bf16.mxu0 %v6714_v32  ;;  %v4696_v53 = vadd.f32 %v10093_v25, %v4695_v34 }
 0xf19   :  { %v4697_v19 = vrot.slane %v4696_v53, 4 }
 0xf1a   :  { %6717 = vmatpush3.bf16.msra.mxu0 %v10665_v16 }
 0xf1b   :  { %6719 = vmatprep.subr.bf16.mxu0 %v6718_v43  ;;  %v4698_v9 = vadd.f32 %v4697_v19, %v4696_v53 }
 0xf1d   :  { %v4699_v28 = vrot.slane %v4698_v9, 2 }
 0xf1e   :  { %6721 = vmatpush3.bf16.msra.mxu0 %v10666_v27  ;;  %v7219_v35 = vpop.eup %7218 }
 0xf1f   :  { %6723 = vmatprep.subr.bf16.mxu0 %v6722_v61  ;;  %v4700_v17 = vadd.f32 %v4699_v28, %v4698_v9  ;;  %v4452_v63 = vmul.f32 %v7219_v35, %v9873_v57  ;;  %v4453_v62 = vmul.f32 %v7219_v35, %v9880_v1  ;;  %v4454_v7 = vmul.f32 %v7219_v35, %v9888_v51 }
 0xf20   :  { %v4455_v23 = vmul.f32 %v7219_v35, %v9895_v22  ;;  %v4456_v36 = vmul.f32 %v7219_v35, %v9897_v3  ;;  %v4457_v18 = vmul.f32 %v7219_v35, %v9900_v21  ;;  %v4458_v26 = vmul.f32 %v7219_v35, %v9906_v47 }
 0xf21   :  { %v4701_v32 = vrot.slane %v4700_v17, 1  ;;  %v6732_v31 = vpack.c.bf16 %v4453_v62, %v4452_v63  ;;  %v4459_v57 = vmul.f32 %v7219_v35, %v9908_v42  ;;  %v4460_v1 = vmul.f32 %v7219_v35, %v9911_v56  ;;  %v10669_v42 = vld [vmem:[#allocation17_spill] sm:$0xff]  ;;  %v10670_v56 = vld [vmem:[#allocation8_spill] sm:$0xff] }
 0xf22   :  { %6725 = vmatpush3.bf16.msra.mxu0 %v10667_v52  ;;  %v6736_v51 = vpack.c.bf16 %v4455_v23, %v4454_v7  ;;  %v6740_v4 = vpack.c.bf16 %v4457_v18, %v4456_v36  ;;  %v4461_v45 = vmul.f32 %v7219_v35, %v9914_v24  ;;  %v4462_v29 = vmul.f32 %v7219_v35, %v9925_v58 }
 0xf23   :  { %6727 = vmatprep.subr.bf16.mxu0 %v6726_v8  ;;  %v4702_v22 = vadd.f32 %v4701_v32, %v4700_v17  ;;  %v6744_v46 = vpack.c.bf16 %v4459_v57, %v4458_v26  ;;  %v4463_v3 = vmul.f32 %v7219_v35, %v9931_v55  ;;  %v4464_v21 = vmul.f32 %v7219_v35, %v9941_v5  ;;  %v10672_v55 = vld [vmem:[#allocation9_spill] sm:$0xff]  ;;  %v3396_v57 = vld [vmem:[%s10289_s3 + $0x230] sm:$0xff] }
 0xf24   :  { %v10668_v47 = vpack.c.bf16 %v10005_v11, %v10002_v15  ;;  %v6748_v43 = vpack.c.bf16 %v4461_v45, %v4460_v1  ;;  %v4465_v61 = vmul.f32 %v7219_v35, %v10669_v42  ;;  %v4466_v49 = vmul.f32 %v7219_v35, %v10670_v56  ;;  %v10674_v11 = vld [vmem:[#allocation18_spill] sm:$0xff]  ;;  %v3394_v26 = vld [vmem:[%s10289_s3 + $0x220] sm:$0xff]  ;;  %v3397_v1 = vld [vmem:[%s10289_s3 + $0x238] sm:$0xff] }
 0xf25   :  { %v4467_v8 = vmul.f32 %v7219_v35, %v9986_v10  ;;  %7220 = vrcp.f32 %v4702_v22  ;;  %v6752_v24 = vpack.c.bf16 %v4463_v3, %v4462_v29  ;;  %v10671_v58 = vmov 0.0|0.0   ;;  %v3395_v32 = vld [vmem:[%s10289_s3 + $0x228] sm:$0xff]  ;;  %v3400_v22 = vld [vmem:[%s10289_s3 + $0x250] sm:$0xff] }
 0xf26   :  { %6729 = vmatpush3.bf16.msra.mxu0 %v10668_v47  ;;  %v6756_v38 = vpack.c.bf16 %v4465_v61, %v4464_v21  ;;  %v10673_v5 = vmov 0.0   ;;  %v3399_v45 = vld [vmem:[%s10289_s3 + $0x248] sm:$0xff]  ;;  %v3402_v21 = vld [vmem:[%s10289_s3 + $0x260] sm:$0xff]  ;;  %v3404_v42 = vld [vmem:[%s10289_s3 + $0x270] sm:$0xff] }
 0xf27   :  { %6762 = vmatprep.subr.bf16.mxu0 %v10671_v58  ;;  %v6760_v13 = vpack.c.bf16 %v4467_v8, %v4466_v49  ;;  %v3403_v47 = vld [vmem:[%s10289_s3 + $0x268] sm:$0xff]  ;;  %v3405_v61 = vld [vmem:[%s10289_s3 + $0x278] sm:$0xff] }
 0xf28   :  { %v6784_v56 = vpack.c.bf16 %v3405_v61, %v3404_v42 }
 0xf29   :  { %4785 = vmatmul.mubr.f32.vlgmr.msra.gmra.mrb[120].mxu0 %v10672_v55 }
 0xf2a   :  { %6431 = vmatprep.mubr.msk.f32.mxu0 %vm7247_vm1, %v10673_v5 }
 0xf2f   :  { %v7221_v15 = vpop.eup %7220 }
 0xf30   :  { %v4704_v6 = vmul.f32 %v7221_v15, %v10674_v11  ;;  %v4705_v54 = vmul.f32 %v7221_v15, %v10675_v41  ;;  %v4706_v20 = vmul.f32 %v7221_v15, %v10676_v44  ;;  %v4707_v10 = vmul.f32 %v7221_v15, %v10677_v12  ;;  %v5326_v41 = vld [vmem:[%s10288_s2 + $0xc0] ss:$0 sm:$0xff] }
 0xf31   :  { %v4708_v0 = vmul.f32 %v7221_v15, %v10678_v50  ;;  %v4709_v34 = vmul.f32 %v7221_v15, %v10679_v40  ;;  %v4710_v53 = vmul.f32 %v7221_v15, %v10039_v37  ;;  %v4711_v16 = vmul.f32 %v7221_v15, %v10048_v60  ;;  %v3406_v44 = vld [vmem:[%s10289_s3 + $0x280] sm:$0xff] }
 0xf32   :  { %v6730_v19 = vpack.c.bf16 %v4705_v54, %v4704_v6  ;;  %v6734_v9 = vpack.c.bf16 %v4707_v10, %v4706_v20  ;;  %v4712_v27 = vmul.f32 %v7221_v15, %v10052_v59  ;;  %v4713_v28 = vmul.f32 %v7221_v15, %v10057_v2  ;;  %v3407_v20 = vld [vmem:[%s10289_s3 + $0x288] sm:$0xff] }
 0xf33   :  { %v6738_v35 = vpack.c.bf16 %v4709_v34, %v4708_v0  ;;  %v6742_v17 = vpack.c.bf16 %v4711_v16, %v4710_v53  ;;  %v4714_v63 = vmul.f32 %v7221_v15, %v10065_v39  ;;  %v4715_v62 = vmul.f32 %v7221_v15, %v10070_v48  ;;  %v10680_v39 = vld [vmem:[#allocation10_spill] sm:$0xff]  ;;  %v3390_v48 = vld [vmem:[%s10289_s3 + $0x200] sm:$0xff]  ;;  %v4935_v0 = vld [vmem:[%s10287_s1 + $0xf8] sm:$0x3] }
 0xf34   :  { %6731 = vmatprep.subr.bf16.mxu1 %v6730_v19  ;;  %v6746_v7 = vpack.c.bf16 %v4713_v28, %v4712_v27  ;;  %v4716_v52 = vmul.f32 %v7221_v15, %v10072_v30  ;;  %v4717_v37 = vmul.f32 %v7221_v15, %v10075_v14  ;;  %v4718_v60 = vmul.f32 %v7221_v15, %v10087_v33  ;;  %v3391_v30 = vld [vmem:[%s10289_s3 + $0x208] sm:$0xff]  ;;  %v3392_v14 = vld [vmem:[%s10289_s3 + $0x210] sm:$0xff]  ;;  %v3409_v53 = vld [vmem:[%s10289_s3 + $0x298] sm:$0xff] }
 0xf35   :  { %6733 = vmatpush3.bf16.msra.mxu1 %v6732_v31  ;;  %v6750_v23 = vpack.c.bf16 %v4715_v62, %v4714_v63  ;;  %v4719_v59 = vmul.f32 %v7221_v15, %v10093_v25  ;;  %v6763_v33 = vpack.c.bf16 %v3391_v30, %v3390_v48  ;;  %v3393_v25 = vld [vmem:[%s10289_s3 + $0x218] sm:$0xff]  ;;  %v6769_v31 = vpack.c.bf16 %v3395_v32, %v3394_v26  ;;  %v3408_v34 = vld [vmem:[%s10289_s3 + $0x290] sm:$0xff]  ;;  %v3410_v19 = vld [vmem:[%s10289_s3 + $0x2a0] sm:$0xff] }
 0xf36   :  { %6735 = vmatprep.subr.bf16.mxu1 %v6734_v9  ;;  %v6754_v2 = vpack.c.bf16 %v4717_v37, %v4716_v52  ;;  %v6766_v18 = vpack.c.bf16 %v3393_v25, %v3392_v14  ;;  %v6787_v40 = vpack.c.bf16 %v3407_v20, %v3406_v44  ;;  %v6790_v16 = vpack.c.bf16 %v3409_v53, %v3408_v34  ;;  %v3411_v9 = vld [vmem:[%s10289_s3 + $0x2a8] sm:$0xff]  ;;  %v3412_v28 = vld [vmem:[%s10289_s3 + $0x2b0] sm:$0xff]  ;;  %v3417_v52 = vld [vmem:[%s10289_s3 + $0x2d8] sm:$0xff] }
 0xf37   :  { %v6758_v36 = vpack.c.bf16 %v4719_v59, %v4718_v60  ;;  %6764 = vmatpush3.bf16.msra.mxu0 %v6763_v33  ;;  %v6793_v27 = vpack.c.bf16 %v3411_v9, %v3410_v19  ;;  %v3415_v63 = vld [vmem:[%s10289_s3 + $0x2c8] sm:$0xff]  ;;  %v3418_v60 = vld [vmem:[%s10289_s3 + $0x2e0] sm:$0xff] }
 0xf38   :  { %6765 = vmatprep.subr.bf16.mxu0 %v10671_v58  ;;  %v5328_v14 = vld [vmem:[%s10288_s2 + $0xc1] ss:$0 sm:$0xff] }
 0xf39   :  { %6737 = vmatpush3.bf16.msra.mxu1 %v6736_v51  ;;  %v6772_v51 = vpack.c.bf16 %v3397_v1, %v3396_v57 }
 0xf3a   :  { %6739 = vmatprep.subr.bf16.mxu1 %v6738_v35 }
 0xf3b   :  { %6767 = vmatpush3.bf16.msra.mxu0 %v6766_v18 }
 0xf3c   :  { %6768 = vmatprep.subr.bf16.mxu0 %v10671_v58 }
 0xf3d   :  { %6741 = vmatpush3.bf16.msra.mxu1 %v6740_v4  ;;  %v3398_v4 = vld [vmem:[%s10289_s3 + $0x240] sm:$0xff] }
 0xf3e   :  { %6743 = vmatprep.subr.bf16.mxu1 %v6742_v17  ;;  %v6775_v29 = vpack.c.bf16 %v3399_v45, %v3398_v4  ;;  %v3414_v17 = vld [vmem:[%s10289_s3 + $0x2c0] sm:$0xff] }
 0xf3f   :  { %6770 = vmatpush3.bf16.msra.mxu0 %v6769_v31  ;;  %v6799_v62 = vpack.c.bf16 %v3415_v63, %v3414_v17 }
 0xf40   :  { %6771 = vmatprep.subr.bf16.mxu0 %v10671_v58 }
 0xf41   :  { %6745 = vmatpush3.bf16.msra.mxu1 %v6744_v46  ;;  %v3401_v46 = vld [vmem:[%s10289_s3 + $0x258] sm:$0xff] }
 0xf42   :  { %6747 = vmatprep.subr.bf16.mxu1 %v6746_v7  ;;  %v6778_v3 = vpack.c.bf16 %v3401_v46, %v3400_v22  ;;  %v3416_v7 = vld [vmem:[%s10289_s3 + $0x2d0] sm:$0xff] }
 0xf43   :  { %6773 = vmatpush3.bf16.msra.mxu0 %v6772_v51  ;;  %v6802_v37 = vpack.c.bf16 %v3417_v52, %v3416_v7 }
 0xf44   :  { %6774 = vmatprep.subr.bf16.mxu0 %v10671_v58 }
 0xf45   :  { %6749 = vmatpush3.bf16.msra.mxu1 %v6748_v43  ;;  %v6781_v43 = vpack.c.bf16 %v3403_v47, %v3402_v21 }
 0xf46   :  { %6751 = vmatprep.subr.bf16.mxu1 %v6750_v23  ;;  %v3419_v23 = vld [vmem:[%s10289_s3 + $0x2e8] sm:$0xff] }
 0xf47   :  { %6776 = vmatpush3.bf16.msra.mxu0 %v6775_v29  ;;  %v6805_v59 = vpack.c.bf16 %v3419_v23, %v3418_v60 }
 0xf48   :  { %6777 = vmatprep.subr.bf16.mxu0 %v10671_v58 }
 0xf49   :  { %6753 = vmatpush3.bf16.msra.mxu1 %v6752_v24 }
 0xf4a   :  { %6755 = vmatprep.subr.bf16.mxu1 %v6754_v2  ;;  %v3420_v2 = vld [vmem:[%s10289_s3 + $0x2f0] sm:$0xff] }
 0xf4b   :  { %6779 = vmatpush3.bf16.msra.mxu0 %v6778_v3 }
 0xf4c   :  { %6780 = vmatprep.subr.bf16.mxu0 %v10671_v58 }
 0xf4d   :  { %6757 = vmatpush3.bf16.msra.mxu1 %v6756_v38  ;;  %v3387_v38 = vld [vmem:[%s10288_s2 + $0xb8] sm:$0xff] }
 0xf4e   :  { %6759 = vmatprep.subr.bf16.mxu1 %v6758_v36  ;;  %v3421_v36 = vld [vmem:[%s10289_s3 + $0x2f8] sm:$0xff] }
 0xf4f   :  { %6782 = vmatpush3.bf16.msra.mxu0 %v6781_v43 }
 0xf50   :  { %6783 = vmatprep.subr.bf16.mxu0 %v10671_v58 }
 0xf51   :  { %6761 = vmatpush3.bf16.msra.mxu1 %v6760_v13 }
 0xf52   :  { %6434 = vmatprep.subr.mxu1 %v10673_v5 }
 0xf53   :  { %6785 = vmatpush3.bf16.msra.mxu0 %v6784_v56 }
 0xf54   :  { %4855 = vmatmul.mubr.f32.vlgmr.msra.gmra.mrb[120].mxu1 %v10680_v39  ;;  %v6808_v39 = vpack.c.bf16 %v3421_v36, %v3420_v2 }
 0xf55   :  { %6436 = vmatprep.mubr.msk.f32.mxu1 %vm7247_vm1, %v10673_v5 }
 0xffc   :  { %v5811_v49 = vpop.f32.mrb[120].mxu0 }
 0xffd   :  { %v5812_v8 = vpop.f32.mrb[121].mxu0 }
 0xffe   :  { %v5813_v24 = vadd.f32 %v5812_v8, %v5811_v49 }
0x1000   :  { %v4787_v15 = vadd.f32 %v5813_v24, %v3387_v38 }
0x1027   :  { %v5846_v13 = vpop.f32.mrb[120].mxu1 }
0x1028   :  { %v5847_v55 = vpop.f32.mrb[121].mxu1 }
0x1029   :  { %v5848_v11 = vadd.f32 %v5847_v55, %v5846_v13 }
0x102b   :  { %v4857_v6 = vadd.f32 %v5848_v11, %v4787_v15 }
0x102d   :  { %6432 = vmatmul.mubr.f32.vlgmr.msra.gmra.mrb[122].mxu0 %v4857_v6 }
0x1100   :  { %v4930_v54 = vpop.f32.mrb[122].mxu0 }
0x1101   :  { %v4931_v12 = vadd.f32 %v5326_v41, %v4930_v54  ;;  %v6433_v10 = vpop.f32.mrb[123].mxu0 }
0x1103   :  { %v4934_v50 = vmax.f32 %v4931_v12, 0.0 }
0x1105   :  { %6435 = vmatpush3.msra.mxu1 %v4934_v50 }
0x1106   :  { %6437 = vmatmul.mubr.msk.f32.vlgmr.msra.gmra.mrb[122].mxu1 %vm21_vm0, %v4935_v0  ;;  %6786 = vmatprep.subr.bf16.mxu1 %v10671_v58 }
0x1107   :  { %6788 = vmatpush3.bf16.msra.mxu1 %v6787_v40  ;;  %6471 = vmatprep.mubr.msk.f32.mxu1 %vm7247_vm1, %v10673_v5  ;;  %v3413_v5 = vld [vmem:[%s10289_s3 + $0x2b8] sm:$0xff]  ;;  %s7222_s3 = scalar_lea.vmem %s5092_s5, 32 }
0x1108   :  { %6789 = vmatprep.subr.bf16.mxu1 %v10671_v58  ;;  %v6796_v35 = vpack.c.bf16 %v3413_v5, %v3412_v28  ;;  %p7223_p0 = scmp.ne.s32.totalorder %s5092_s5, %s7222_s3  ;;  %p7228_p2 = scmp.lt.s32.totalorder %s7222_s3, %s7222_s3 }
0x110a   :  { %p7229_p3 = por %p7228_p2, %p7227_p1 }
0x110b   :  { %6791 = vmatpush3.bf16.msra.mxu1 %v6790_v16 }
0x110c   :  { %6792 = vmatprep.subr.bf16.mxu1 %v10671_v58  ;;  %p7230_p4 = pnand %p7229_p3, %p7223_p0 }
0x110f   :  { %6794 = vmatpush3.bf16.msra.mxu1 %v6793_v27 }
0x1110   :  { %6795 = vmatprep.subr.bf16.mxu1 %v10671_v58 }
0x1113   :  { %6797 = vmatpush3.bf16.msra.mxu1 %v6796_v35 }
0x1114   :  { %6798 = vmatprep.subr.bf16.mxu1 %v10671_v58 }
0x1117   :  { %6800 = vmatpush3.bf16.msra.mxu1 %v6799_v62 }
0x1118   :  { %6801 = vmatprep.subr.bf16.mxu1 %v10671_v58 }
0x111b   :  { %6803 = vmatpush3.bf16.msra.mxu1 %v6802_v37 }
0x111c   :  { %6804 = vmatprep.subr.bf16.mxu1 %v10671_v58 }
0x111f   :  { %6806 = vmatpush3.bf16.msra.mxu1 %v6805_v59 }
0x1120   :  { %6807 = vmatprep.subr.bf16.mxu1 %v10671_v58 }
0x1123   :  { %6809 = vmatpush3.bf16.msra.mxu1 %v6808_v39 }
0x11d9   :  { %v5005_v48 = vpop.f32.mrb[122].mxu1 }
0x11da   :  { %v6438_v30 = vpop.f32.mrb[123].mxu1  ;;  %6472 = vmatmul.mubr.f32.vlgmr.msra.gmra.mrb[124].mxu1 %v5005_v48 }
0x12ad   :  { %v5079_v33 = vpop.f32.mrb[124].mxu1 }
0x12ae   :  { %v5080_v25 = vadd.f32 %v5328_v14, %v5079_v33  ;;  %v6473_v18 = vpop.f32.mrb[125].mxu1 }
0x12b0   :  { %5084 = vst.msk [vmem:[#allocation2] sm:$0x3] %vm5083_vm2, %v5080_v25 }
0x12b1   :  { %7233 = shalt.err (!%p7230_p4)
}
0x12b2   :  { %s7234_s7 = scalar_lea.hbm %s10290_s4, 32 }
0x12b3   :  { %p7235_p5 = scmp.ne.s32.totalorder %s10290_s4, %s7234_s7  ;;  %p7238_p6 = scmp.lt.u32.totalorder %s7234_s7, %s10290_s4 }
0x12b5   :  { %p7240_p7 = pnand %p7238_p6, %p7235_p5 }
0x12b7   :  { %7243 = shalt.err (!%p7240_p7)
}
0x12b8   :  { %5094 = dma.vmem_to_hbm [thread:$0]  %s5092_s5, 32, %s10290_s4, [#allocation3]  }
0x12b9   :  { %7244 = dma.done.wait [#allocation3], 32  }
0x12ba   :  { %7245 = vsyncadd [#allocation3], 4294967264 }
0x12bb   :  { %5098 = vsyncpa [#allocation3], 1 }

</bundles_post_ra>
